<compile_context>
chip_gen: v5e
topology: v5e:2x2
jax: 0.10.0
libtpu: 0.0.40
codegen_flags: <defaults>
</compile_context>

<pallas_src>
import math

import jax
import jax.numpy as jnp
import numpy as np
from jax import lax
from jax.experimental import pallas as pl
from jax.experimental.pallas import tpu as pltpu

_LANE = 128   # lane width (output channel padding)
_SUB = 16     # bf16 sublane tile; keeps the in-kernel reshape layout-trivial


def _round_up(x, m):
    return (x + m - 1) // m * m


def _tpu_vmem_capacity():
    try:
        return int(pltpu.get_tpu_info().vmem_capacity_bytes)
    except Exception:
        return 64 * 1024 * 1024  # v7x per-TensorCore VMEM: safe lower bound


def _vmem_bytes(tile_h, Wo, Do_pad, K8, Co_pad, in_isz, out_isz):
    """Rough per-grid-step VMEM footprint (pipeline double-buffers inputs/outputs)."""
    blk_a = tile_h * (Wo + 1) * (Do_pad + 1) * K8 * in_isz
    blk_b = (Wo + 1) * (Do_pad + 1) * K8 * in_isz
    out = tile_h * Wo * Do_pad * Co_pad * out_isz
    halo = (tile_h + 1) * (Wo + 1) * (Do_pad + 1) * K8 * in_isz
    acc = tile_h * Wo * Do_pad * Co_pad * 4
    w = 8 * K8 * Co_pad * in_isz
    b = Co_pad * 4
    return 2 * (blk_a + blk_b + out) + halo + acc + w + b


def _make_kernel(tile_h, Wo, Do_pad, K8):
    M = tile_h * Wo * Do_pad

    def kernel(a_ref, b_ref, w_ref, bias_ref, o_ref, halo_ref, acc_ref):
        # a_ref    : (1, tile_h, Wo+1, Do_pad+1, K8)  body rows of the halo block
        # b_ref    : (1, 1,      Wo+1, Do_pad+1, K8)  +1 halo row along H
        # w_ref    : (8, K8, Co_pad)                  shift matrices (27 taps folded)
        # bias_ref : (1, Co_pad)                      f32
        # o_ref    : (1, M, Co_pad)                   lane-dense output tile
        # halo_ref : (tile_h+1, Wo+1, Do_pad+1, K8)   VMEM scratch
        # acc_ref  : (M, Co_pad)                      f32 VMEM accumulator
        halo_ref[0:tile_h] = a_ref[0]
        halo_ref[tile_h:tile_h + 1] = b_ref[0]
        acc_ref[...] = jnp.zeros_like(acc_ref)
        for dh in range(2):
            for dw in range(2):
                for dd in range(2):
                    g = (dh * 2 + dw) * 2 + dd
                    lhs = halo_ref[dh:dh + tile_h, dw:dw + Wo, dd:dd + Do_pad, :]
                    acc_ref[...] += jnp.dot(
                        lhs.reshape(M, K8), w_ref[g],
                        preferred_element_type=jnp.float32)
        o_ref[0] = (acc_ref[...] + bias_ref[...]).astype(o_ref.dtype)

    return kernel


def downsample_forward(x, weight, bias, *, tile_h=None, compute_dtype=jnp.bfloat16):
    """Conv3d(C, C, kernel=3, stride=2, padding=1) == Downsample.forward.

    x:      (N, C, H, W, D) with H, W, D even
    weight: (Cout, Cin, 3, 3, 3)  (PyTorch OIHWD layout)
    bias:   (Cout,)
    returns (N, Cout, H // 2, W // 2, D // 2) in x's dtype.
    """
    N, C, H, W, D = x.shape
    Co = weight.shape[0]
    if H % 2 or W % 2 or D % 2:
        raise ValueError("downsampling tensor spatial dims should be even")
    Ho, Wo, Do = H // 2, W // 2, D // 2

    Do_pad = _round_up(Do, _SUB)
    Co_pad = _round_up(Co, _LANE)
    K8 = 8 * C
    out_dtype = x.dtype
    in_isz = jnp.zeros((), compute_dtype).dtype.itemsize
    out_isz = np.dtype(out_dtype).itemsize

    # --- tile selection against the real VMEM capacity (128 MiB v5e/v6e, 64 MiB v7x)
    vmem_cap = _tpu_vmem_capacity()
    vmem_limit = min(vmem_cap - (4 << 20), int(vmem_cap * 0.9))
    budget = int(vmem_limit * 0.8)
    if tile_h is None:
        tile_h = Ho
        while tile_h > 1 and _vmem_bytes(tile_h, Wo, Do_pad, K8, Co_pad,
                                         in_isz, out_isz) > budget:
            tile_h = max(1, (tile_h + 1) // 2)
    tile_h = max(1, min(int(tile_h), Ho))
    Ho_pad = _round_up(Ho, tile_h)
    M = tile_h * Wo * Do_pad

    # --- glue (one activation-sized pass): channels-last, zero-pad, space-to-depth.
    #     The stride-2 phases end up in the channel dim, so the kernel only needs
    #     unit-stride static slices (no strided loads, no in-kernel padding logic).
    x_cl = jnp.transpose(x, (0, 2, 3, 4, 1)).astype(compute_dtype)        # (N,H,W,D,C)
    x_p = jnp.pad(x_cl, ((0, 0),
                         (1, 2 * (Ho_pad - Ho) + 1),
                         (1, 1),
                         (1, 2 * (Do_pad - Do) + 1),
                         (0, 0)))
    s2d = x_p.reshape(N, Ho_pad + 1, 2, Wo + 1, 2, Do_pad + 1, 2, C)
    s2d = jnp.transpose(s2d, (0, 1, 3, 5, 2, 4, 6, 7))
    s2d = s2d.reshape(N, Ho_pad + 1, Wo + 1, Do_pad + 1, K8)

    # --- fold the 27 conv taps into 8 shift matrices of shape (8*C, Co_pad).
    wt = jnp.transpose(weight, (2, 3, 4, 1, 0)).astype(jnp.float32)        # (3,3,3,Ci,Co)
    wmat = jnp.zeros((8, 8, C, Co), jnp.float32)
    for kh in range(3):
        for kw in range(3):
            for kd in range(3):
                g = ((kh // 2) * 2 + (kw // 2)) * 2 + (kd // 2)
                p = ((kh % 2) * 2 + (kw % 2)) * 2 + (kd % 2)
                wmat = wmat.at[g, p].set(wt[kh, kw, kd])
    wmat = wmat.reshape(8, K8, Co)
    wmat = jnp.pad(wmat, ((0, 0), (0, 0), (0, Co_pad - Co))).astype(compute_dtype)
    bias_p = jnp.pad(bias.astype(jnp.float32), (0, Co_pad - Co)).reshape(1, Co_pad)

    grid = (N, Ho_pad // tile_h)
    flops = int(2 * 8 * N * Ho_pad * Wo * Do_pad * K8 * Co_pad)
    bytes_accessed = int(np.prod(s2d.shape)) * in_isz \
        + int(np.prod(wmat.shape)) * in_isz + Co_pad * 4 \
        + N * Ho_pad * Wo * Do_pad * Co_pad * out_isz
    cost = pl.CostEstimate(flops=flops, transcendentals=0,
                           bytes_accessed=int(bytes_accessed))

    kernel = _make_kernel(tile_h, Wo, Do_pad, K8)
    out3 = pl.pallas_call(
        kernel,
        out_shape=jax.ShapeDtypeStruct((N, Ho_pad * Wo * Do_pad, Co_pad), out_dtype),
        grid_spec=pltpu.PrefetchScalarGridSpec(
            num_scalar_prefetch=0,
            grid=grid,
            in_specs=[
                # body rows of the halo block
                pl.BlockSpec((1, tile_h, Wo + 1, Do_pad + 1, K8),
                             lambda n, hb: (n, hb, 0, 0, 0)),
                # +1 halo row along H (same array, different window)
                pl.BlockSpec((1, 1, Wo + 1, Do_pad + 1, K8),
                             lambda n, hb: (n, (hb + 1) * tile_h, 0, 0, 0)),
                # shift matrices (resident)
                pl.BlockSpec((8, K8, Co_pad), lambda n, hb: (0, 0, 0)),
                # bias (resident)
                pl.BlockSpec((1, Co_pad), lambda n, hb: (0, 0)),
            ],
            out_specs=pl.BlockSpec((1, M, Co_pad), lambda n, hb: (n, hb, 0)),
            scratch_shapes=[
                pltpu.VMEM((tile_h + 1, Wo + 1, Do_pad + 1, K8), compute_dtype),
                pltpu.VMEM((M, Co_pad), jnp.float32),
            ],
        ),
        compiler_params=pltpu.CompilerParams(
            dimension_semantics=("parallel", "parallel"),
            vmem_limit_bytes=int(vmem_limit)),
        cost_estimate=cost,
    )(s2d, s2d, wmat, bias_p)

    # (N, Ho_pad*Wo*Do_pad, Co_pad) -> (N, Co, Ho, Wo, Do); drop padded rows/channels.
    out = out3.reshape(N, Ho_pad, Wo, Do_pad, Co_pad)[:, :Ho, :, :Do, :Co]
    return jnp.transpose(out, (0, 4, 1, 2, 3))


if __name__ == "__main__":
    key = jax.random.PRNGKey(0)
    kx, kw, kb = jax.random.split(key, 3)

    # Small shapes consistent with the module: (N, C, H, W, D), H/W/D even.
    N, C, H, W, D = 2, 4, 8, 8, 8
    x = jax.random.normal(kx, (N, C, H, W, D), dtype=jnp.float32)

    # deterministic synthetic Conv3d(C, C, 3) parameters
    fan_in = C * 3 * 3 * 3
    bound = 1.0 / math.sqrt(fan_in)
    weight = jax.random.uniform(kw, (C, C, 3, 3, 3), minval=-bound, maxval=bound,
                                dtype=jnp.float32)
    bias = jax.random.uniform(kb, (C,), minval=-bound, maxval=bound,
                              dtype=jnp.float32)

    fwd = jax.jit(downsample_forward)
    out = jax.block_until_ready(fwd(x, weight, bias))
    assert out.shape == (N, C, H // 2, W // 2, D // 2)
    assert out.dtype == x.dtype

    # Reference: f32 strided conv (NCHWD / OIHWD) + bias.
    ref = lax.conv_general_dilated(
        x, weight,
        window_strides=(2, 2, 2),
        padding=((1, 1), (1, 1), (1, 1)),
        dimension_numbers=("NCHWD", "OIHWD", "NCHWD"),
        preferred_element_type=jnp.float32,
        precision=lax.Precision.HIGHEST,
    ) + bias.reshape(1, C, 1, 1, 1)
    ref = jax.block_until_ready(ref)

    # bf16 MXU operands with f32 accumulation -> bf16-level tolerance.
    np.testing.assert_allclose(np.asarray(out), np.asarray(ref), atol=5e-2, rtol=5e-2)
    print("KERNEL_OK")
</pallas_src>

<mosaic_0001>
module attributes {stable_mosaic.version = 11 : i64} {
  func.func @kernel(%arg0: i32, %arg1: i32, %arg2: memref<1x4x5x17x32xbf16, #tpu.memory_space<vmem>>, %arg3: memref<1x1x5x17x32xbf16, #tpu.memory_space<vmem>>, %arg4: memref<8x32x128xbf16, #tpu.memory_space<vmem>>, %arg5: memref<1x128xf32, #tpu.memory_space<vmem>>, %arg6: memref<1x256x128xf32, #tpu.memory_space<vmem>>, %arg7: memref<5x5x17x32xbf16, #tpu.memory_space<vmem>>, %arg8: memref<256x128xf32, #tpu.memory_space<vmem>>) attributes {dimension_semantics = [#tpu.dimension_semantics<parallel>, #tpu.dimension_semantics<parallel>], iteration_bounds = array<i64: 2, 1>, scalar_prefetch = 0 : i64, scratch_operands = 2 : i64, tpu.core_type = #tpu.core_type<tc>, window_params = [{transform_indices = @transform_0, window_bounds = array<i64: 1, 4, 5, 17, 32>}, {transform_indices = @transform_1, window_bounds = array<i64: 1, 1, 5, 17, 32>}, {pipeline_mode = #tpu.pipeline_mode<synchronous>, transform_indices = @transform_2, window_bounds = array<i64: 8, 32, 128>}, {pipeline_mode = #tpu.pipeline_mode<synchronous>, transform_indices = @transform_3, window_bounds = array<i64: 1, 128>}, {transform_indices = @transform_4, window_bounds = array<i64: 1, 256, 128>}]} {
    %c0 = arith.constant 0 : index
    %c0_0 = arith.constant 0 : index
    %c0_1 = arith.constant 0 : index
    %c0_2 = arith.constant 0 : index
    %c0_3 = arith.constant 0 : index
    %0 = vector.load %arg2[%c0, %c0_0, %c0_1, %c0_2, %c0_3] : memref<1x4x5x17x32xbf16, #tpu.memory_space<vmem>>, vector<1x4x5x17x32xbf16>
    %1 = vector.shape_cast %0 : vector<1x4x5x17x32xbf16> to vector<4x5x17x32xbf16>
    %c0_4 = arith.constant 0 : index
    %c0_5 = arith.constant 0 : index
    %c0_6 = arith.constant 0 : index
    %c0_7 = arith.constant 0 : index
    %2 = vector.load %arg7[%c0_4, %c0_5, %c0_6, %c0_7] : memref<5x5x17x32xbf16, #tpu.memory_space<vmem>>, vector<4x5x17x32xbf16>
    tpu.vector_store %arg7[%c0_4, %c0_5, %c0_6, %c0_7], %1 {strides = array<i32>} : memref<5x5x17x32xbf16, #tpu.memory_space<vmem>>, vector<4x5x17x32xbf16>,
    %c0_8 = arith.constant 0 : index
    %c0_9 = arith.constant 0 : index
    %c0_10 = arith.constant 0 : index
    %c0_11 = arith.constant 0 : index
    %c0_12 = arith.constant 0 : index
    %3 = vector.load %arg3[%c0_8, %c0_9, %c0_10, %c0_11, %c0_12] : memref<1x1x5x17x32xbf16, #tpu.memory_space<vmem>>, vector<1x1x5x17x32xbf16>
    %4 = vector.shape_cast %3 : vector<1x1x5x17x32xbf16> to vector<1x5x17x32xbf16>
    %c4 = arith.constant 4 : index
    %c0_13 = arith.constant 0 : index
    %c0_14 = arith.constant 0 : index
    %c0_15 = arith.constant 0 : index
    %5 = vector.load %arg7[%c4, %c0_13, %c0_14, %c0_15] : memref<5x5x17x32xbf16, #tpu.memory_space<vmem>>, vector<1x5x17x32xbf16>
    tpu.vector_store %arg7[%c4, %c0_13, %c0_14, %c0_15], %4 {strides = array<i32>} : memref<5x5x17x32xbf16, #tpu.memory_space<vmem>>, vector<1x5x17x32xbf16>,
    %cst = arith.constant 0.000000e+00 : f32
    %6 = vector.broadcast %cst : f32 to vector<256x128xf32>
    %c0_16 = arith.constant 0 : index
    %c0_17 = arith.constant 0 : index
    %7 = vector.load %arg8[%c0_16, %c0_17] : memref<256x128xf32, #tpu.memory_space<vmem>>, vector<256x128xf32>
    tpu.vector_store %arg8[%c0_16, %c0_17], %6 {strides = array<i32>} : memref<256x128xf32, #tpu.memory_space<vmem>>, vector<256x128xf32>,
    %c0_18 = arith.constant 0 : index
    %c0_19 = arith.constant 0 : index
    %c0_20 = arith.constant 0 : index
    %c0_21 = arith.constant 0 : index
    %8 = vector.load %arg7[%c0_18, %c0_19, %c0_20, %c0_21] : memref<5x5x17x32xbf16, #tpu.memory_space<vmem>>, vector<4x4x16x32xbf16>
    %c0_22 = arith.constant 0 : index
    %c0_23 = arith.constant 0 : index
    %9 = vector.load %arg8[%c0_22, %c0_23] : memref<256x128xf32, #tpu.memory_space<vmem>>, vector<256x128xf32>
    %10 = vector.shape_cast %8 : vector<4x4x16x32xbf16> to vector<256x32xbf16>
    %c0_24 = arith.constant 0 : index
    %c0_25 = arith.constant 0 : index
    %c0_26 = arith.constant 0 : index
    %11 = vector.load %arg4[%c0_24, %c0_25, %c0_26] : memref<8x32x128xbf16, #tpu.memory_space<vmem>>, vector<1x32x128xbf16>
    %12 = vector.shape_cast %11 : vector<1x32x128xbf16> to vector<32x128xbf16>
    %cst_27 = arith.constant dense<0.000000e+00> : vector<256x128xf32>
    %13 = tpu.matmul %10, %12, %cst_27 {dimension_numbers = #tpu.dot_dimension_numbers<[1], [0], [0], [1], [0, 0, 1, 1], [], []>} : vector<256x32xbf16>, vector<32x128xbf16>, vector<256x128xf32> -> vector<256x128xf32>
    %14 = arith.addf %9, %13 : vector<256x128xf32>
    %c0_28 = arith.constant 0 : index
    %c0_29 = arith.constant 0 : index
    %15 = vector.load %arg8[%c0_28, %c0_29] : memref<256x128xf32, #tpu.memory_space<vmem>>, vector<256x128xf32>
    tpu.vector_store %arg8[%c0_28, %c0_29], %14 {strides = array<i32>} : memref<256x128xf32, #tpu.memory_space<vmem>>, vector<256x128xf32>,
    %c0_30 = arith.constant 0 : index
    %c0_31 = arith.constant 0 : index
    %c1 = arith.constant 1 : index
    %c0_32 = arith.constant 0 : index
    %16 = vector.load %arg7[%c0_30, %c0_31, %c1, %c0_32] : memref<5x5x17x32xbf16, #tpu.memory_space<vmem>>, vector<4x4x16x32xbf16>
    %c0_33 = arith.constant 0 : index
    %c0_34 = arith.constant 0 : index
    %17 = vector.load %arg8[%c0_33, %c0_34] : memref<256x128xf32, #tpu.memory_space<vmem>>, vector<256x128xf32>
    %18 = vector.shape_cast %16 : vector<4x4x16x32xbf16> to vector<256x32xbf16>
    %c1_35 = arith.constant 1 : index
    %c0_36 = arith.constant 0 : index
    %c0_37 = arith.constant 0 : index
    %19 = vector.load %arg4[%c1_35, %c0_36, %c0_37] : memref<8x32x128xbf16, #tpu.memory_space<vmem>>, vector<1x32x128xbf16>
    %20 = vector.shape_cast %19 : vector<1x32x128xbf16> to vector<32x128xbf16>
    %cst_38 = arith.constant dense<0.000000e+00> : vector<256x128xf32>
    %21 = tpu.matmul %18, %20, %cst_38 {dimension_numbers = #tpu.dot_dimension_numbers<[1], [0], [0], [1], [0, 0, 1, 1], [], []>} : vector<256x32xbf16>, vector<32x128xbf16>, vector<256x128xf32> -> vector<256x128xf32>
    %22 = arith.addf %17, %21 : vector<256x128xf32>
    %c0_39 = arith.constant 0 : index
    %c0_40 = arith.constant 0 : index
    %23 = vector.load %arg8[%c0_39, %c0_40] : memref<256x128xf32, #tpu.memory_space<vmem>>, vector<256x128xf32>
    tpu.vector_store %arg8[%c0_39, %c0_40], %22 {strides = array<i32>} : memref<256x128xf32, #tpu.memory_space<vmem>>, vector<256x128xf32>,
    %c0_41 = arith.constant 0 : index
    %c1_42 = arith.constant 1 : index
    %c0_43 = arith.constant 0 : index
    %c0_44 = arith.constant 0 : index
    %24 = vector.load %arg7[%c0_41, %c1_42, %c0_43, %c0_44] : memref<5x5x17x32xbf16, #tpu.memory_space<vmem>>, vector<4x4x16x32xbf16>
    %c0_45 = arith.constant 0 : index
    %c0_46 = arith.constant 0 : index
    %25 = vector.load %arg8[%c0_45, %c0_46] : memref<256x128xf32, #tpu.memory_space<vmem>>, vector<256x128xf32>
    %26 = vector.shape_cast %24 : vector<4x4x16x32xbf16> to vector<256x32xbf16>
    %c2 = arith.constant 2 : index
    %c0_47 = arith.constant 0 : index
    %c0_48 = arith.constant 0 : index
    %27 = vector.load %arg4[%c2, %c0_47, %c0_48] : memref<8x32x128xbf16, #tpu.memory_space<vmem>>, vector<1x32x128xbf16>
    %28 = vector.shape_cast %27 : vector<1x32x128xbf16> to vector<32x128xbf16>
    %cst_49 = arith.constant dense<0.000000e+00> : vector<256x128xf32>
    %29 = tpu.matmul %26, %28, %cst_49 {dimension_numbers = #tpu.dot_dimension_numbers<[1], [0], [0], [1], [0, 0, 1, 1], [], []>} : vector<256x32xbf16>, vector<32x128xbf16>, vector<256x128xf32> -> vector<256x128xf32>
    %30 = arith.addf %25, %29 : vector<256x128xf32>
    %c0_50 = arith.constant 0 : index
    %c0_51 = arith.constant 0 : index
    %31 = vector.load %arg8[%c0_50, %c0_51] : memref<256x128xf32, #tpu.memory_space<vmem>>, vector<256x128xf32>
    tpu.vector_store %arg8[%c0_50, %c0_51], %30 {strides = array<i32>} : memref<256x128xf32, #tpu.memory_space<vmem>>, vector<256x128xf32>,
    %c0_52 = arith.constant 0 : index
    %c1_53 = arith.constant 1 : index
    %c1_54 = arith.constant 1 : index
    %c0_55 = arith.constant 0 : index
    %32 = vector.load %arg7[%c0_52, %c1_53, %c1_54, %c0_55] : memref<5x5x17x32xbf16, #tpu.memory_space<vmem>>, vector<4x4x16x32xbf16>
    %c0_56 = arith.constant 0 : index
    %c0_57 = arith.constant 0 : index
    %33 = vector.load %arg8[%c0_56, %c0_57] : memref<256x128xf32, #tpu.memory_space<vmem>>, vector<256x128xf32>
    %34 = vector.shape_cast %32 : vector<4x4x16x32xbf16> to vector<256x32xbf16>
    %c3 = arith.constant 3 : index
    %c0_58 = arith.constant 0 : index
    %c0_59 = arith.constant 0 : index
    %35 = vector.load %arg4[%c3, %c0_58, %c0_59] : memref<8x32x128xbf16, #tpu.memory_space<vmem>>, vector<1x32x128xbf16>
    %36 = vector.shape_cast %35 : vector<1x32x128xbf16> to vector<32x128xbf16>
    %cst_60 = arith.constant dense<0.000000e+00> : vector<256x128xf32>
    %37 = tpu.matmul %34, %36, %cst_60 {dimension_numbers = #tpu.dot_dimension_numbers<[1], [0], [0], [1], [0, 0, 1, 1], [], []>} : vector<256x32xbf16>, vector<32x128xbf16>, vector<256x128xf32> -> vector<256x128xf32>
    %38 = arith.addf %33, %37 : vector<256x128xf32>
    %c0_61 = arith.constant 0 : index
    %c0_62 = arith.constant 0 : index
    %39 = vector.load %arg8[%c0_61, %c0_62] : memref<256x128xf32, #tpu.memory_space<vmem>>, vector<256x128xf32>
    tpu.vector_store %arg8[%c0_61, %c0_62], %38 {strides = array<i32>} : memref<256x128xf32, #tpu.memory_space<vmem>>, vector<256x128xf32>,
    %c1_63 = arith.constant 1 : index
    %c0_64 = arith.constant 0 : index
    %c0_65 = arith.constant 0 : index
    %c0_66 = arith.constant 0 : index
    %40 = vector.load %arg7[%c1_63, %c0_64, %c0_65, %c0_66] : memref<5x5x17x32xbf16, #tpu.memory_space<vmem>>, vector<4x4x16x32xbf16>
    %c0_67 = arith.constant 0 : index
    %c0_68 = arith.constant 0 : index
    %41 = vector.load %arg8[%c0_67, %c0_68] : memref<256x128xf32, #tpu.memory_space<vmem>>, vector<256x128xf32>
    %42 = vector.shape_cast %40 : vector<4x4x16x32xbf16> to vector<256x32xbf16>
    %c4_69 = arith.constant 4 : index
    %c0_70 = arith.constant 0 : index
    %c0_71 = arith.constant 0 : index
    %43 = vector.load %arg4[%c4_69, %c0_70, %c0_71] : memref<8x32x128xbf16, #tpu.memory_space<vmem>>, vector<1x32x128xbf16>
    %44 = vector.shape_cast %43 : vector<1x32x128xbf16> to vector<32x128xbf16>
    %cst_72 = arith.constant dense<0.000000e+00> : vector<256x128xf32>
    %45 = tpu.matmul %42, %44, %cst_72 {dimension_numbers = #tpu.dot_dimension_numbers<[1], [0], [0], [1], [0, 0, 1, 1], [], []>} : vector<256x32xbf16>, vector<32x128xbf16>, vector<256x128xf32> -> vector<256x128xf32>
    %46 = arith.addf %41, %45 : vector<256x128xf32>
    %c0_73 = arith.constant 0 : index
    %c0_74 = arith.constant 0 : index
    %47 = vector.load %arg8[%c0_73, %c0_74] : memref<256x128xf32, #tpu.memory_space<vmem>>, vector<256x128xf32>
    tpu.vector_store %arg8[%c0_73, %c0_74], %46 {strides = array<i32>} : memref<256x128xf32, #tpu.memory_space<vmem>>, vector<256x128xf32>,
    %c1_75 = arith.constant 1 : index
    %c0_76 = arith.constant 0 : index
    %c1_77 = arith.constant 1 : index
    %c0_78 = arith.constant 0 : index
    %48 = vector.load %arg7[%c1_75, %c0_76, %c1_77, %c0_78] : memref<5x5x17x32xbf16, #tpu.memory_space<vmem>>, vector<4x4x16x32xbf16>
    %c0_79 = arith.constant 0 : index
    %c0_80 = arith.constant 0 : index
    %49 = vector.load %arg8[%c0_79, %c0_80] : memref<256x128xf32, #tpu.memory_space<vmem>>, vector<256x128xf32>
    %50 = vector.shape_cast %48 : vector<4x4x16x32xbf16> to vector<256x32xbf16>
    %c5 = arith.constant 5 : index
    %c0_81 = arith.constant 0 : index
    %c0_82 = arith.constant 0 : index
    %51 = vector.load %arg4[%c5, %c0_81, %c0_82] : memref<8x32x128xbf16, #tpu.memory_space<vmem>>, vector<1x32x128xbf16>
    %52 = vector.shape_cast %51 : vector<1x32x128xbf16> to vector<32x128xbf16>
    %cst_83 = arith.constant dense<0.000000e+00> : vector<256x128xf32>
    %53 = tpu.matmul %50, %52, %cst_83 {dimension_numbers = #tpu.dot_dimension_numbers<[1], [0], [0], [1], [0, 0, 1, 1], [], []>} : vector<256x32xbf16>, vector<32x128xbf16>, vector<256x128xf32> -> vector<256x128xf32>
    %54 = arith.addf %49, %53 : vector<256x128xf32>
    %c0_84 = arith.constant 0 : index
    %c0_85 = arith.constant 0 : index
    %55 = vector.load %arg8[%c0_84, %c0_85] : memref<256x128xf32, #tpu.memory_space<vmem>>, vector<256x128xf32>
    tpu.vector_store %arg8[%c0_84, %c0_85], %54 {strides = array<i32>} : memref<256x128xf32, #tpu.memory_space<vmem>>, vector<256x128xf32>,
    %c1_86 = arith.constant 1 : index
    %c1_87 = arith.constant 1 : index
    %c0_88 = arith.constant 0 : index
    %c0_89 = arith.constant 0 : index
    %56 = vector.load %arg7[%c1_86, %c1_87, %c0_88, %c0_89] : memref<5x5x17x32xbf16, #tpu.memory_space<vmem>>, vector<4x4x16x32xbf16>
    %c0_90 = arith.constant 0 : index
    %c0_91 = arith.constant 0 : index
    %57 = vector.load %arg8[%c0_90, %c0_91] : memref<256x128xf32, #tpu.memory_space<vmem>>, vector<256x128xf32>
    %58 = vector.shape_cast %56 : vector<4x4x16x32xbf16> to vector<256x32xbf16>
    %c6 = arith.constant 6 : index
    %c0_92 = arith.constant 0 : index
    %c0_93 = arith.constant 0 : index
    %59 = vector.load %arg4[%c6, %c0_92, %c0_93] : memref<8x32x128xbf16, #tpu.memory_space<vmem>>, vector<1x32x128xbf16>
    %60 = vector.shape_cast %59 : vector<1x32x128xbf16> to vector<32x128xbf16>
    %cst_94 = arith.constant dense<0.000000e+00> : vector<256x128xf32>
    %61 = tpu.matmul %58, %60, %cst_94 {dimension_numbers = #tpu.dot_dimension_numbers<[1], [0], [0], [1], [0, 0, 1, 1], [], []>} : vector<256x32xbf16>, vector<32x128xbf16>, vector<256x128xf32> -> vector<256x128xf32>
    %62 = arith.addf %57, %61 : vector<256x128xf32>
    %c0_95 = arith.constant 0 : index
    %c0_96 = arith.constant 0 : index
    %63 = vector.load %arg8[%c0_95, %c0_96] : memref<256x128xf32, #tpu.memory_space<vmem>>, vector<256x128xf32>
    tpu.vector_store %arg8[%c0_95, %c0_96], %62 {strides = array<i32>} : memref<256x128xf32, #tpu.memory_space<vmem>>, vector<256x128xf32>,
    %c1_97 = arith.constant 1 : index
    %c1_98 = arith.constant 1 : index
    %c1_99 = arith.constant 1 : index
    %c0_100 = arith.constant 0 : index
    %64 = vector.load %arg7[%c1_97, %c1_98, %c1_99, %c0_100] : memref<5x5x17x32xbf16, #tpu.memory_space<vmem>>, vector<4x4x16x32xbf16>
    %c0_101 = arith.constant 0 : index
    %c0_102 = arith.constant 0 : index
    %65 = vector.load %arg8[%c0_101, %c0_102] : memref<256x128xf32, #tpu.memory_space<vmem>>, vector<256x128xf32>
    %66 = vector.shape_cast %64 : vector<4x4x16x32xbf16> to vector<256x32xbf16>
    %c7 = arith.constant 7 : index
    %c0_103 = arith.constant 0 : index
    %c0_104 = arith.constant 0 : index
    %67 = vector.load %arg4[%c7, %c0_103, %c0_104] : memref<8x32x128xbf16, #tpu.memory_space<vmem>>, vector<1x32x128xbf16>
    %68 = vector.shape_cast %67 : vector<1x32x128xbf16> to vector<32x128xbf16>
    %cst_105 = arith.constant dense<0.000000e+00> : vector<256x128xf32>
    %69 = tpu.matmul %66, %68, %cst_105 {dimension_numbers = #tpu.dot_dimension_numbers<[1], [0], [0], [1], [0, 0, 1, 1], [], []>} : vector<256x32xbf16>, vector<32x128xbf16>, vector<256x128xf32> -> vector<256x128xf32>
    %70 = arith.addf %65, %69 : vector<256x128xf32>
    %c0_106 = arith.constant 0 : index
    %c0_107 = arith.constant 0 : index
    %71 = vector.load %arg8[%c0_106, %c0_107] : memref<256x128xf32, #tpu.memory_space<vmem>>, vector<256x128xf32>
    tpu.vector_store %arg8[%c0_106, %c0_107], %70 {strides = array<i32>} : memref<256x128xf32, #tpu.memory_space<vmem>>, vector<256x128xf32>,
    %c0_108 = arith.constant 0 : index
    %c0_109 = arith.constant 0 : index
    %72 = vector.load %arg8[%c0_108, %c0_109] : memref<256x128xf32, #tpu.memory_space<vmem>>, vector<256x128xf32>
    %c0_110 = arith.constant 0 : index
    %c0_111 = arith.constant 0 : index
    %73 = vector.load %arg5[%c0_110, %c0_111] : memref<1x128xf32, #tpu.memory_space<vmem>>, vector<1x128xf32>
    %74 = vector.broadcast %73 : vector<1x128xf32> to vector<256x128xf32>
    %75 = arith.addf %72, %74 : vector<256x128xf32>
    %c0_112 = arith.constant 0 : index
    %c0_113 = arith.constant 0 : index
    %c0_114 = arith.constant 0 : index
    %76 = vector.load %arg6[%c0_112, %c0_113, %c0_114] : memref<1x256x128xf32, #tpu.memory_space<vmem>>, vector<1x256x128xf32>
    %77 = vector.shape_cast %76 : vector<1x256x128xf32> to vector<256x128xf32>
    %78 = vector.shape_cast %75 : vector<256x128xf32> to vector<1x256x128xf32>
    tpu.vector_store %arg6[%c0_112, %c0_113, %c0_114], %78 {strides = array<i32>} : memref<1x256x128xf32, #tpu.memory_space<vmem>>, vector<1x256x128xf32>,
    return
  }
  func.func @transform_0(%arg0: i32, %arg1: i32) -> (i32, i32, i32, i32, i32) {
    %c0_i32 = arith.constant 0 : i32
    %c0_i32_0 = arith.constant 0 : i32
    %c0_i32_1 = arith.constant 0 : i32
    %c0_i32_2 = arith.constant 0 : i32
    return %arg0, %arg1, %c0_i32, %c0_i32_0, %c0_i32_1 : i32, i32, i32, i32, i32
  }
  func.func @transform_1(%arg0: i32, %arg1: i32) -> (i32, i32, i32, i32, i32) {
    %c1_i32 = arith.constant 1 : i32
    %0 = arith.addi %arg1, %c1_i32 : i32
    %c4_i32 = arith.constant 4 : i32
    %1 = arith.muli %0, %c4_i32 : i32
    %c0_i32 = arith.constant 0 : i32
    %c0_i32_0 = arith.constant 0 : i32
    %c0_i32_1 = arith.constant 0 : i32
    %c0_i32_2 = arith.constant 0 : i32
    return %arg0, %1, %c0_i32, %c0_i32_0, %c0_i32_1 : i32, i32, i32, i32, i32
  }
  func.func @transform_2(%arg0: i32, %arg1: i32) -> (i32, i32, i32) {
    %c0_i32 = arith.constant 0 : i32
    %c0_i32_0 = arith.constant 0 : i32
    %c0_i32_1 = arith.constant 0 : i32
    %c0_i32_2 = arith.constant 0 : i32
    return %c0_i32, %c0_i32_0, %c0_i32_1 : i32, i32, i32
  }
  func.func @transform_3(%arg0: i32, %arg1: i32) -> (i32, i32) {
    %c0_i32 = arith.constant 0 : i32
    %c0_i32_0 = arith.constant 0 : i32
    %c0_i32_1 = arith.constant 0 : i32
    return %c0_i32, %c0_i32_0 : i32, i32
  }
  func.func @transform_4(%arg0: i32, %arg1: i32) -> (i32, i32, i32) {
    %c0_i32 = arith.constant 0 : i32
    %c0_i32_0 = arith.constant 0 : i32
    return %arg0, %arg1, %c0_i32 : i32, i32, i32
  }
}

</mosaic_0001>

<bundles_post_ra>
// kernel: downsample_forward.1
= control target key start
LH: loop header
LB: loop body
LE: loop exit
PB: predicated region body
PF: predicated region fallthrough
CT: control target
= control target key end

     0   :  { %s5789_s15 = smov 0   ;;  %s5791_s16 = smov 0   ;;  %s6791_s0 = inlined_call_operand.vmem [shape: bf16[2,5,5,17,32], index: 0, kind: input, shape index: {}, may-alias: {0,1}]   ;;  %s6792_s1 = inlined_call_operand.vmem [shape: bf16[2,5,5,17,32], index: 1, kind: input, shape index: {}, may-alias: {0,1}]   ;;  %s6793_s2 = inlined_call_operand.vmem [shape: bf16[8,32,128], index: 2, kind: input, shape index: {}]   ;;  %s6794_s3 = inlined_call_operand.vmem [shape: f32[1,128], index: 3, kind: input, shape index: {}]   ;;  %s6795_s4 = inlined_call_operand.vmem [shape: f32[2,256,128], index: 4, kind: output, shape index: {}]  }
   0x1   :  { %s5793_s17 = smov 0  }
   0x2 LB: > { %s26_s18 = sadd.s32 1, %s5758_s16  ;;  %p5145_p0 = scmp.ge.s32.totalorder %s5762_s17, 1  ;;  %s5762_s17 = sphi %s5793_s17, %s14_s17   ;;  %s5758_s16 = sphi %s5791_s16, %s6807_s16   ;;  %s5754_s15 = sphi %s5789_s15, %s6806_s15  }
   0x3   : > { %p28_p1 = scmp.ge.s32.totalorder %s26_s18, 2  ;;  %p220_p2 = scmp.lt.s32.totalorder %s5762_s17, 3 }
   0x5   : > { %s6809_s18 = smov (%p28_p1, %s26_s18), 0  ;;  %p221_p3 = pnand %p5145_p0, %p220_p2 }
   0x7   : > { %224 = sbr.rel (%p221_p3) target bundleno = 686 (0x2ae), region = 36 }
   0xc   : > { %v5648_v0 = vld [vmem:[%s6793_s2 + $0x8] sm:$0xff]  ;;  %p279_p4 = scmp.lt.s32.totalorder %s5754_s15, 1  ;;  %v5650_v2 = vld [vmem:[%s6793_s2 + $0x18] sm:$0xff]  ;;  %v5647_v4 = vld [vmem:[%s6793_s2] sm:$0xff]  ;;  %vm382_vm0 = vcmask 253952   ;;  %vm379_vm2 = vcmask 257024  }
   0xd   : > { %v5668_v1 = vld [vmem:[%s6793_s2 + $0x28] sm:$0xff]  ;;  %v5670_v3 = vld [vmem:[%s6793_s2 + $0x38] sm:$0xff]  ;;  %771 = vmatpush.bf16.msra.mxu0 %v5648_v0  ;;  %v5667_v5 = vld [vmem:[%s6793_s2 + $0x20] sm:$0xff]  ;;  %1504 = vmatpush.bf16.msra.mxu1 %v5650_v2  ;;  %vm383_vm1 = vsmask.f32 256  ;;  %vm716_vm4 = vcmask 261120  }
   0xe   : > { %1867 = vmatpush.bf16.msra.mxu2 %v5668_v1  ;;  %s6811_s15 = smov (!%p279_p4, %s5754_s15), 1  ;;  %2597 = vmatpush.bf16.msra.mxu3 %v5670_v3  ;;  %v5649_v6 = vld [vmem:[%s6793_s2 + $0x10] sm:$0xff]  ;;  %v5708_v8 = vld [vmem:[%s6793_s2 + $0x68] sm:$0xff]  ;;  %v5710_v10 = vld [vmem:[%s6793_s2 + $0x78] sm:$0xff]  ;;  %vm998_vm5 = vsmask.f32 3328 }
   0xf   : > { %v5669_v7 = vld [vmem:[%s6793_s2 + $0x30] sm:$0xff]  ;;  %s5711_s9 = smul.u32 300, %s6811_s15  ;;  %v5688_v9 = vld [vmem:[%s6793_s2 + $0x48] sm:$0xff]  ;;  %v5690_v11 = vld [vmem:[%s6793_s2 + $0x58] sm:$0xff]  ;;  %vm999_vm6 = vsmask.f32 7440 }
  0x10   : > { %vm5853_vm3 = vmand %vm382_vm0, %vm383_vm1  ;;  %v385_v13 = vld [vmem:[#allocation2 + $0x8] sm:$0x1]  ;;  %v390_v14 = vld [vmem:[#allocation2 + $0x14] sm:$0x1]  ;;  %s5630_s7 = sshll.u32 %s6811_s15, 8 }
  0x11   : > { %772 = vmatpush.bf16.msra.mxu0 %v5647_v4  ;;  %s5851_s24 = scalar_lea.vmem %s6791_s0, %s5711_s9  ;;  %1505 = vmatpush.bf16.msra.mxu1 %v5649_v6  ;;  %v395_v25 = vld [vmem:[#allocation2 + $0x20] sm:$0x1]  ;;  %v5879_v36 = vld [vmem:[#allocation2 + $0x2c] sm:$0x1]  ;;  %vm5888_vm7 = vmor %vm998_vm5, %vm999_vm6  ;;  %s5629_s11 = sadd.s32 240, %s5711_s9 }
  0x12   : > { %1868 = vmatpush.bf16.msra.mxu2 %v5667_v5  ;;  %v319_v15 = vld [vmem:[%s5851_s24] sm:$0xf]  ;;  %v320_v16 = vld [vmem:[%s5851_s24 + $0x4] sm:$0xf]  ;;  %v322_v17 = vld [vmem:[%s5851_s24 + $0xc] sm:$0xf]  ;;  %2598 = vmatpush.bf16.msra.mxu3 %v5669_v7  ;;  %s6499_s14 = scalar_lea.vmem %s6795_s4, %s5630_s7  ;;  %s6512_s19 = scalar_lea.vmem %s6792_s1, %s5629_s11 }
  0x13   : > { %380 = vst.msk [vmem:[#allocation2] sm:$0xf] %vm379_vm2, %v319_v15  ;;  %v323_v18 = vld [vmem:[%s5851_s24 + $0x10] sm:$0xf]  ;;  %v321_v19 = vld [vmem:[%s5851_s24 + $0x8] sm:$0x1] }
  0x14   : > { %381 = vst.msk [vmem:[#allocation2 + $0x4] sm:$0xf] %vm379_vm2, %v320_v16  ;;  %v386_v20 = vsel %vm5853_vm3, %v321_v19, %v385_v13  ;;  %v324_v21 = vld [vmem:[%s5851_s24 + $0x14] sm:$0x1]  ;;  %v325_v23 = vld [vmem:[%s5851_s24 + $0x18] sm:$0xf] }
  0x15   : > { %2960 = vmatpush.bf16.msrb.mxu0 %v5688_v9  ;;  %3690 = vmatpush.bf16.msrb.mxu1 %v5690_v11  ;;  %388 = vst.msk [vmem:[#allocation2 + $0xc] sm:$0xf] %vm379_vm2, %v322_v17  ;;  %v391_v22 = vsel %vm5853_vm3, %v324_v21, %v390_v14  ;;  %v326_v24 = vld [vmem:[%s5851_s24 + $0x1c] sm:$0xf]  ;;  %v327_v27 = vld [vmem:[%s5851_s24 + $0x20] sm:$0x1] }
  0x16   : > { %4053 = vmatpush.bf16.msrb.mxu2 %v5708_v8  ;;  %4783 = vmatpush.bf16.msrb.mxu3 %v5710_v10  ;;  %389 = vst.msk [vmem:[#allocation2 + $0x10] sm:$0xf] %vm379_vm2, %v323_v18  ;;  %v5877_v35 = vld [vmem:[%s5851_s24 + $0x2c] sm:$0x1]  ;;  %v396_v43 = vsel %vm5853_vm3, %v327_v27, %v395_v25  ;;  %v328_v54 = vld [vmem:[%s5851_s24 + $0x24] sm:$0xf] }
  0x17   : > { %387 = vst [vmem:[#allocation2 + $0x8] sm:$0x1] %v386_v20  ;;  %v329_v0 = vld [vmem:[%s5851_s24 + $0x28] sm:$0xf]  ;;  %v401_v1 = vsel %vm5853_vm3, %v5877_v35, %v5879_v36 }
  0x18   : > { %392 = vst [vmem:[#allocation2 + $0x14] sm:$0x1] %v391_v22 }
  0x19   : > { %393 = vst.msk [vmem:[#allocation2 + $0x18] sm:$0xf] %vm379_vm2, %v325_v23 }
  0x1a   : > { %v918_v26 = vld [vmem:[#allocation2] sm:$0xf]  ;;  %394 = vst.msk [vmem:[#allocation2 + $0x1c] sm:$0xf] %vm379_vm2, %v326_v24 }
  0x1b   : > { %v5631_v28 = vld [vmem:[#allocation2] sm:$0xff]  ;;  %v1002_v30 = vshrl.u32 %v918_v26, 16  ;;  %v1005_v31 = vshll.u32 %v918_v26, 16  ;;  %397 = vst [vmem:[#allocation2 + $0x20] sm:$0x1] %v396_v43 }
  0x1c   : > { %v919_v29 = vld [vmem:[#allocation2 + $0x4] sm:$0xf]  ;;  %v2014_v34 = vld [vmem:[#allocation2 + $0xc] sm:$0xf]  ;;  %5222 = vmatmul.msk.bf16.vlgmr.msra.gmra.mxu0 %vm716_vm4, %v5631_v28  ;;  %398 = vst.msk [vmem:[#allocation2 + $0x24] sm:$0xf] %vm379_vm2, %v328_v54 }
  0x1d   : > { %v1011_v32 = vshll.u32 %v919_v29, 16  ;;  %v1015_v33 = vshrl.u32 %v919_v29, 16  ;;  %v5651_v37 = vld [vmem:[#allocation2 + $0xc] sm:$0xff]  ;;  %v1004_v38 = vrot.slane %v1002_v30, 4  ;;  %v1007_v39 = vrot.slane %v1005_v31, 5 }
  0x1e   : > { %v2015_v40 = vld [vmem:[#allocation2 + $0x10] sm:$0xf]  ;;  %v2095_v41 = vshrl.u32 %v2014_v34, 16  ;;  %v921_v42 = vld [vmem:[#allocation2 + $0xc] sm:$0xf]  ;;  %v2098_v47 = vshll.u32 %v2014_v34, 16  ;;  %5342 = vmatmul.msk.bf16.vlgmr.msra.gmra.mxu2 %vm716_vm4, %v5651_v37 }
  0x1f   : > { %v920_v44 = vld [vmem:[#allocation2 + $0x8] sm:$0x1]  ;;  %v1013_v45 = vrot.slane %v1011_v32, 5  ;;  %v1017_v46 = vrot.slane %v1015_v33, 4  ;;  %v2104_v48 = vshll.u32 %v2015_v40, 16  ;;  %v1008_v49 = vor.u32 %v1007_v39, %v1004_v38  ;;  %v5632_v29 = vld [vmem:[#allocation2 + $0xc] sm:$0xff] }
  0x20   : > { %v1021_v50 = vshll.u32 %v920_v44, 16  ;;  %v2016_v51 = vld [vmem:[#allocation2 + $0x14] sm:$0x1]  ;;  %v2097_v52 = vrot.slane %v2095_v41, 4  ;;  %v2108_v53 = vshrl.u32 %v2015_v40, 16  ;;  %v2100_v57 = vrot.slane %v2098_v47, 5 }
  0x21   : > { %v1018_v56 = vor.u32 %v1017_v46, %v1013_v45  ;;  %v2106_v58 = vrot.slane %v2104_v48, 5  ;;  %v2114_v59 = vshll.u32 %v2016_v51, 16  ;;  %v922_v60 = vld [vmem:[#allocation2 + $0x10] sm:$0xf]  ;;  %v1009_v61 = vrot.slane %v1008_v49, 4  ;;  %v5652_v47 = vld [vmem:[#allocation2 + $0x18] sm:$0xff] }
  0x22   : > { %v1023_v62 = vrot.slane %v1021_v50, 5  ;;  %v2110_v63 = vrot.slane %v2108_v53, 4  ;;  %v2101_v3 = vor.u32 %v2100_v57, %v2097_v52  ;;  %v1026_v5 = vshrl.u32 %v921_v42, 16  ;;  %v923_v8 = vld [vmem:[#allocation2 + $0x14] sm:$0x1] }
  0x23   : > { %v1019_v2 = vrot.slane %v1018_v56, 4  ;;  %v2116_v4 = vrot.slane %v2114_v59, 5  ;;  %v1014_v6 = vsel %vm5888_vm7, %v1009_v61, %v1013_v45  ;;  %v1029_v9 = vshll.u32 %v921_v42, 16  ;;  %v2017_v11 = vld [vmem:[#allocation2 + $0x18] sm:$0xf] }
  0x24   : > { %v2111_v7 = vor.u32 %v2110_v63, %v2106_v58  ;;  %v1035_v10 = vshll.u32 %v922_v60, 16  ;;  %v1390_v14 = vunpack.c.l.b16 %v1014_v6  ;;  %v2102_v15 = vrot.slane %v2101_v3, 4  ;;  %399 = vst.msk [vmem:[#allocation2 + $0x28] sm:$0xf] %vm379_vm2, %v329_v0  ;;  %v2018_v24 = vld [vmem:[#allocation2 + $0x1c] sm:$0xf] }
  0x25   : > { %v1024_v13 = vsel %vm5888_vm7, %v1019_v2, %v1023_v62  ;;  %v1028_v16 = vrot.slane %v1026_v5, 4  ;;  %v1031_v19 = vrot.slane %v1029_v9, 5  ;;  %v1039_v22 = vshrl.u32 %v922_v60, 16  ;;  %402 = vst [vmem:[#allocation2 + $0x2c] sm:$0x1] %v401_v1 }
  0x26   : > { %v1391_v17 = vunpack.c.l.b16 %v1024_v13  ;;  %v2112_v18 = vrot.slane %v2111_v7, 4  ;;  %v1037_v20 = vrot.slane %v1035_v10, 5  ;;  %v2107_v21 = vsel %vm5888_vm7, %v2102_v15, %v2106_v58  ;;  %v331_v31 = vld [vmem:[%s5851_s24 + $0x30] sm:$0xf]  ;;  %v332_v32 = vld [vmem:[%s5851_s24 + $0x34] sm:$0xf] }
  0x27   : > { %v1045_v23 = vshll.u32 %v923_v8, 16  ;;  %v2119_v25 = vshrl.u32 %v2017_v11, 16  ;;  %v2483_v28 = vunpack.c.l.b16 %v2107_v21  ;;  %v1032_v30 = vor.u32 %v1031_v19, %v1028_v16  ;;  %v924_v36 = vld [vmem:[#allocation2 + $0x18] sm:$0xf]  ;;  %403 = vst.msk [vmem:[#allocation2 + $0x30] sm:$0xf] %vm379_vm2, %v331_v31 }
  0x28   : > { %v1422_v26 = vpack.c.b16 %v1391_v17, %v1390_v14  ;;  %v2117_v27 = vsel %vm5888_vm7, %v2112_v18, %v2116_v4  ;;  %v1041_v34 = vrot.slane %v1039_v22, 4  ;;  %v2019_v37 = vld [vmem:[#allocation2 + $0x20] sm:$0x1]  ;;  %v2122_v39 = vshll.u32 %v2017_v11, 16  ;;  %v925_v46 = vld [vmem:[#allocation2 + $0x1c] sm:$0xf] }
  0x29   : > { %v2484_v33 = vunpack.c.l.b16 %v2117_v27  ;;  %v1047_v35 = vrot.slane %v1045_v23, 5  ;;  %v2121_v38 = vrot.slane %v2119_v25, 4  ;;  %v2128_v40 = vshll.u32 %v2018_v24, 16  ;;  %404 = vst.msk [vmem:[#allocation2 + $0x34] sm:$0xf] %vm379_vm2, %v332_v32 }
  0x2a   : > { %5250 = vmatmul.msk.bf16.vlgmr.msra.gmra.mxu1 %vm716_vm4, %v1422_v26  ;;  %v2132_v41 = vshrl.u32 %v2018_v24, 16  ;;  %v1033_v43 = vrot.slane %v1032_v30, 4  ;;  %v1042_v44 = vor.u32 %v1041_v34, %v1037_v20  ;;  %v2138_v45 = vshll.u32 %v2019_v37, 16  ;;  %v2020_v54 = vld [vmem:[#allocation2 + $0x24] sm:$0xf]  ;;  %v5633_v37 = vld [vmem:[#allocation2 + $0x18] sm:$0xff] }
  0x2b   : > { %v2515_v42 = vpack.c.b16 %v2484_v33, %v2483_v28  ;;  %v2124_v48 = vrot.slane %v2122_v39, 5  ;;  %v2130_v49 = vrot.slane %v2128_v40, 5  ;;  %v1050_v53 = vshrl.u32 %v924_v36, 16  ;;  %v926_v1 = vld [vmem:[#allocation2 + $0x20] sm:$0x1] }
  0x2c   : > { %v2134_v50 = vrot.slane %v2132_v41, 4  ;;  %v1043_v51 = vrot.slane %v1042_v44, 4  ;;  %v2140_v52 = vrot.slane %v2138_v45, 5  ;;  %5223 = vmatmul.msk.bf16.gmra.mxu0 %vm716_vm4, %v5632_v29  ;;  %v1053_v58 = vshll.u32 %v924_v36, 16  ;;  %v2021_v7 = vld [vmem:[#allocation2 + $0x28] sm:$0xf] }
  0x2d   : > { %5370 = vmatmul.msk.bf16.vlgmr.msra.gmra.mxu3 %vm716_vm4, %v2515_v42  ;;  %v2125_v56 = vor.u32 %v2124_v48, %v2121_v38  ;;  %v1059_v59 = vshll.u32 %v925_v46, 16  ;;  %v1038_v60 = vsel %vm5888_vm7, %v1033_v43, %v1037_v20  ;;  %v1063_v62 = vshrl.u32 %v925_v46, 16  ;;  %v333_v22 = vld [vmem:[%s5851_s24 + $0x38] sm:$0x1]  ;;  %v2022_v28 = vld [vmem:[#allocation2 + $0x2c] sm:$0x1] }
  0x2e   : > { %v2135_v57 = vor.u32 %v2134_v50, %v2130_v49  ;;  %v1048_v61 = vsel %vm5888_vm7, %v1043_v51, %v1047_v35  ;;  %5343 = vmatmul.msk.bf16.gmra.mxu2 %vm716_vm4, %v5652_v47  ;;  %v2143_v2 = vshrl.u32 %v2020_v54, 16  ;;  %v1052_v3 = vrot.slane %v1050_v53, 4  ;;  %v405_v27 = vld [vmem:[#allocation2 + $0x38] sm:$0x1]  ;;  %v334_v29 = vld [vmem:[%s5851_s24 + $0x3c] sm:$0xf] }
  0x2f   : > { %v2126_v63 = vrot.slane %v2125_v56, 4  ;;  %v1055_v4 = vrot.slane %v1053_v58, 5  ;;  %v5919_v5 = vrot.slane %v1059_v59, 5  ;;  %v1065_v6 = vrot.slane %v1063_v62, 4  ;;  %v335_v30 = vld [vmem:[%s5851_s24 + $0x40] sm:$0xf] }
  0x30   : > { %v2136_v0 = vrot.slane %v2135_v57, 4  ;;  %v1392_v8 = vunpack.c.l.b16 %v1038_v60  ;;  %v1393_v9 = vunpack.c.l.b16 %v1048_v61  ;;  %v2146_v13 = vshll.u32 %v2020_v54, 16  ;;  %408 = vst.msk [vmem:[#allocation2 + $0x3c] sm:$0xf] %vm379_vm2, %v334_v29  ;;  %v337_v36 = vld [vmem:[%s5851_s24 + $0x48] sm:$0xf] }
  0x31   : > { %v2131_v10 = vsel %vm5888_vm7, %v2126_v63, %v2130_v49  ;;  %v1069_v14 = vshll.u32 %v926_v1, 16  ;;  %v2145_v15 = vrot.slane %v2143_v2, 4  ;;  %v2152_v16 = vshll.u32 %v2021_v7, 16  ;;  %409 = vst.msk [vmem:[#allocation2 + $0x40] sm:$0xf] %vm379_vm2, %v335_v30  ;;  %v5653_v42 = vld [vmem:[#allocation2 + $0x24] sm:$0xff] }
  0x32   : > { %v2141_v11 = vsel %vm5888_vm7, %v2136_v0, %v2140_v52  ;;  %v2156_v17 = vshrl.u32 %v2021_v7, 16  ;;  %v2485_v18 = vunpack.c.l.b16 %v2131_v10  ;;  %v1056_v20 = vor.u32 %v1055_v4, %v1052_v3  ;;  %v927_v41 = vld [vmem:[#allocation2 + $0x24] sm:$0xf]  ;;  %v338_v43 = vld [vmem:[%s5851_s24 + $0x4c] sm:$0xf] }
  0x33   : > { %v2486_v19 = vunpack.c.l.b16 %v2141_v11  ;;  %v1066_v21 = vor.u32 %v1065_v6, %v5919_v5  ;;  %v1423_v23 = vpack.c.b16 %v1393_v9, %v1392_v8  ;;  %v2148_v24 = vrot.slane %v2146_v13, 5  ;;  %v928_v44 = vld [vmem:[#allocation2 + $0x28] sm:$0xf]  ;;  %413 = vst.msk [vmem:[#allocation2 + $0x48] sm:$0xf] %vm379_vm2, %v337_v36 }
  0x34   : > { %v2154_v25 = vrot.slane %v2152_v16, 5  ;;  %v2158_v26 = vrot.slane %v2156_v17, 4  ;;  %v1071_v31 = vrot.slane %v1069_v14, 5  ;;  %v1057_v33 = vrot.slane %v1056_v20, 4  ;;  %v336_v45 = vld [vmem:[%s5851_s24 + $0x44] sm:$0x1] }
  0x35   : > { %v2516_v32 = vpack.c.b16 %v2486_v19, %v2485_v18  ;;  %v1067_v34 = vrot.slane %v1066_v21, 4  ;;  %v406_v35 = vsel %vm5853_vm3, %v333_v22, %v405_v27  ;;  %v2149_v38 = vor.u32 %v2148_v24, %v2145_v15  ;;  %414 = vst.msk [vmem:[#allocation2 + $0x4c] sm:$0xf] %vm379_vm2, %v338_v43  ;;  %v410_v50 = vld [vmem:[#allocation2 + $0x44] sm:$0x1] }
  0x36   : > { %v2159_v39 = vor.u32 %v2158_v26, %v2154_v25  ;;  %v2162_v40 = vshll.u32 %v2022_v28, 16  ;;  %407 = vst [vmem:[#allocation2 + $0x38] sm:$0x1] %v406_v35  ;;  %v1062_v46 = vsel %vm5888_vm7, %v1057_v33, %v5919_v5  ;;  %v1074_v48 = vshrl.u32 %v927_v41, 16  ;;  %v2023_v54 = vld [vmem:[#allocation2 + $0x30] sm:$0xf] }
  0x37   : > { %v1072_v47 = vsel %vm5888_vm7, %v1067_v34, %v1071_v31  ;;  %v1077_v49 = vshll.u32 %v927_v41, 16  ;;  %v2150_v51 = vrot.slane %v2149_v38, 4  ;;  %v411_v56 = vsel %vm5853_vm3, %v336_v45, %v410_v50  ;;  %v2024_v59 = vld [vmem:[#allocation2 + $0x34] sm:$0xf]  ;;  %v929_v62 = vld [vmem:[#allocation2 + $0x2c] sm:$0x1] }
  0x38   : > { %v2160_v52 = vrot.slane %v2159_v39, 4  ;;  %v2164_v53 = vrot.slane %v2162_v40, 5  ;;  %v1083_v57 = vshll.u32 %v928_v44, 16  ;;  %v1087_v58 = vshrl.u32 %v928_v44, 16  ;;  %412 = vst [vmem:[#allocation2 + $0x44] sm:$0x1] %v411_v56 }
  0x39   : > { %v1394_v60 = vunpack.c.l.b16 %v1062_v46  ;;  %v1395_v61 = vunpack.c.l.b16 %v1072_v47  ;;  %v1076_v63 = vrot.slane %v1074_v48, 4  ;;  %v1079_v0 = vrot.slane %v1077_v49, 5  ;;  %v339_v7 = vld [vmem:[%s5851_s24 + $0x50] sm:$0x1]  ;;  %v340_v24 = vld [vmem:[%s5851_s24 + $0x54] sm:$0xf] }
  0x3a   : > { %5251 = vmatmul.msk.bf16.gmra.mxu1 %vm716_vm4, %v1423_v23  ;;  %v2167_v1 = vshrl.u32 %v2023_v54, 16  ;;  %v2170_v2 = vshll.u32 %v2023_v54, 16  ;;  %v2155_v3 = vsel %vm5888_vm7, %v2150_v51, %v2154_v25  ;;  %v2165_v4 = vsel %vm5888_vm7, %v2160_v52, %v2164_v53  ;;  %v415_v8 = vld [vmem:[#allocation2 + $0x50] sm:$0x1]  ;;  %v341_v25 = vld [vmem:[%s5851_s24 + $0x58] sm:$0xf] }
  0x3b   : > { %v2176_v5 = vshll.u32 %v2024_v59, 16  ;;  %v2180_v6 = vshrl.u32 %v2024_v59, 16  ;;  %v1085_v9 = vrot.slane %v1083_v57, 5  ;;  %v1089_v10 = vrot.slane %v1087_v58, 4  ;;  %v930_v26 = vld [vmem:[#allocation2 + $0x3c] sm:$0xf] }
  0x3c   : > { %5224 = vmatmul.msk.bf16.gmra.mxu0 %vm716_vm4, %v5633_v37  ;;  %v1424_v11 = vpack.c.b16 %v1395_v61, %v1394_v60  ;;  %v1093_v13 = vshll.u32 %v929_v62, 16  ;;  %v2487_v14 = vunpack.c.l.b16 %v2155_v3  ;;  %v2488_v15 = vunpack.c.l.b16 %v2165_v4  ;;  %418 = vst.msk [vmem:[#allocation2 + $0x54] sm:$0xf] %vm379_vm2, %v340_v24  ;;  %v5634_v28 = vld [vmem:[#allocation2 + $0x24] sm:$0xff]  ;;  %v931_v30 = vld [vmem:[#allocation2 + $0x40] sm:$0xf] }
  0x3d   : > { %5371 = vmatmul.msk.bf16.gmra.mxu3 %vm716_vm4, %v2516_v32  ;;  %v1080_v16 = vor.u32 %v1079_v0, %v1076_v63  ;;  %v416_v17 = vsel %vm5853_vm3, %v339_v7, %v415_v8  ;;  %v2169_v18 = vrot.slane %v2167_v1, 4  ;;  %v2172_v19 = vrot.slane %v2170_v2, 5  ;;  %v2025_v23 = vld [vmem:[#allocation2 + $0x38] sm:$0x1]  ;;  %419 = vst.msk [vmem:[#allocation2 + $0x58] sm:$0xf] %vm379_vm2, %v341_v25 }
  0x3e   : > { %5344 = vmatmul.msk.bf16.gmra.mxu2 %vm716_vm4, %v5653_v42  ;;  %v2178_v20 = vrot.slane %v2176_v5, 5  ;;  %v2182_v21 = vrot.slane %v2180_v6, 4  ;;  %417 = vst [vmem:[#allocation2 + $0x50] sm:$0x1] %v416_v17  ;;  %v1090_v22 = vor.u32 %v1089_v10, %v1085_v9  ;;  %v2517_v27 = vpack.c.b16 %v2488_v15, %v2487_v14  ;;  %v342_v35 = vld [vmem:[%s5851_s24 + $0x5c] sm:$0x1] }
  0x3f   : > { %v1095_v29 = vrot.slane %v1093_v13, 5  ;;  %v1081_v31 = vrot.slane %v1080_v16, 4  ;;  %v2173_v32 = vor.u32 %v2172_v19, %v2169_v18  ;;  %v2186_v34 = vshll.u32 %v2025_v23, 16  ;;  %v420_v36 = vld [vmem:[#allocation2 + $0x5c] sm:$0x1]  ;;  %v5654_v41 = vld [vmem:[#allocation2 + $0x30] sm:$0xff] }
  0x40   : > { %v2183_v33 = vor.u32 %v2182_v21, %v2178_v20  ;;  %v1091_v37 = vrot.slane %v1090_v22, 4  ;;  %v1098_v38 = vshrl.u32 %v930_v26, 16  ;;  %v1101_v39 = vshll.u32 %v930_v26, 16  ;;  %v2026_v44 = vld [vmem:[#allocation2 + $0x48] sm:$0xf] }
  0x41   : > { %v421_v40 = vsel %vm5853_vm3, %v342_v35, %v420_v36  ;;  %v1107_v42 = vshll.u32 %v931_v30, 16  ;;  %v1111_v43 = vshrl.u32 %v931_v30, 16  ;;  %v2174_v45 = vrot.slane %v2173_v32, 4  ;;  %v2027_v48 = vld [vmem:[#allocation2 + $0x4c] sm:$0xf] }
  0x42   : > { %422 = vst [vmem:[#allocation2 + $0x5c] sm:$0x1] %v421_v40  ;;  %v2184_v46 = vrot.slane %v2183_v33, 4  ;;  %v2188_v47 = vrot.slane %v2186_v34, 5  ;;  %v1086_v49 = vsel %vm5888_vm7, %v1081_v31, %v1085_v9  ;;  %v1096_v50 = vsel %vm5888_vm7, %v1091_v37, %v1095_v29  ;;  %v932_v58 = vld [vmem:[#allocation2 + $0x44] sm:$0x1] }
  0x43   : > { %v1100_v51 = vrot.slane %v1098_v38, 4  ;;  %v1103_v52 = vrot.slane %v1101_v39, 5  ;;  %v1109_v53 = vrot.slane %v1107_v42, 5  ;;  %v1113_v54 = vrot.slane %v1111_v43, 4  ;;  %v343_v14 = vld [vmem:[%s5851_s24 + $0x60] sm:$0xf] }
  0x44   : > { %v2191_v56 = vshrl.u32 %v2026_v44, 16  ;;  %v2194_v57 = vshll.u32 %v2026_v44, 16  ;;  %v2200_v59 = vshll.u32 %v2027_v48, 16  ;;  %v2204_v60 = vshrl.u32 %v2027_v48, 16  ;;  %v344_v18 = vld [vmem:[%s5851_s24 + $0x64] sm:$0xf] }
  0x45   : > { %v1396_v61 = vunpack.c.l.b16 %v1086_v49  ;;  %v1397_v62 = vunpack.c.l.b16 %v1096_v50  ;;  %v2179_v63 = vsel %vm5888_vm7, %v2174_v45, %v2178_v20  ;;  %v2189_v0 = vsel %vm5888_vm7, %v2184_v46, %v2188_v47  ;;  %423 = vst.msk [vmem:[#allocation2 + $0x60] sm:$0xf] %vm379_vm2, %v343_v14  ;;  %v5635_v20 = vld [vmem:[#allocation2 + $0x3c] sm:$0xff]  ;;  %v933_v23 = vld [vmem:[#allocation2 + $0x48] sm:$0xf] }
  0x46   : > { %v1104_v1 = vor.u32 %v1103_v52, %v1100_v51  ;;  %v1114_v2 = vor.u32 %v1113_v54, %v1109_v53  ;;  %v1117_v3 = vshll.u32 %v932_v58, 16  ;;  %v2193_v4 = vrot.slane %v2191_v56, 4  ;;  %424 = vst.msk [vmem:[#allocation2 + $0x64] sm:$0xf] %vm379_vm2, %v344_v18  ;;  %v345_v24 = vld [vmem:[%s5851_s24 + $0x68] sm:$0x1] }
  0x47   : > { %v2196_v5 = vrot.slane %v2194_v57, 5  ;;  %v2489_v6 = vunpack.c.l.b16 %v2179_v63  ;;  %v2490_v7 = vunpack.c.l.b16 %v2189_v0  ;;  %v2202_v8 = vrot.slane %v2200_v59, 5  ;;  %v425_v25 = vld [vmem:[#allocation2 + $0x68] sm:$0x1]  ;;  %v934_v26 = vld [vmem:[#allocation2 + $0x4c] sm:$0xf] }
  0x48   : > { %v2206_v9 = vrot.slane %v2204_v60, 4  ;;  %v1425_v10 = vpack.c.b16 %v1397_v62, %v1396_v61  ;;  %v1105_v13 = vrot.slane %v1104_v1, 4  ;;  %v1115_v15 = vrot.slane %v1114_v2, 4  ;;  %v2029_v36 = vld [vmem:[#allocation2 + $0x54] sm:$0xf] }
  0x49   : > { %v1119_v16 = vrot.slane %v1117_v3, 5  ;;  %v2197_v17 = vor.u32 %v2196_v5, %v2193_v4  ;;  %v2518_v19 = vpack.c.b16 %v2490_v7, %v2489_v6  ;;  %v1122_v34 = vshrl.u32 %v933_v23, 16  ;;  %v2030_v39 = vld [vmem:[#allocation2 + $0x58] sm:$0xf]  ;;  %v935_v45 = vld [vmem:[#allocation2 + $0x50] sm:$0x1] }
  0x4a   : > { %5252 = vmatmul.msk.bf16.gmra.mxu1 %vm716_vm4, %v1424_v11  ;;  %v2028_v11 = vld [vmem:[#allocation2 + $0x50] sm:$0x1]  ;;  %v2207_v21 = vor.u32 %v2206_v9, %v2202_v8  ;;  %v1110_v29 = vsel %vm5888_vm7, %v1105_v13, %v1109_v53  ;;  %v1125_v35 = vshll.u32 %v933_v23, 16  ;;  %v1131_v37 = vshll.u32 %v934_v26, 16  ;;  %v2031_v61 = vld [vmem:[#allocation2 + $0x5c] sm:$0x1] }
  0x4b   : > { %v2210_v22 = vshll.u32 %v2028_v11, 16  ;;  %v1120_v30 = vsel %vm5888_vm7, %v1115_v15, %v1119_v16  ;;  %v2198_v31 = vrot.slane %v2197_v17, 4  ;;  %v1135_v38 = vshrl.u32 %v934_v26, 16  ;;  %v936_v1 = vld [vmem:[#allocation2 + $0x54] sm:$0xf]  ;;  %v5636_v4 = vld [vmem:[#allocation2 + $0x48] sm:$0xff] }
  0x4c   : > { %5225 = vmatmul.msk.bf16.gmra.mxu0 %vm716_vm4, %v5634_v28  ;;  %v5655_v28 = vld [vmem:[#allocation2 + $0x48] sm:$0xff]  ;;  %v2208_v32 = vrot.slane %v2207_v21, 4  ;;  %v1398_v40 = vunpack.c.l.b16 %v1110_v29  ;;  %v2215_v43 = vshrl.u32 %v2029_v36, 16  ;;  %v1124_v46 = vrot.slane %v1122_v34, 4  ;;  %v347_v3 = vld [vmem:[%s5851_s24 + $0x70] sm:$0xf] }
  0x4d   : > { %5372 = vmatmul.msk.bf16.gmra.mxu3 %vm716_vm4, %v2517_v27  ;;  %v426_v27 = vsel %vm5853_vm3, %v345_v24, %v425_v25  ;;  %v2212_v33 = vrot.slane %v2210_v22, 5  ;;  %v2203_v42 = vsel %vm5888_vm7, %v2198_v31, %v2202_v8  ;;  %v1127_v47 = vrot.slane %v1125_v35, 5  ;;  %v346_v2 = vld [vmem:[%s5851_s24 + $0x6c] sm:$0xf]  ;;  %v937_v6 = vld [vmem:[#allocation2 + $0x58] sm:$0xf] }
  0x4e   : > { %5345 = vmatmul.msk.bf16.gmra.mxu2 %vm716_vm4, %v5654_v41  ;;  %427 = vst [vmem:[#allocation2 + $0x68] sm:$0x1] %v426_v27  ;;  %v1399_v41 = vunpack.c.l.b16 %v1120_v30  ;;  %v2218_v48 = vshll.u32 %v2029_v36, 16  ;;  %v1133_v49 = vrot.slane %v1131_v37, 5  ;;  %v1137_v50 = vrot.slane %v1135_v38, 4  ;;  %v5656_v22 = vld [vmem:[#allocation2 + $0x54] sm:$0xff] }
  0x4f   : > { %v2213_v44 = vsel %vm5888_vm7, %v2208_v32, %v2212_v33  ;;  %v2224_v51 = vshll.u32 %v2030_v39, 16  ;;  %v2228_v52 = vshrl.u32 %v2030_v39, 16  ;;  %v1141_v54 = vshll.u32 %v935_v45, 16  ;;  %428 = vst.msk [vmem:[#allocation2 + $0x6c] sm:$0xf] %vm379_vm2, %v346_v2 }
  0x50   : > { %v1426_v53 = vpack.c.b16 %v1399_v41, %v1398_v40  ;;  %v2491_v56 = vunpack.c.l.b16 %v2203_v42  ;;  %v2492_v57 = vunpack.c.l.b16 %v2213_v44  ;;  %v1128_v58 = vor.u32 %v1127_v47, %v1124_v46  ;;  %429 = vst.msk [vmem:[#allocation2 + $0x70] sm:$0xf] %vm379_vm2, %v347_v3  ;;  %v348_v16 = vld [vmem:[%s5851_s24 + $0x74] sm:$0x1]  ;;  %v2033_v24 = vld [vmem:[#allocation2 + $0x64] sm:$0xf] }
  0x51   : > { %v2217_v59 = vrot.slane %v2215_v43, 4  ;;  %v1138_v60 = vor.u32 %v1137_v50, %v1133_v49  ;;  %v2220_v62 = vrot.slane %v2218_v48, 5  ;;  %v2226_v63 = vrot.slane %v2224_v51, 5  ;;  %v430_v17 = vld [vmem:[#allocation2 + $0x74] sm:$0x1] }
  0x52   : > { %v2230_v0 = vrot.slane %v2228_v52, 4  ;;  %v1143_v5 = vrot.slane %v1141_v54, 5  ;;  %v2519_v7 = vpack.c.b16 %v2492_v57, %v2491_v56  ;;  %v1129_v8 = vrot.slane %v1128_v58, 4  ;;  %v938_v31 = vld [vmem:[#allocation2 + $0x5c] sm:$0x1] }
  0x53   : > { %v2234_v9 = vshll.u32 %v2031_v61, 16  ;;  %v1139_v11 = vrot.slane %v1138_v60, 4  ;;  %v2221_v13 = vor.u32 %v2220_v62, %v2217_v59  ;;  %v1146_v15 = vshrl.u32 %v936_v1, 16  ;;  %v349_v59 = vld [vmem:[%s5851_s24 + $0x78] sm:$0xf] }
  0x54   : > { %v2231_v14 = vor.u32 %v2230_v0, %v2226_v63  ;;  %v1149_v18 = vshll.u32 %v936_v1, 16  ;;  %v431_v21 = vsel %vm5853_vm3, %v348_v16, %v430_v17  ;;  %v1134_v27 = vsel %vm5888_vm7, %v1129_v8, %v1133_v49  ;;  %v350_v60 = vld [vmem:[%s5851_s24 + $0x7c] sm:$0xf]  ;;  %v5637_v61 = vld [vmem:[#allocation2 + $0x54] sm:$0xff]  ;;  %433 = vst.msk [vmem:[#allocation2 + $0x78] sm:$0xf] %vm379_vm2, %v349_v59 }
  0x55   : > { %432 = vst [vmem:[#allocation2 + $0x74] sm:$0x1] %v431_v21  ;;  %v2236_v23 = vrot.slane %v2234_v9, 5  ;;  %v2222_v29 = vrot.slane %v2221_v13, 4  ;;  %v1148_v32 = vrot.slane %v1146_v15, 4  ;;  %v2248_v36 = vshll.u32 %v2033_v24, 16 }
  0x56   : > { %v2232_v30 = vrot.slane %v2231_v14, 4  ;;  %v1151_v33 = vrot.slane %v1149_v18, 5  ;;  %v2252_v37 = vshrl.u32 %v2033_v24, 16  ;;  %v1400_v38 = vunpack.c.l.b16 %v1134_v27  ;;  %v2034_v45 = vld [vmem:[#allocation2 + $0x68] sm:$0x1] }
  0x57   : > { %v2227_v42 = vsel %vm5888_vm7, %v2222_v29, %v2226_v63  ;;  %v1165_v44 = vshll.u32 %v938_v31, 16  ;;  %v2250_v48 = vrot.slane %v2248_v36, 5  ;;  %v352_v63 = vld [vmem:[%s5851_s24 + $0x84] sm:$0xf]  ;;  %v353_v0 = vld [vmem:[%s5851_s24 + $0x88] sm:$0xf] }
  0x58   : > { %v2237_v43 = vsel %vm5888_vm7, %v2232_v30, %v2236_v23  ;;  %v1152_v46 = vor.u32 %v1151_v33, %v1148_v32  ;;  %v2254_v49 = vrot.slane %v2252_v37, 4  ;;  %v2493_v50 = vunpack.c.l.b16 %v2227_v42  ;;  %434 = vst.msk [vmem:[#allocation2 + $0x7c] sm:$0xf] %vm379_vm2, %v350_v60  ;;  %v435_v8 = vld [vmem:[#allocation2 + $0x80] sm:$0x1] }
  0x59   : > { %v2494_v51 = vunpack.c.l.b16 %v2237_v43  ;;  %v1167_v56 = vrot.slane %v1165_v44, 5  ;;  %438 = vst.msk [vmem:[#allocation2 + $0x84] sm:$0xf] %vm379_vm2, %v352_v63  ;;  %v354_v9 = vld [vmem:[%s5851_s24 + $0x8c] sm:$0x1] }
  0x5a   : > { %5253 = vmatmul.msk.bf16.gmra.mxu1 %vm716_vm4, %v1425_v10  ;;  %v2032_v10 = vld [vmem:[#allocation2 + $0x60] sm:$0xf]  ;;  %v1153_v57 = vrot.slane %v1152_v46, 4  ;;  %v2255_v62 = vor.u32 %v2254_v49, %v2250_v48  ;;  %439 = vst.msk [vmem:[#allocation2 + $0x88] sm:$0xf] %vm379_vm2, %v353_v0  ;;  %v5658_v63 = vld [vmem:[#allocation2 + $0x6c] sm:$0xff] }
  0x5b   : > { %v2239_v25 = vshrl.u32 %v2032_v10, 16  ;;  %v2242_v26 = vshll.u32 %v2032_v10, 16  ;;  %v2520_v1 = vpack.c.b16 %v2494_v51, %v2493_v50  ;;  %v5657_v10 = vld [vmem:[#allocation2 + $0x60] sm:$0xff]  ;;  %v440_v16 = vld [vmem:[#allocation2 + $0x8c] sm:$0x1] }
  0x5c   : > { %5226 = vmatmul.msk.bf16.gmra.mxu0 %vm716_vm4, %v5635_v20  ;;  %v1159_v20 = vshrl.u32 %v937_v6, 16  ;;  %v2256_v13 = vrot.slane %v2255_v62, 4  ;;  %v2035_v21 = vld [vmem:[#allocation2 + $0x6c] sm:$0xf]  ;;  %v941_v31 = vld [vmem:[#allocation2 + $0x68] sm:$0x1] }
  0x5d   : > { %5373 = vmatmul.msk.bf16.gmra.mxu3 %vm716_vm4, %v2518_v19  ;;  %v1155_v19 = vshll.u32 %v937_v6, 16  ;;  %v2241_v39 = vrot.slane %v2239_v25, 4  ;;  %v2244_v40 = vrot.slane %v2242_v26, 5  ;;  %v351_v6 = vld [vmem:[%s5851_s24 + $0x80] sm:$0x1]  ;;  %v2263_v32 = vshrl.u32 %v2035_v21, 16 }
  0x5e   : > { %5346 = vmatmul.msk.bf16.gmra.mxu2 %vm716_vm4, %v5655_v28  ;;  %v1144_v28 = vsel %vm5888_vm7, %v1139_v11, %v1143_v5  ;;  %v1161_v35 = vrot.slane %v1159_v20, 4  ;;  %v940_v5 = vld [vmem:[#allocation2 + $0x64] sm:$0xf]  ;;  %v436_v15 = vsel %vm5853_vm3, %v351_v6, %v435_v8  ;;  %v441_v20 = vsel %vm5853_vm3, %v354_v9, %v440_v16  ;;  %v2037_v42 = vld [vmem:[#allocation2 + $0x74] sm:$0x1] }
  0x5f   : > { %v1157_v34 = vrot.slane %v1155_v19, 5  ;;  %v1401_v41 = vunpack.c.l.b16 %v1144_v28  ;;  %v2245_v52 = vor.u32 %v2244_v40, %v2241_v39  ;;  %v1179_v18 = vshll.u32 %v940_v5, 16  ;;  %437 = vst [vmem:[#allocation2 + $0x80] sm:$0x1] %v436_v15  ;;  %v5638_v50 = vld [vmem:[#allocation2 + $0x60] sm:$0xff]  ;;  %v5709_v9 = vld [vmem:[%s6793_s2 + $0x70] sm:$0xff] }
  0x60   : > { %v1183_v19 = vshrl.u32 %v940_v5, 16  ;;  %442 = vst [vmem:[#allocation2 + $0x8c] sm:$0x1] %v441_v20  ;;  %v2266_v33 = vshll.u32 %v2035_v21, 16  ;;  %v2265_v43 = vrot.slane %v2263_v32, 4  ;;  %v5707_v51 = vld [vmem:[%s6793_s2 + $0x60] sm:$0xff]  ;;  %4784 = vmatpush.bf16.msrb.mxu3 %v5709_v9 }
  0x61   : > { %v1162_v47 = vor.u32 %v1161_v35, %v1157_v34  ;;  %v1427_v54 = vpack.c.b16 %v1401_v41, %v1400_v38  ;;  %v2246_v2 = vrot.slane %v2245_v52, 4  ;;  %v6039_v29 = vrot.slane %v1179_v18, 5  ;;  %v942_v52 = vld [vmem:[#allocation2 + $0x78] sm:$0xf]  ;;  %4054 = vmatpush.bf16.msrb.mxu2 %v5707_v51  ;;  %v943_v60 = vld [vmem:[#allocation2 + $0x7c] sm:$0xf] }
  0x62   : > { %v1185_v30 = vrot.slane %v1183_v19, 4  ;;  %v1189_v41 = vshll.u32 %v941_v31, 16  ;;  %v2268_v44 = vrot.slane %v2266_v33, 5  ;;  %v445_v62 = vld [vmem:[#allocation2 + $0x98] sm:$0x1]  ;;  %v1194_v0 = vshrl.u32 %v942_v52, 16 }
  0x63   : > { %v1163_v58 = vrot.slane %v1162_v47, 4  ;;  %v2251_v25 = vsel %vm5888_vm7, %v2246_v2, %v2250_v48  ;;  %v355_v47 = vld [vmem:[%s5851_s24 + $0x90] sm:$0xf]  ;;  %v356_v48 = vld [vmem:[%s5851_s24 + $0x94] sm:$0xf]  ;;  %v1203_v6 = vshll.u32 %v943_v60, 16 }
  0x64   : > { %v2495_v36 = vunpack.c.l.b16 %v2251_v25  ;;  %v1186_v40 = vor.u32 %v1185_v30, %v6039_v29  ;;  %443 = vst.msk [vmem:[#allocation2 + $0x90] sm:$0xf] %vm379_vm2, %v355_v47  ;;  %v5687_v8 = vld [vmem:[%s6793_s2 + $0x40] sm:$0xff]  ;;  %v1196_v20 = vrot.slane %v1194_v0, 4  ;;  %v946_v51 = vld [vmem:[#allocation2 + $0x88] sm:$0xf] }
  0x65   : > { %v1168_v11 = vsel %vm5888_vm7, %v1163_v58, %v1167_v56  ;;  %v1191_v56 = vrot.slane %v1189_v41, 5  ;;  %444 = vst.msk [vmem:[#allocation2 + $0x94] sm:$0xf] %vm379_vm2, %v356_v48  ;;  %v2269_v58 = vor.u32 %v2268_v44, %v2265_v43  ;;  %2961 = vmatpush.bf16.msrb.mxu0 %v5687_v8  ;;  %v358_v43 = vld [vmem:[%s5851_s24 + $0x9c] sm:$0xf]  ;;  %v1231_v0 = vshrl.u32 %v946_v51, 16 }
  0x66   : > { %v1403_v24 = vunpack.c.l.b16 %v1168_v11  ;;  %v5639_v44 = vld [vmem:[#allocation2 + $0x78] sm:$0xff]  ;;  %448 = vst.msk [vmem:[#allocation2 + $0x9c] sm:$0xf] %vm379_vm2, %v358_v43 }
  0x6a   : > { %5254 = vmatmul.msk.bf16.gmra.mxu1 %vm716_vm4, %v1426_v53  ;;  %v2258_v53 = vshll.u32 %v2034_v45, 16 }
  0x6c   : > { %5227 = vmatmul.msk.bf16.gmra.mxu0 %vm716_vm4, %v5636_v4  ;;  %v2260_v3 = vrot.slane %v2258_v53, 5  ;;  %v939_v4 = vld [vmem:[#allocation2 + $0x60] sm:$0xf] }
  0x6d   : > { %5374 = vmatmul.msk.bf16.gmra.mxu3 %vm716_vm4, %v2519_v7  ;;  %v1158_v7 = vsel %vm5888_vm7, %v1153_v57, %v1157_v34  ;;  %v1170_v14 = vshrl.u32 %v939_v4, 16  ;;  %v1173_v17 = vshll.u32 %v939_v4, 16  ;;  %v2282_v57 = vshll.u32 %v2037_v42, 16  ;;  %v2039_v4 = vld [vmem:[#allocation2 + $0x88] sm:$0xf] }
  0x6e   : > { %5347 = vmatmul.msk.bf16.gmra.mxu2 %vm716_vm4, %v5656_v22  ;;  %v2036_v22 = vld [vmem:[#allocation2 + $0x70] sm:$0xf]  ;;  %v1402_v23 = vunpack.c.l.b16 %v1158_v7  ;;  %v2261_v26 = vsel %vm5888_vm7, %v2256_v13, %v2260_v3  ;;  %v2038_v3 = vld [vmem:[#allocation2 + $0x84] sm:$0xf]  ;;  %v1207_v7 = vshrl.u32 %v943_v60, 16  ;;  %v2296_v18 = vshll.u32 %v2039_v4, 16 }
  0x6f   : > { %v1172_v27 = vrot.slane %v1170_v14, 4  ;;  %v1175_v28 = vrot.slane %v1173_v17, 5  ;;  %v2272_v34 = vshll.u32 %v2036_v22, 16  ;;  %v2276_v35 = vshrl.u32 %v2036_v22, 16  ;;  %v5659_v60 = vld [vmem:[#allocation2 + $0x84] sm:$0xff] }
  0x70   : > { %v2496_v37 = vunpack.c.l.b16 %v2261_v26  ;;  %v1428_v38 = vpack.c.b16 %v1403_v24, %v1402_v23  ;;  %v2284_v5 = vrot.slane %v2282_v57, 5  ;;  %v2270_v14 = vrot.slane %v2269_v58, 4 }
  0x71   : > { %v1176_v39 = vor.u32 %v1175_v28, %v1172_v27  ;;  %v6042_v45 = vrot.slane %v2272_v34, 5  ;;  %v2278_v46 = vrot.slane %v2276_v35, 4  ;;  %v2287_v16 = vshrl.u32 %v2038_v3, 16  ;;  %v944_v28 = vld [vmem:[#allocation2 + $0x80] sm:$0x1] }
  0x72   : > { %v2521_v49 = vpack.c.b16 %v2496_v37, %v2495_v36  ;;  %v2290_v17 = vshll.u32 %v2038_v3, 16  ;;  %v2300_v19 = vshrl.u32 %v2039_v4, 16  ;;  %v6073_v22 = vrot.slane %v1203_v6, 5  ;;  %v2040_v34 = vld [vmem:[#allocation2 + $0x8c] sm:$0x1] }
  0x73   : > { %v1177_v53 = vrot.slane %v1176_v39, 4  ;;  %v2279_v59 = vor.u32 %v2278_v46, %v6042_v45  ;;  %v1209_v23 = vrot.slane %v1207_v7, 4  ;;  %v2275_v26 = vsel %vm5888_vm7, %v2270_v14, %v6042_v45  ;;  %v359_v46 = vld [vmem:[%s5851_s24 + $0xa0] sm:$0xf] }
  0x74   : > { %v2292_v30 = vrot.slane %v2290_v17, 5  ;;  %v2298_v31 = vrot.slane %v2296_v18, 5  ;;  %v2302_v32 = vrot.slane %v2300_v19, 4  ;;  %v2497_v35 = vunpack.c.l.b16 %v2275_v26  ;;  %449 = vst.msk [vmem:[#allocation2 + $0xa0] sm:$0xf] %vm379_vm2, %v359_v46 }
  0x75   : > { %v1182_v11 = vsel %vm5888_vm7, %v1177_v53, %v6039_v29  ;;  %v2280_v15 = vrot.slane %v2279_v59, 4  ;;  %v2289_v29 = vrot.slane %v2287_v16, 4  ;;  %v1210_v37 = vor.u32 %v1209_v23, %v6073_v22  ;;  %v450_v53 = vld [vmem:[#allocation2 + $0xa4] sm:$0x1]  ;;  %v947_v18 = vld [vmem:[#allocation2 + $0x8c] sm:$0x1] }
  0x76   : > { %v1404_v24 = vunpack.c.l.b16 %v1182_v11  ;;  %v2303_v41 = vor.u32 %v2302_v32, %v2298_v31  ;;  %v2306_v42 = vshll.u32 %v2040_v34, 16  ;;  %v948_v34 = vld [vmem:[#allocation2 + $0x90] sm:$0xf] }
  0x77   : > { %v2285_v27 = vsel %vm5888_vm7, %v2280_v15, %v2284_v5  ;;  %v1211_v48 = vrot.slane %v1210_v37, 4 }
  0x78   : > { %v2498_v36 = vunpack.c.l.b16 %v2285_v27  ;;  %v2304_v57 = vrot.slane %v2303_v41, 4  ;;  %v2308_v58 = vrot.slane %v2306_v42, 5  ;;  %v5640_v41 = vld [vmem:[#allocation2 + $0x84] sm:$0xff] }
  0x7a   : > { %5255 = vmatmul.msk.bf16.gmra.mxu1 %vm716_vm4, %v1427_v54  ;;  %v1187_v54 = vrot.slane %v1186_v40, 4  ;;  %v2293_v40 = vor.u32 %v2292_v30, %v2289_v29  ;;  %v2522_v47 = vpack.c.b16 %v2498_v36, %v2497_v35  ;;  %v2309_v6 = vsel %vm5888_vm7, %v2304_v57, %v2308_v58  ;;  %v361_v35 = vld [vmem:[%s5851_s24 + $0xa8] sm:$0xf]  ;;  %v5660_v57 = vld [vmem:[#allocation2 + $0x90] sm:$0xff] }
  0x7b   : > { %453 = vst.msk [vmem:[#allocation2 + $0xa8] sm:$0xf] %vm379_vm2, %v361_v35 }
  0x7c   : > { %5228 = vmatmul.msk.bf16.gmra.mxu0 %vm716_vm4, %v5637_v61  ;;  %v357_v61 = vld [vmem:[%s5851_s24 + $0x98] sm:$0x1]  ;;  %v1192_v13 = vsel %vm5888_vm7, %v1187_v54, %v1191_v56  ;;  %v2294_v56 = vrot.slane %v2293_v40, 4  ;;  %v362_v40 = vld [vmem:[%s5851_s24 + $0xac] sm:$0xf] }
  0x7d   : > { %5375 = vmatmul.msk.bf16.gmra.mxu3 %vm716_vm4, %v2520_v1  ;;  %v1197_v1 = vshll.u32 %v942_v52, 16  ;;  %v446_v2 = vsel %vm5853_vm3, %v357_v61, %v445_v62  ;;  %v1405_v25 = vunpack.c.l.b16 %v1192_v13  ;;  %v360_v52 = vld [vmem:[%s5851_s24 + $0xa4] sm:$0x1]  ;;  %v1233_v13 = vrot.slane %v1231_v0, 4  ;;  %454 = vst.msk [vmem:[#allocation2 + $0xac] sm:$0xf] %vm379_vm2, %v362_v40 }
  0x7e   : > { %5348 = vmatmul.msk.bf16.gmra.mxu2 %vm716_vm4, %v5657_v10  ;;  %447 = vst [vmem:[#allocation2 + $0x98] sm:$0x1] %v446_v2  ;;  %v5689_v10 = vld [vmem:[%s6793_s2 + $0x50] sm:$0xff]  ;;  %v451_v59 = vsel %vm5853_vm3, %v360_v52, %v450_v53  ;;  %v2299_v5 = vsel %vm5888_vm7, %v2294_v56, %v2298_v31 }
  0x7f   : > { %v1199_v21 = vrot.slane %v1197_v1, 5  ;;  %3691 = vmatpush.bf16.msrb.mxu1 %v5689_v10  ;;  %v1429_v39 = vpack.c.b16 %v1405_v25, %v1404_v24  ;;  %452 = vst [vmem:[#allocation2 + $0xa4] sm:$0x1] %v451_v59  ;;  %v2041_v1 = vld [vmem:[#allocation2 + $0x90] sm:$0xf] }
  0x80   : > { %v2042_v2 = vld [vmem:[#allocation2 + $0x94] sm:$0xf]  ;;  %v2311_v9 = vshrl.u32 %v2041_v1, 16  ;;  %v2314_v10 = vshll.u32 %v2041_v1, 16  ;;  %v2044_v1 = vld [vmem:[#allocation2 + $0x9c] sm:$0xf] }
  0x81   : > { %v1200_v33 = vor.u32 %v1199_v21, %v1196_v20  ;;  %v2320_v14 = vshll.u32 %v2042_v2, 16  ;;  %v2324_v15 = vshrl.u32 %v2042_v2, 16  ;;  %v2499_v21 = vunpack.c.l.b16 %v2299_v5  ;;  %v2045_v5 = vld [vmem:[#allocation2 + $0xa0] sm:$0xf] }
  0x82   : > { %v2313_v25 = vrot.slane %v2311_v9, 4  ;;  %v2316_v26 = vrot.slane %v2314_v10, 5 }
  0x83   : > { %v1201_v45 = vrot.slane %v1200_v33, 4  ;;  %v6104_v29 = vrot.slane %v2320_v14, 5  ;;  %v2326_v30 = vrot.slane %v2324_v15, 4  ;;  %v2335_v15 = vshrl.u32 %v2044_v1, 16 }
  0x85   : > { %v1206_v3 = vsel %vm5888_vm7, %v1201_v45, %v6073_v22  ;;  %v2500_v22 = vunpack.c.l.b16 %v2309_v6  ;;  %v2043_v24 = vld [vmem:[#allocation2 + $0x98] sm:$0x1]  ;;  %v2327_v45 = vor.u32 %v2326_v30, %v6104_v29 }
  0x86   : > { %v1406_v16 = vunpack.c.l.b16 %v1206_v3  ;;  %v2330_v33 = vshll.u32 %v2043_v24, 16 }
  0x87   : > { %v2523_v37 = vpack.c.b16 %v2500_v22, %v2499_v21 }
  0x8a   : > { %5256 = vmatmul.msk.bf16.gmra.mxu1 %vm716_vm4, %v1428_v38  ;;  %v1213_v38 = vshll.u32 %v944_v28, 16  ;;  %v1237_v28 = vshll.u32 %v947_v18, 16 }
  0x8c   : > { %5229 = vmatmul.msk.bf16.gmra.mxu0 %vm716_vm4, %v5638_v50  ;;  %v945_v50 = vld [vmem:[#allocation2 + $0x84] sm:$0xf] }
  0x8d   : > { %5376 = vmatmul.msk.bf16.gmra.mxu3 %vm716_vm4, %v2521_v49  ;;  %v1215_v49 = vrot.slane %v1213_v38, 5  ;;  %v1218_v61 = vshrl.u32 %v945_v50, 16  ;;  %v1221_v62 = vshll.u32 %v945_v50, 16  ;;  %v2317_v38 = vor.u32 %v2316_v26, %v2313_v25  ;;  %v455_v50 = vld [vmem:[#allocation2 + $0xb0] sm:$0x1] }
  0x8e   : > { %5349 = vmatmul.msk.bf16.gmra.mxu2 %vm716_vm4, %v5658_v63  ;;  %v1227_v63 = vshll.u32 %v946_v51, 16  ;;  %v2046_v25 = vld [vmem:[#allocation2 + $0xa4] sm:$0x1] }
  0x8f   : > { %v1216_v4 = vsel %vm5888_vm7, %v1211_v48, %v1215_v49  ;;  %v1220_v7 = vrot.slane %v1218_v61, 4  ;;  %v1223_v8 = vrot.slane %v1221_v62, 5  ;;  %v1245_v48 = vshll.u32 %v948_v34, 16  ;;  %v363_v49 = vld [vmem:[%s5851_s24 + $0xb0] sm:$0x1] }
  0x90   : > { %v6101_v11 = vrot.slane %v1227_v63, 5  ;;  %v1407_v17 = vunpack.c.l.b16 %v1216_v4  ;;  %v456_v56 = vsel %vm5853_vm3, %v363_v49, %v455_v50  ;;  %v2318_v58 = vrot.slane %v2317_v38, 4  ;;  %v951_v38 = vld [vmem:[#allocation2 + $0x9c] sm:$0xf] }
  0x91   : > { %v1224_v23 = vor.u32 %v1223_v8, %v1220_v7  ;;  %457 = vst [vmem:[#allocation2 + $0xb0] sm:$0x1] %v456_v56  ;;  %v2328_v61 = vrot.slane %v2327_v45, 4  ;;  %v2332_v62 = vrot.slane %v2330_v33, 5  ;;  %v1247_v0 = vrot.slane %v1245_v48, 5  ;;  %v5661_v50 = vld [vmem:[#allocation2 + $0x9c] sm:$0xff] }
  0x92   : > { %v1234_v27 = vor.u32 %v1233_v13, %v6101_v11  ;;  %v1430_v31 = vpack.c.b16 %v1407_v17, %v1406_v16  ;;  %v2323_v10 = vsel %vm5888_vm7, %v2318_v58, %v6104_v29  ;;  %v2338_v16 = vshll.u32 %v2044_v1, 16  ;;  %v368_v48 = vld [vmem:[%s5851_s24 + $0xc4] sm:$0xf] }
  0x93   : > { %v1225_v42 = vrot.slane %v1224_v23, 4  ;;  %v2333_v14 = vsel %vm5888_vm7, %v2328_v61, %v2332_v62  ;;  %v2501_v26 = vunpack.c.l.b16 %v2323_v10  ;;  %v2337_v29 = vrot.slane %v2335_v15, 4  ;;  %464 = vst.msk [vmem:[#allocation2 + $0xc4] sm:$0xf] %vm379_vm2, %v368_v48  ;;  %v369_v61 = vld [vmem:[%s5851_s24 + $0xc8] sm:$0x1] }
  0x94   : > { %v1235_v43 = vrot.slane %v1234_v27, 4  ;;  %v2340_v30 = vrot.slane %v2338_v16, 5  ;;  %v1266_v58 = vshrl.u32 %v951_v38, 16  ;;  %v2047_v62 = vld [vmem:[#allocation2 + $0xa8] sm:$0xf] }
  0x95   : > { %v1230_v59 = vsel %vm5888_vm7, %v1225_v42, %v6101_v11  ;;  %v950_v11 = vld [vmem:[#allocation2 + $0x98] sm:$0x1]  ;;  %v5641_v42 = vld [vmem:[#allocation2 + $0x90] sm:$0xff]  ;;  %v2359_v15 = vshrl.u32 %v2047_v62, 16 }
  0x96   : > { %v1408_v8 = vunpack.c.l.b16 %v1230_v59  ;;  %v1261_v24 = vshll.u32 %v950_v11, 16  ;;  %v1269_v59 = vshll.u32 %v951_v38, 16  ;;  %v1268_v11 = vrot.slane %v1266_v58, 4 }
  0x99   : > { %v774_v54 = vpop.f32.mrf.mxu0 }
  0x9a   : > { %5257 = vmatmul.msk.bf16.gmra.mxu1 %vm716_vm4, %v1429_v39  ;;  %v949_v39 = vld [vmem:[#allocation2 + $0x94] sm:$0xf] }
  0x9b   : > { %v1251_v53 = vshll.u32 %v949_v39, 16 }
  0x9c   : > { %5230 = vmatmul.msk.bf16.gmra.mxu0 %vm716_vm4, %v5639_v44  ;;  %v1239_v44 = vrot.slane %v1237_v28, 5  ;;  %v2502_v28 = vunpack.c.l.b16 %v2333_v14  ;;  %v1271_v14 = vrot.slane %v1269_v59, 5 }
  0x9d   : > { %5377 = vmatmul.msk.bf16.gmra.mxu3 %vm716_vm4, %v2522_v47  ;;  %v1242_v47 = vshrl.u32 %v948_v34, 16  ;;  %v6122_v3 = vrot.slane %v1251_v53, 5  ;;  %v2354_v34 = vshll.u32 %v2046_v25, 16  ;;  %v366_v53 = vld [vmem:[%s5851_s24 + $0xbc] sm:$0x1] }
  0x9e   : > { %5350 = vmatmul.msk.bf16.gmra.mxu2 %vm716_vm4, %v5659_v60  ;;  %v1240_v60 = vsel %vm5888_vm7, %v1235_v43, %v1239_v44  ;;  %v952_v43 = vld [vmem:[#allocation2 + $0xa0] sm:$0xf]  ;;  %v365_v44 = vld [vmem:[%s5851_s24 + $0xb8] sm:$0xf] }
  0x9f   : > { %v1244_v63 = vrot.slane %v1242_v47, 4  ;;  %v1409_v9 = vunpack.c.l.b16 %v1240_v60  ;;  %459 = vst.msk [vmem:[#allocation2 + $0xb8] sm:$0xf] %vm379_vm2, %v365_v44  ;;  %v367_v47 = vld [vmem:[%s5851_s24 + $0xc0] sm:$0xf]  ;;  %v1279_v1 = vshrl.u32 %v952_v43, 16 }
  0xa0   : > { %463 = vst.msk [vmem:[#allocation2 + $0xc0] sm:$0xf] %vm379_vm2, %v367_v47  ;;  %v370_v44 = vld [vmem:[%s5851_s24 + $0xcc] sm:$0xf] }
  0xa1   : > { %v1870_v19 = vpop.f32.mrf.mxu2  ;;  %v776_v20 = vpop.f32.mrf.mxu0  ;;  %v1248_v18 = vor.u32 %v1247_v0, %v1244_v63  ;;  %v1431_v27 = vpack.c.b16 %v1409_v9, %v1408_v8  ;;  %v465_v63 = vld [vmem:[#allocation2 + $0xc8] sm:$0x1]  ;;  %v1275_v0 = vshll.u32 %v952_v43, 16  ;;  %v2356_v8 = vrot.slane %v2354_v34, 5  ;;  %468 = vst.msk [vmem:[#allocation2 + $0xcc] sm:$0xf] %vm379_vm2, %v370_v44 }
  0xa2   : > { %v2361_v34 = vrot.slane %v2359_v15, 4 }
  0xa7   : > { %v1507_v32 = vpop.f32.mrf.mxu1 }
  0xa8   : > { %v1587_v36 = vadd.f32 %v1507_v32, %v774_v54  ;;  %v1255_v54 = vshrl.u32 %v949_v39, 16  ;;  %v364_v39 = vld [vmem:[%s5851_s24 + $0xb4] sm:$0xf] }
  0xa9   : > { %v1872_v51 = vpop.f32.mrf.mxu2  ;;  %v779_v52 = vpop.f32.mrf.mxu0  ;;  %458 = vst.msk [vmem:[#allocation2 + $0xb4] sm:$0xf] %vm379_vm2, %v364_v39 }
  0xaa   : > { %5258 = vmatmul.msk.bf16.gmra.mxu1 %vm716_vm4, %v1430_v31  ;;  %v1950_v46 = vadd.f32 %v1870_v19, %v1587_v36  ;;  %v1257_v4 = vrot.slane %v1255_v54, 4  ;;  %v2344_v19 = vshll.u32 %v2045_v5, 16  ;;  %v1249_v31 = vrot.slane %v1248_v18, 4  ;;  %v460_v54 = vld [vmem:[#allocation2 + $0xbc] sm:$0x1] }
  0xab   : > { %v461_v60 = vsel %vm5853_vm3, %v366_v53, %v460_v54  ;;  %v2362_v18 = vshll.u32 %v2047_v62, 16  ;;  %v5642_v54 = vld [vmem:[#allocation2 + $0x9c] sm:$0xff] }
  0xac   : > { %5231 = vmatmul.msk.bf16.gmra.mxu0 %vm716_vm4, %v5640_v41  ;;  %v1258_v23 = vor.u32 %v1257_v4, %v6122_v3  ;;  %v6135_v32 = vrot.slane %v2344_v19, 5  ;;  %462 = vst [vmem:[#allocation2 + $0xbc] sm:$0x1] %v461_v60  ;;  %v466_v4 = vsel %vm5853_vm3, %v369_v61, %v465_v63  ;;  %v372_v61 = vld [vmem:[%s5851_s24 + $0xd4] sm:$0x1] }
  0xad   : > { %5378 = vmatmul.msk.bf16.gmra.mxu3 %vm716_vm4, %v2523_v37  ;;  %v1263_v37 = vrot.slane %v1261_v24, 5  ;;  %467 = vst [vmem:[#allocation2 + $0xc8] sm:$0x1] %v466_v4  ;;  %v1281_v24 = vrot.slane %v1279_v1, 4 }
  0xae   : > { %5351 = vmatmul.msk.bf16.gmra.mxu2 %vm716_vm4, %v5660_v57  ;;  %v1259_v36 = vrot.slane %v1258_v23, 4  ;;  %v1277_v23 = vrot.slane %v1275_v0, 5  ;;  %v5662_v0 = vld [vmem:[#allocation2 + $0xa8] sm:$0xff] }
  0xaf   : > { %v1509_v2 = vpop.f32.mrf.mxu1 }
  0xb0   : > { %v2600_v6 = vpop.f32.mrf.mxu3  ;;  %v1588_v7 = vadd.f32 %v1509_v2, %v776_v20  ;;  %v2348_v20 = vshrl.u32 %v2045_v5, 16  ;;  %v2048_v2 = vld [vmem:[#allocation2 + $0xac] sm:$0xf]  ;;  %v1254_v5 = vsel %vm5888_vm7, %v1249_v31, %v6122_v3  ;;  %v1264_v10 = vsel %vm5888_vm7, %v1259_v36, %v1263_v37  ;;  %v954_v60 = vld [vmem:[#allocation2 + $0xb4] sm:$0xf] }
  0xb1   : > { %v6128_v13 = vadd.f32 %v2600_v6, %v1950_v46  ;;  %v1875_v21 = vpop.f32.mrf.mxu2  ;;  %v6132_v22 = vpop.f32.mrf.mxu0  ;;  %v2524_v46 = vpack.c.b16 %v2502_v28, %v2501_v26  ;;  %v2368_v19 = vshll.u32 %v2048_v2, 16  ;;  %v1411_v26 = vunpack.c.l.b16 %v1264_v10 }
  0xb2   : > { %v1951_v17 = vadd.f32 %v1872_v51, %v1588_v7  ;;  %v2350_v33 = vrot.slane %v2348_v20, 4  ;;  %v2341_v51 = vor.u32 %v2340_v30, %v2337_v29  ;;  %v2372_v20 = vshrl.u32 %v2048_v2, 16 }
  0xb3   : > { %v1272_v31 = vor.u32 %v1271_v14, %v1268_v11  ;;  %v6171_v36 = vrot.slane %v2368_v19, 5  ;;  %v1293_v10 = vshll.u32 %v954_v60, 16  ;;  %v2050_v11 = vld [vmem:[#allocation2 + $0xc0] sm:$0xf] }
  0xb4   : > { %v2342_v6 = vrot.slane %v2341_v51, 4  ;;  %v2374_v37 = vrot.slane %v2372_v20, 4 }
  0xb6   : > { %v2375_v51 = vor.u32 %v2374_v37, %v6171_v36 }
  0xb7   : > { %v1512_v35 = vpop.f32.mrf.mxu1 }
  0xb8   : > { %v2602_v40 = vpop.f32.mrf.mxu3  ;;  %v1589_v41 = vadd.f32 %v1512_v35, %v779_v52  ;;  %v2351_v52 = vor.u32 %v2350_v33, %v6135_v32  ;;  %v2049_v33 = vld [vmem:[#allocation2 + $0xb0] sm:$0x1]  ;;  %v2364_v35 = vrot.slane %v2362_v18, 5  ;;  %v2051_v18 = vld [vmem:[#allocation2 + $0xc4] sm:$0xf] }
  0xb9   : > { %v6140_v45 = vadd.f32 %v2602_v40, %v1951_v17  ;;  %v1877_v56 = vpop.f32.mrf.mxu2  ;;  %v784_v57 = vpop.f32.mrf.mxu0  ;;  %v1282_v40 = vor.u32 %v1281_v24, %v1277_v23  ;;  %v2378_v43 = vshll.u32 %v2049_v33, 16  ;;  %v2396_v33 = vshrl.u32 %v2051_v18, 16 }
  0xba   : > { %5259 = vmatmul.msk.bf16.gmra.mxu1 %vm716_vm4, %v1431_v27  ;;  %v1952_v49 = vadd.f32 %v1875_v21, %v1589_v41  ;;  %v2352_v7 = vrot.slane %v2351_v52, 4  ;;  %v1410_v21 = vunpack.c.l.b16 %v1254_v5  ;;  %v2347_v27 = vsel %vm5888_vm7, %v2342_v6, %v6135_v32 }
  0xbb   : > { %v2503_v38 = vunpack.c.l.b16 %v2347_v27  ;;  %v2380_v1 = vrot.slane %v2378_v43, 5  ;;  %v2376_v6 = vrot.slane %v2375_v51, 4  ;;  %v1295_v27 = vrot.slane %v1293_v10, 5 }
  0xbc   : > { %5232 = vmatmul.msk.bf16.gmra.mxu0 %vm716_vm4, %v5641_v42  ;;  %v2357_v28 = vsel %vm5888_vm7, %v2352_v7, %v2356_v8  ;;  %v1432_v32 = vpack.c.b16 %v1411_v26, %v1410_v21  ;;  %v955_v7 = vld [vmem:[#allocation2 + $0xb8] sm:$0xf] }
  0xbd   : > { %5379 = vmatmul.msk.bf16.gmra.mxu3 %vm716_vm4, %v2524_v46  ;;  %v2504_v39 = vunpack.c.l.b16 %v2357_v28  ;;  %v371_v46 = vld [vmem:[%s5851_s24 + $0xd0] sm:$0xf]  ;;  %v2381_v24 = vsel %vm5888_vm7, %v2376_v6, %v2380_v1  ;;  %v2383_v28 = vshrl.u32 %v2050_v11, 16 }
  0xbe   : > { %5352 = vmatmul.msk.bf16.gmra.mxu2 %vm716_vm4, %v5661_v50  ;;  %v2365_v50 = vor.u32 %v2364_v35, %v2361_v34  ;;  %469 = vst.msk [vmem:[#allocation2 + $0xd0] sm:$0xf] %vm379_vm2, %v371_v46  ;;  %v2398_v46 = vrot.slane %v2396_v33, 4 }
  0xbf   : > { %v1514_v9 = vpop.f32.mrf.mxu1  ;;  %v2525_v53 = vpack.c.b16 %v2504_v39, %v2503_v38  ;;  %v956_v38 = vld [vmem:[#allocation2 + $0xbc] sm:$0x1] }
  0xc0   : > { %v2605_v16 = vpop.f32.mrf.mxu3  ;;  %v1590_v17 = vadd.f32 %v1514_v9, %v6132_v22  ;;  %v953_v22 = vld [vmem:[#allocation2 + $0xa4] sm:$0x1]  ;;  %v2366_v5 = vrot.slane %v2365_v50, 4  ;;  %v1290_v9 = vshrl.u32 %v954_v60, 16  ;;  %v373_v50 = vld [vmem:[%s5851_s24 + $0xd8] sm:$0xf] }
  0xc1   : > { %v6164_v3 = vadd.f32 %v2605_v16, %v1952_v49  ;;  %v1880_v29 = vpop.f32.mrf.mxu2  ;;  %v786_v30 = vpop.f32.mrf.mxu0  ;;  %v1285_v41 = vshll.u32 %v953_v22, 16  ;;  %v1273_v49 = vrot.slane %v1272_v31, 4  ;;  %v1299_v16 = vshll.u32 %v955_v7, 16  ;;  %473 = vst.msk [vmem:[#allocation2 + $0xd8] sm:$0xf] %vm379_vm2, %v373_v50  ;;  %v5643_v60 = vld [vmem:[#allocation2 + $0xb4] sm:$0xff] }
  0xc2   : > { %v1953_v25 = vadd.f32 %v1877_v56, %v1590_v17  ;;  %v1283_v56 = vrot.slane %v1282_v40, 4  ;;  %v1303_v17 = vshrl.u32 %v955_v7, 16  ;;  %v1292_v26 = vrot.slane %v1290_v9, 4 }
  0xc3   : > { %v1287_v58 = vrot.slane %v1285_v41, 5  ;;  %v1278_v4 = vsel %vm5888_vm7, %v1273_v49, %v1277_v23  ;;  %v2371_v23 = vsel %vm5888_vm7, %v2366_v5, %v6171_v36  ;;  %v2392_v31 = vshll.u32 %v2051_v18, 16 }
  0xc4   : > { %v1412_v15 = vunpack.c.l.b16 %v1278_v4  ;;  %v6198_v35 = vrot.slane %v1299_v16, 5  ;;  %v1305_v37 = vrot.slane %v1303_v17, 4  ;;  %v2505_v39 = vunpack.c.l.b16 %v2371_v23  ;;  %v475_v4 = vld [vmem:[#allocation2 + $0xe0] sm:$0x1] }
  0xc5   : > { %v1288_v8 = vsel %vm5888_vm7, %v1283_v56, %v1287_v58  ;;  %v2506_v40 = vunpack.c.l.b16 %v2381_v24  ;;  %v1296_v41 = vor.u32 %v1295_v27, %v1292_v26  ;;  %v6200_v44 = vrot.slane %v2392_v31, 5  ;;  %v374_v56 = vld [vmem:[%s5851_s24 + $0xdc] sm:$0xf]  ;;  %v2054_v18 = vld [vmem:[#allocation2 + $0xd0] sm:$0xf] }
  0xc6   : > { %v1413_v21 = vunpack.c.l.b16 %v1288_v8  ;;  %v1309_v49 = vshll.u32 %v956_v38, 16  ;;  %474 = vst.msk [vmem:[#allocation2 + $0xdc] sm:$0xf] %vm379_vm2, %v374_v56 }
  0xc7   : > { %v1517_v42 = vpop.f32.mrf.mxu1  ;;  %v2399_v1 = vor.u32 %v2398_v46, %v6200_v44 }
  0xc8   : > { %v2607_v47 = vpop.f32.mrf.mxu3  ;;  %v1591_v48 = vadd.f32 %v1517_v42, %v784_v57  ;;  %v470_v57 = vld [vmem:[#allocation2 + $0xd4] sm:$0x1]  ;;  %v1433_v36 = vpack.c.b16 %v1413_v21, %v1412_v15  ;;  %v2385_v42 = vrot.slane %v2383_v28, 4  ;;  %v1311_v8 = vrot.slane %v1309_v49, 5  ;;  %v2053_v15 = vld [vmem:[#allocation2 + $0xcc] sm:$0xf] }
  0xc9   : > { %v6177_v52 = vadd.f32 %v2607_v47, %v1953_v25  ;;  %v1882_v62 = vpop.f32.mrf.mxu2  ;;  %v789_v63 = vpop.f32.mrf.mxu0  ;;  %v471_v2 = vsel %vm5853_vm3, %v372_v61, %v470_v57  ;;  %v1297_v61 = vrot.slane %v1296_v41, 4  ;;  %v2400_v21 = vrot.slane %v2399_v1, 4 }
  0xca   : > { %5260 = vmatmul.msk.bf16.gmra.mxu1 %vm716_vm4, %v1432_v32  ;;  %v1954_v59 = vadd.f32 %v1880_v29, %v1591_v48  ;;  %472 = vst [vmem:[#allocation2 + $0xd4] sm:$0x1] %v471_v2  ;;  %v2386_v29 = vshll.u32 %v2050_v11, 16  ;;  %v2052_v32 = vld [vmem:[#allocation2 + $0xc8] sm:$0x1]  ;;  %v1306_v48 = vor.u32 %v1305_v37, %v6198_v35  ;;  %v5663_v11 = vld [vmem:[#allocation2 + $0xc0] sm:$0xff] }
  0xcb   : > { %v2402_v57 = vshll.u32 %v2052_v32, 16  ;;  %v958_v2 = vld [vmem:[#allocation2 + $0xc4] sm:$0xf]  ;;  %v2407_v28 = vshrl.u32 %v2053_v15, 16  ;;  %v2420_v37 = vshrl.u32 %v2054_v18, 16 }
  0xcc   : > { %5233 = vmatmul.msk.bf16.gmra.mxu0 %vm716_vm4, %v5642_v54  ;;  %v2388_v43 = vrot.slane %v2386_v29, 5  ;;  %v957_v54 = vld [vmem:[#allocation2 + $0xc0] sm:$0xf]  ;;  %v1307_v7 = vrot.slane %v1306_v48, 4  ;;  %v1323_v16 = vshll.u32 %v958_v2, 16  ;;  %v1327_v17 = vshrl.u32 %v958_v2, 16 }
  0xcd   : > { %5380 = vmatmul.msk.bf16.gmra.mxu3 %vm716_vm4, %v2525_v53  ;;  %v1314_v9 = vshrl.u32 %v957_v54, 16  ;;  %v2404_v23 = vrot.slane %v2402_v57, 5 }
  0xce   : > { %5353 = vmatmul.msk.bf16.gmra.mxu2 %vm716_vm4, %v5662_v0  ;;  %v2389_v0 = vor.u32 %v2388_v43, %v2385_v42  ;;  %v1312_v26 = vsel %vm5888_vm7, %v1307_v7, %v1311_v8 }
  0xcf   : > { %v1519_v14 = vpop.f32.mrf.mxu1  ;;  %v1316_v27 = vrot.slane %v1314_v9, 4  ;;  %v1415_v41 = vunpack.c.l.b16 %v1312_v26  ;;  %v2405_v42 = vsel %vm5888_vm7, %v2400_v21, %v2404_v23  ;;  %v5644_v9 = vld [vmem:[#allocation2 + $0xc0] sm:$0xff] }
  0xd0   : > { %v2610_v19 = vpop.f32.mrf.mxu3  ;;  %v1592_v20 = vadd.f32 %v1519_v14, %v786_v30  ;;  %v1317_v14 = vshll.u32 %v957_v54, 16  ;;  %v2508_v56 = vunpack.c.l.b16 %v2405_v42 }
  0xd1   : > { %v6196_v25 = vadd.f32 %v2610_v19, %v1954_v59  ;;  %v1885_v30 = vpop.f32.mrf.mxu2  ;;  %v791_v34 = vpop.f32.mrf.mxu0  ;;  %v2526_v59 = vpack.c.b16 %v2506_v40, %v2505_v39  ;;  %v1302_v19 = vsel %vm5888_vm7, %v1297_v61, %v6198_v35  ;;  %v1329_v39 = vrot.slane %v1327_v17, 4  ;;  %v2055_v49 = vld [vmem:[#allocation2 + $0xd4] sm:$0x1] }
  0xd2   : > { %v1955_v22 = vadd.f32 %v1882_v62, %v1592_v20  ;;  %v2390_v20 = vrot.slane %v2389_v0, 4  ;;  %v1319_v33 = vrot.slane %v1317_v14, 5  ;;  %v1414_v35 = vunpack.c.l.b16 %v1302_v19  ;;  %v5664_v19 = vld [vmem:[#allocation2 + $0xcc] sm:$0xff] }
  0xd3   : > { %v2426_v57 = vshll.u32 %v2055_v49, 16 }
  0xd4   : > { %v2395_v32 = vsel %vm5888_vm7, %v2390_v20, %v6200_v44  ;;  %v1320_v48 = vor.u32 %v1319_v33, %v1316_v27  ;;  %v1434_v44 = vpack.c.b16 %v1415_v41, %v1414_v35  ;;  %v961_v27 = vld [vmem:[#allocation2 + $0xd0] sm:$0xf] }
  0xd5   : > { %v2507_v54 = vunpack.c.l.b16 %v2395_v32  ;;  %v2428_v20 = vrot.slane %v2426_v57, 5  ;;  %v1351_v35 = vshrl.u32 %v961_v27, 16 }
  0xd6   : > { %v1321_v2 = vrot.slane %v1320_v48, 4 }
  0xd7   : > { %v1522_v47 = vpop.f32.mrf.mxu1  ;;  %v2527_v8 = vpack.c.b16 %v2508_v56, %v2507_v54 }
  0xd8   : > { %v2612_v51 = vpop.f32.mrf.mxu3  ;;  %v1593_v53 = vadd.f32 %v1522_v47, %v789_v63  ;;  %v375_v63 = vld [vmem:[%s5851_s24 + $0xe0] sm:$0x1]  ;;  %v2409_v47 = vrot.slane %v2407_v28, 4 }
  0xd9   : > { %v6206_v58 = vadd.f32 %v2612_v51, %v1955_v22  ;;  %v1887_v5 = vpop.f32.mrf.mxu2  ;;  %v794_v6 = vpop.f32.mrf.mxu0  ;;  %v476_v10 = vsel %vm5853_vm3, %v375_v63, %v475_v4  ;;  %v2410_v22 = vshll.u32 %v2053_v15, 16  ;;  %v960_v15 = vld [vmem:[#allocation2 + $0xcc] sm:$0xf] }
  0xda   : > { %5261 = vmatmul.msk.bf16.gmra.mxu1 %vm716_vm4, %v1433_v36  ;;  %v1956_v62 = vadd.f32 %v1885_v30, %v1593_v53  ;;  %477 = vst [vmem:[#allocation2 + $0xe0] sm:$0x1] %v476_v10  ;;  %v2416_v30 = vshll.u32 %v2054_v18, 16  ;;  %v1325_v36 = vrot.slane %v1323_v16, 5  ;;  %v2422_v53 = vrot.slane %v2420_v37, 4 }
  0xdb   : > { %v2412_v50 = vrot.slane %v2410_v22, 5  ;;  %v480_v16 = vld [vmem:[#allocation2 + $0xec] sm:$0x1]  ;;  %v1338_v22 = vshrl.u32 %v960_v15, 16  ;;  %v1347_v37 = vshll.u32 %v961_v27, 16 }
  0xdc   : > { %5234 = vmatmul.msk.bf16.gmra.mxu0 %vm716_vm4, %v5643_v60  ;;  %v6229_v51 = vrot.slane %v2416_v30, 5  ;;  %v1326_v23 = vsel %vm5888_vm7, %v1321_v2, %v1325_v36 }
  0xdd   : > { %5381 = vmatmul.msk.bf16.gmra.mxu3 %vm716_vm4, %v2526_v59  ;;  %v1330_v59 = vor.u32 %v1329_v39, %v1325_v36  ;;  %v2413_v63 = vor.u32 %v2412_v50, %v2409_v47  ;;  %v1416_v30 = vunpack.c.l.b16 %v1326_v23  ;;  %v2057_v39 = vld [vmem:[#allocation2 + $0xdc] sm:$0xf] }
  0xde   : > { %5354 = vmatmul.msk.bf16.gmra.mxu2 %vm716_vm4, %v5663_v11  ;;  %v2423_v4 = vor.u32 %v2422_v53, %v6229_v51  ;;  %v2440_v53 = vshll.u32 %v2057_v39, 16  ;;  %v2444_v54 = vshrl.u32 %v2057_v39, 16 }
  0xdf   : > { %v1524_v24 = vpop.f32.mrf.mxu1  ;;  %v1331_v10 = vrot.slane %v1330_v59, 4  ;;  %v1349_v59 = vrot.slane %v1347_v37, 5 }
  0xe0   : > { %v2615_v29 = vpop.f32.mrf.mxu3  ;;  %v1594_v31 = vadd.f32 %v1524_v24, %v791_v34  ;;  %v959_v34 = vld [vmem:[#allocation2 + $0xc8] sm:$0x1]  ;;  %v2414_v24 = vrot.slane %v2413_v63, 4  ;;  %v2424_v26 = vrot.slane %v2423_v4, 4  ;;  %v6256_v63 = vrot.slane %v2440_v53, 5 }
  0xe1   : > { %v6222_v38 = vadd.f32 %v2615_v29, %v1956_v62  ;;  %v1890_v43 = vpop.f32.mrf.mxu2  ;;  %v796_v46 = vpop.f32.mrf.mxu0  ;;  %v1333_v60 = vshll.u32 %v959_v34, 16  ;;  %v376_v62 = vld [vmem:[%s5851_s24 + $0xe4] sm:$0xf]  ;;  %v1341_v29 = vshll.u32 %v960_v15, 16  ;;  %v2446_v4 = vrot.slane %v2444_v54, 4 }
  0xe2   : > { %v1957_v40 = vadd.f32 %v1887_v5, %v1594_v31  ;;  %v377_v5 = vld [vmem:[%s5851_s24 + $0xe8] sm:$0xf]  ;;  %478 = vst.msk [vmem:[#allocation2 + $0xe4] sm:$0xf] %vm379_vm2, %v376_v62  ;;  %v2056_v31 = vld [vmem:[#allocation2 + $0xd8] sm:$0xf]  ;;  %v2419_v32 = vsel %vm5888_vm7, %v2414_v24, %v6229_v51  ;;  %v2429_v42 = vsel %vm5888_vm7, %v2424_v26, %v2428_v20 }
  0xe3   : > { %v1335_v11 = vrot.slane %v1333_v60, 5  ;;  %479 = vst.msk [vmem:[#allocation2 + $0xe8] sm:$0xf] %vm379_vm2, %v377_v5  ;;  %v1343_v47 = vrot.slane %v1341_v29, 5  ;;  %v2431_v48 = vshrl.u32 %v2056_v31, 16  ;;  %v2434_v50 = vshll.u32 %v2056_v31, 16 }
  0xe4   : > { %v1353_v60 = vrot.slane %v1351_v35, 4  ;;  %v2509_v57 = vunpack.c.l.b16 %v2419_v32  ;;  %v2510_v51 = vunpack.c.l.b16 %v2429_v42  ;;  %v2447_v23 = vor.u32 %v2446_v4, %v6256_v63  ;;  %v964_v24 = vld [vmem:[#allocation2 + $0xdc] sm:$0xf] }
  0xe5   : > { %v1336_v28 = vsel %vm5888_vm7, %v1331_v10, %v1335_v11  ;;  %v2436_v2 = vrot.slane %v2434_v50, 5  ;;  %v5665_v31 = vld [vmem:[#allocation2 + $0xd8] sm:$0xff]  ;;  %v1375_v37 = vshrl.u32 %v964_v24, 16 }
  0xe6   : > { %v1417_v41 = vunpack.c.l.b16 %v1336_v28 }
  0xe7   : > { %v1527_v61 = vpop.f32.mrf.mxu1 }
  0xe8   : > { %v2617_v0 = vpop.f32.mrf.mxu3  ;;  %v1595_v1 = vadd.f32 %v1527_v61, %v794_v6  ;;  %v378_v6 = vld [vmem:[%s5851_s24 + $0xec] sm:$0x1]  ;;  %v1435_v61 = vpack.c.b16 %v1417_v41, %v1416_v30  ;;  %v1371_v30 = vshll.u32 %v964_v24, 16 }
  0xe9   : > { %v6235_v7 = vadd.f32 %v2617_v0, %v1957_v40  ;;  %v1892_v17 = vpop.f32.mrf.mxu2  ;;  %v799_v18 = vpop.f32.mrf.mxu0  ;;  %v481_v21 = vsel %vm5853_vm3, %v378_v6, %v480_v16  ;;  %v2058_v0 = vld [vmem:[#allocation2 + $0xe0] sm:$0x1]  ;;  %v2528_v6 = vpack.c.b16 %v2510_v51, %v2509_v57 }
  0xea   : > { %5262 = vmatmul.msk.bf16.gmra.mxu1 %vm716_vm4, %v1434_v44  ;;  %v1958_v14 = vadd.f32 %v1890_v43, %v1595_v1  ;;  %482 = vst [vmem:[#allocation2 + $0xec] sm:$0x1] %v481_v21  ;;  %v1340_v43 = vrot.slane %v1338_v22, 4  ;;  %v962_v44 = vld [vmem:[#allocation2 + $0xd4] sm:$0x1]  ;;  %v2433_v1 = vrot.slane %v2431_v48, 4 }
  0xeb   : > { %v2450_v16 = vshll.u32 %v2058_v0, 16  ;;  %v2060_v35 = vld [vmem:[#allocation2 + $0xe8] sm:$0xf] }
  0xec   : > { %5235 = vmatmul.msk.bf16.gmra.mxu0 %vm716_vm4, %v5644_v9  ;;  %v1344_v62 = vor.u32 %v1343_v47, %v1340_v43  ;;  %v1357_v9 = vshll.u32 %v962_v44, 16  ;;  %v2437_v21 = vor.u32 %v2436_v2, %v2433_v1  ;;  %v2464_v54 = vshll.u32 %v2060_v35, 16 }
  0xed   : > { %5382 = vmatmul.msk.bf16.gmra.mxu3 %vm716_vm4, %v2527_v8  ;;  %v1354_v8 = vor.u32 %v1353_v60, %v1349_v59  ;;  %v2452_v41 = vrot.slane %v2450_v16, 5  ;;  %v1373_v44 = vrot.slane %v1371_v30, 5  ;;  %v5646_v30 = vld [vmem:[#allocation2 + $0xd8] sm:$0xff] }
  0xee   : > { %5355 = vmatmul.msk.bf16.gmra.mxu2 %vm716_vm4, %v5664_v19  ;;  %v5645_v19 = vld [vmem:[#allocation2 + $0xcc] sm:$0xff]  ;;  %v1345_v20 = vrot.slane %v1344_v62, 4  ;;  %v1359_v22 = vrot.slane %v1357_v9, 5 }
  0xef   : > { %v1529_v33 = vpop.f32.mrf.mxu1  ;;  %v1355_v28 = vrot.slane %v1354_v8, 4 }
  0xf0   : > { %v2620_v36 = vpop.f32.mrf.mxu3  ;;  %v1596_v40 = vadd.f32 %v1529_v33, %v796_v46  ;;  %v2059_v33 = vld [vmem:[#allocation2 + $0xe4] sm:$0xf]  ;;  %v1350_v39 = vsel %vm5888_vm7, %v1345_v20, %v1349_v59 }
  0xf1   : > { %v6254_v34 = vadd.f32 %v2620_v36, %v1958_v14  ;;  %v1895_v46 = vpop.f32.mrf.mxu2  ;;  %v801_v56 = vpop.f32.mrf.mxu0  ;;  %v963_v14 = vld [vmem:[#allocation2 + $0xd8] sm:$0xf]  ;;  %v2438_v36 = vrot.slane %v2437_v21, 4  ;;  %v1360_v42 = vsel %vm5888_vm7, %v1355_v28, %v1359_v22  ;;  %v2455_v48 = vshrl.u32 %v2059_v33, 16 }
  0xf2   : > { %v1959_v49 = vadd.f32 %v1892_v17, %v1596_v40  ;;  %v1362_v29 = vshrl.u32 %v963_v14, 16  ;;  %v2448_v40 = vrot.slane %v2447_v23, 4  ;;  %v2458_v53 = vshll.u32 %v2059_v33, 16 }
  0xf3   : > { %v1418_v59 = vunpack.c.l.b16 %v1350_v39  ;;  %v1419_v51 = vunpack.c.l.b16 %v1360_v42  ;;  %v2443_v62 = vsel %vm5888_vm7, %v2438_v36, %v6256_v63  ;;  %v2457_v8 = vrot.slane %v2455_v48, 4  ;;  %v5666_v36 = vld [vmem:[#allocation2 + $0xe4] sm:$0xff]  ;;  %v3108_v42 = vld [vmem:[#allocation2 + $0x40] sm:$0xf] }
  0xf4   : > { %v1364_v43 = vrot.slane %v1362_v29, 4  ;;  %v2453_v0 = vsel %vm5888_vm7, %v2448_v40, %v2452_v41  ;;  %v2460_v9 = vrot.slane %v2458_v53, 5 }
  0xf7   : > { %v1532_v5 = vpop.f32.mrf.mxu1 }
  0xf8   : > { %v2622_v10 = vpop.f32.mrf.mxu3  ;;  %v1597_v11 = vadd.f32 %v1532_v5, %v799_v18  ;;  %v1365_v18 = vshll.u32 %v963_v14, 16  ;;  %v2061_v5 = vld [vmem:[#allocation2 + $0xec] sm:$0x1]  ;;  %v2511_v14 = vunpack.c.l.b16 %v2443_v62 }
  0xf9   : > { %v6258_v15 = vadd.f32 %v2622_v10, %v1959_v49  ;;  %v1897_v26 = vpop.f32.mrf.mxu2  ;;  %v804_v27 = vpop.f32.mrf.mxu0  ;;  %v2466_v10 = vrot.slane %v2464_v54, 5  ;;  %v2474_v21 = vshll.u32 %v2061_v5, 16  ;;  %v3197_v54 = vshll.u32 %v3108_v42, 16 }
  0xfa   : > { %5263 = vmatmul.msk.bf16.gmra.mxu1 %vm716_vm4, %v1435_v61  ;;  %v1960_v17 = vadd.f32 %v1895_v46, %v1597_v11  ;;  %v1367_v47 = vrot.slane %v1365_v18, 5  ;;  %v2468_v46 = vshrl.u32 %v2060_v35, 16  ;;  %v1377_v61 = vrot.slane %v1375_v37, 4  ;;  %v3107_v37 = vld [vmem:[#allocation2 + $0x3c] sm:$0xf] }
  0xfb   : > { %v3191_v48 = vshll.u32 %v3107_v37, 16 }
  0xfc   : > { %5236 = vmatmul.msk.bf16.gmra.mxu0 %vm716_vm4, %v5645_v19  ;;  %v1368_v4 = vor.u32 %v1367_v47, %v1364_v43  ;;  %v2470_v11 = vrot.slane %v2468_v46, 4  ;;  %v1378_v16 = vor.u32 %v1377_v61, %v1373_v44  ;;  %v1436_v19 = vpack.c.b16 %v1419_v51, %v1418_v59  ;;  %v4201_v59 = vld [vmem:[#allocation2 + $0x4c] sm:$0xf] }
  0xfd   : > { %5383 = vmatmul.msk.bf16.gmra.mxu3 %vm716_vm4, %v2528_v6  ;;  %v2512_v6 = vunpack.c.l.b16 %v2453_v0  ;;  %v3188_v47 = vshrl.u32 %v3107_v37, 16  ;;  %v3201_v46 = vshrl.u32 %v3108_v42, 16  ;;  %v3110_v37 = vld [vmem:[#allocation2 + $0x48] sm:$0xf] }
  0xfe   : > { %5356 = vmatmul.msk.bf16.gmra.mxu2 %vm716_vm4, %v5665_v31  ;;  %v1369_v24 = vrot.slane %v1368_v4, 4  ;;  %v2471_v28 = vor.u32 %v2470_v11, %v2466_v10  ;;  %v1379_v18 = vrot.slane %v1378_v16, 4  ;;  %v4294_v11 = vshrl.u32 %v4201_v59, 16 }
  0xff   : > { %v1534_v32 = vpop.f32.mrf.mxu1  ;;  %v2529_v29 = vpack.c.b16 %v2512_v6, %v2511_v14  ;;  %v3199_v6 = vrot.slane %v3197_v54, 5  ;;  %v3203_v16 = vrot.slane %v3201_v46, 4  ;;  %v3212_v54 = vshrl.u32 %v3110_v37, 16  ;;  %v5691_v46 = vld [vmem:[#allocation2 + $0x48] sm:$0xff] }
 0x100   : > { %v2625_v49 = vpop.f32.mrf.mxu3  ;;  %v1598_v50 = vadd.f32 %v1534_v32, %v801_v56  ;;  %v965_v56 = vld [vmem:[#allocation2 + $0xe0] sm:$0x1]  ;;  %v1374_v40 = vsel %vm5888_vm7, %v1369_v24, %v1373_v44  ;;  %v2472_v41 = vrot.slane %v2471_v28, 4  ;;  %v2476_v32 = vrot.slane %v2474_v21, 5 }
 0x101   : > { %v6269_v60 = vadd.f32 %v2625_v49, %v1960_v17  ;;  %v1900_v1 = vpop.f32.mrf.mxu2  ;;  %v806_v2 = vpop.f32.mrf.mxu0  ;;  %v1381_v17 = vshll.u32 %v965_v56, 16  ;;  %v4200_v49 = vld [vmem:[#allocation2 + $0x48] sm:$0xf]  ;;  %v1420_v53 = vunpack.c.l.b16 %v1374_v40  ;;  %v3190_v56 = vrot.slane %v3188_v47, 4  ;;  %v3111_v47 = vld [vmem:[#allocation2 + $0x4c] sm:$0xf] }
 0x102   : > { %v1961_v57 = vadd.f32 %v1897_v26, %v1598_v50  ;;  %v2461_v26 = vor.u32 %v2460_v9, %v2457_v8  ;;  %v2477_v62 = vsel %vm5888_vm7, %v2472_v41, %v2476_v32  ;;  %v4281_v4 = vshrl.u32 %v4200_v49, 16  ;;  %v5671_v41 = vld [vmem:[#allocation2 + $0x3c] sm:$0xff] }
 0x103   : > { %v1383_v31 = vrot.slane %v1381_v17, 5  ;;  %v4284_v8 = vshll.u32 %v4200_v49, 16  ;;  %v4290_v9 = vshll.u32 %v4201_v59, 16  ;;  %v3109_v17 = vld [vmem:[#allocation2 + $0x44] sm:$0x1]  ;;  %v4296_v28 = vrot.slane %v4294_v11, 4 }
 0x104   : > { %v4203_v59 = vld [vmem:[#allocation2 + $0x54] sm:$0xf] }
 0x105   : > { %v1384_v43 = vsel %vm5888_vm7, %v1379_v18, %v1383_v31  ;;  %v4286_v24 = vrot.slane %v4284_v8, 5  ;;  %v3204_v18 = vor.u32 %v3203_v16, %v3199_v6  ;;  %v3207_v31 = vshll.u32 %v3109_v17, 16 }
 0x106   : > { %v3214_v8 = vrot.slane %v3212_v54, 4  ;;  %v4305_v11 = vshrl.u32 %v4203_v59, 16  ;;  %v4308_v17 = vshll.u32 %v4203_v59, 16 }
 0x107   : > { %v1537_v20 = vpop.f32.mrf.mxu1 }
 0x108   : > { %v2627_v63 = vpop.f32.mrf.mxu3  ;;  %v1599_v23 = vadd.f32 %v1537_v20, %v804_v27  ;;  %v2462_v27 = vrot.slane %v2461_v26, 4  ;;  %v6292_v26 = vrot.slane %v4290_v9, 5 }
 0x109   : > { %v6276_v22 = vadd.f32 %v2627_v63, %v1961_v57  ;;  %v1902_v35 = vpop.f32.mrf.mxu2  ;;  %v809_v39 = vpop.f32.mrf.mxu0  ;;  %v1421_v57 = vunpack.c.l.b16 %v1384_v43  ;;  %v4202_v63 = vld [vmem:[#allocation2 + $0x50] sm:$0x1] }
 0x10a   : > { %5264 = vmatmul.msk.bf16.gmra.mxu1 %vm716_vm4, %v1436_v19  ;;  %v1962_v33 = vadd.f32 %v1900_v1, %v1599_v23  ;;  %v2467_v51 = vsel %vm5888_vm7, %v2462_v27, %v2466_v10  ;;  %v3193_v1 = vrot.slane %v3191_v48, 5  ;;  %v2514_v10 = vunpack.c.l.b16 %v2477_v62 }
 0x10b   : > { %v1437_v19 = vpack.c.b16 %v1421_v57, %v1420_v53  ;;  %v2513_v20 = vunpack.c.l.b16 %v2467_v51  ;;  %v4283_v23 = vrot.slane %v4281_v4, 4  ;;  %v4300_v40 = vshll.u32 %v4202_v63, 16  ;;  %v4204_v57 = vld [vmem:[#allocation2 + $0x58] sm:$0xf] }
 0x10c   : > { %5237 = vmatmul.msk.bf16.gmra.mxu0 %vm716_vm4, %v5646_v30  ;;  %v3194_v21 = vor.u32 %v3193_v1, %v3190_v56  ;;  %v4297_v43 = vor.u32 %v4296_v28, %v6292_v26  ;;  %v3209_v53 = vrot.slane %v3207_v31, 5 }
 0x10d   : > { %5384 = vmatmul.msk.bf16.gmra.mxu3 %vm716_vm4, %v2529_v29  ;;  %v4287_v42 = vor.u32 %v4286_v24, %v4283_v23  ;;  %v4302_v1 = vrot.slane %v4300_v40, 5 }
 0x10e   : > { %5357 = vmatmul.msk.bf16.gmra.mxu2 %vm716_vm4, %v5666_v36  ;;  %v2530_v36 = vpack.c.b16 %v2514_v10, %v2513_v20  ;;  %v3195_v32 = vrot.slane %v3194_v21, 4  ;;  %v4298_v56 = vrot.slane %v4297_v43, 4  ;;  %v4318_v20 = vshrl.u32 %v4204_v57, 16 }
 0x10f   : > { %v1539_v50 = vpop.f32.mrf.mxu1  ;;  %v4288_v62 = vrot.slane %v4287_v42, 4 }
 0x110   : > { %v2630_v44 = vpop.f32.mrf.mxu3  ;;  %v1600_v61 = vadd.f32 %v1539_v50, %v806_v2  ;;  %v3205_v50 = vrot.slane %v3204_v18, 4  ;;  %v3200_v51 = vsel %vm5888_vm7, %v3195_v32, %v3199_v6 }
 0x111   : > { %v6290_v0 = vadd.f32 %v2630_v44, %v1962_v33  ;;  %v1905_v14 = vpop.f32.mrf.mxu2  ;;  %v811_v2 = vpop.f32.mrf.mxu0  ;;  %v3221_v44 = vshll.u32 %v3111_v47, 16  ;;  %v3576_v6 = vunpack.c.l.b16 %v3200_v51  ;;  %v4293_v28 = vsel %vm5888_vm7, %v4288_v62, %v6292_v26  ;;  %v5672_v62 = vld [vmem:[#allocation2 + $0x48] sm:$0xff] }
 0x112   : > { %v1963_v5 = vadd.f32 %v1902_v35, %v1600_v61  ;;  %v3225_v61 = vshrl.u32 %v3111_v47, 16 }
 0x113   : > { %v3223_v21 = vrot.slane %v3221_v44, 5 }
 0x114   : > { %v3227_v63 = vrot.slane %v3225_v61, 4 }
 0x116   : > { %v3228_v42 = vor.u32 %v3227_v63, %v3223_v21 }
 0x117   : > { %v1542_v29 = vpop.f32.mrf.mxu1 }
 0x118   : > { %v2632_v33 = vpop.f32.mrf.mxu3  ;;  %v1601_v30 = vadd.f32 %v1542_v29, %v809_v39  ;;  %v3215_v39 = vshll.u32 %v3110_v37, 16  ;;  %v4303_v29 = vsel %vm5888_vm7, %v4298_v56, %v4302_v1  ;;  %v4307_v37 = vrot.slane %v4305_v11, 4  ;;  %v3113_v56 = vld [vmem:[#allocation2 + $0x54] sm:$0xf] }
 0x119   : > { %v6294_v35 = vadd.f32 %v2632_v33, %v1963_v5  ;;  %v1907_v48 = vpop.f32.mrf.mxu2  ;;  %v814_v49 = vpop.f32.mrf.mxu0  ;;  %v3210_v5 = vsel %vm5888_vm7, %v3205_v50, %v3209_v53  ;;  %v4670_v32 = vunpack.c.l.b16 %v4303_v29  ;;  %v3229_v61 = vrot.slane %v3228_v42, 4 }
 0x11a   : > { %5265 = vmatmul.msk.bf16.gmra.mxu1 %vm716_vm4, %v1437_v19  ;;  %v1964_v27 = vadd.f32 %v1905_v14, %v1601_v30  ;;  %v3217_v9 = vrot.slane %v3215_v39, 5  ;;  %v4314_v19 = vshll.u32 %v4204_v57, 16  ;;  %v3577_v24 = vunpack.c.l.b16 %v3210_v5  ;;  %v4205_v30 = vld [vmem:[#allocation2 + $0x5c] sm:$0x1]  ;;  %v5692_v5 = vld [vmem:[#allocation2 + $0x54] sm:$0xff] }
 0x11b   : > { %v4324_v50 = vshll.u32 %v4205_v30, 16 }
 0x11c   : > { %5462 = vmatmul.msk.bf16.vlgmr.msrb.gmra.mxu0 %vm716_vm4, %v5671_v41  ;;  %v3218_v33 = vor.u32 %v3217_v9, %v3214_v8  ;;  %v4316_v40 = vrot.slane %v4314_v19, 5  ;;  %v4669_v41 = vunpack.c.l.b16 %v4293_v28  ;;  %v3608_v47 = vpack.c.b16 %v3577_v24, %v3576_v6  ;;  %v4207_v28 = vld [vmem:[#allocation2 + $0x64] sm:$0xf] }
 0x11d   : > { %5385 = vmatmul.msk.bf16.gmra.mxu3 %vm716_vm4, %v2530_v36  ;;  %v4310_v36 = vrot.slane %v4308_v17, 5  ;;  %v4326_v11 = vrot.slane %v4324_v50, 5  ;;  %v3236_v17 = vshrl.u32 %v3113_v56, 16  ;;  %v3239_v19 = vshll.u32 %v3113_v56, 16 }
 0x11e   : > { %5582 = vmatmul.msk.bf16.vlgmr.msrb.gmra.mxu2 %vm716_vm4, %v5691_v46  ;;  %v3219_v54 = vrot.slane %v3218_v33, 4  ;;  %v4701_v44 = vpack.c.b16 %v4670_v32, %v4669_v41  ;;  %v4338_v42 = vshll.u32 %v4207_v28, 16 }
 0x11f   : > { %v1544_v4 = vpop.f32.mrf.mxu1  ;;  %v4311_v39 = vor.u32 %v4310_v36, %v4307_v37  ;;  %v3238_v37 = vrot.slane %v3236_v17, 4  ;;  %v3241_v36 = vrot.slane %v3239_v19, 5  ;;  %v5673_v17 = vld [vmem:[#allocation2 + $0x54] sm:$0xff] }
 0x120   : > { %v2635_v14 = vpop.f32.mrf.mxu3  ;;  %v1602_v16 = vadd.f32 %v1544_v4, %v811_v2  ;;  %v3112_v2 = vld [vmem:[#allocation2 + $0x50] sm:$0x1]  ;;  %v3224_v8 = vsel %vm5888_vm7, %v3219_v54, %v3223_v21 }
 0x121   : > { %v6305_v10 = vadd.f32 %v2635_v14, %v1964_v27  ;;  %v1910_v18 = vpop.f32.mrf.mxu2  ;;  %v816_v31 = vpop.f32.mrf.mxu0  ;;  %v4320_v27 = vrot.slane %v4318_v20, 4  ;;  %v3231_v43 = vshll.u32 %v3112_v2, 16  ;;  %v3114_v14 = vld [vmem:[#allocation2 + $0x58] sm:$0xf]  ;;  %v4206_v20 = vld [vmem:[#allocation2 + $0x60] sm:$0xf]  ;;  %v3578_v63 = vunpack.c.l.b16 %v3224_v8 }
 0x122   : > { %v1965_v23 = vadd.f32 %v1907_v48, %v1602_v16  ;;  %v3249_v24 = vshrl.u32 %v3114_v14, 16  ;;  %v4332_v32 = vshll.u32 %v4206_v20, 16 }
 0x123   : > { %v4321_v46 = vor.u32 %v4320_v27, %v4316_v40  ;;  %v3233_v57 = vrot.slane %v3231_v43, 5  ;;  %v4329_v27 = vshrl.u32 %v4206_v20, 16  ;;  %v4342_v43 = vshrl.u32 %v4207_v28, 16 }
 0x124   : > { %v3251_v50 = vrot.slane %v3249_v24, 4 }
 0x125   : > { %v4322_v9 = vrot.slane %v4321_v46, 4  ;;  %v3234_v16 = vsel %vm5888_vm7, %v3229_v61, %v3233_v57  ;;  %v4208_v46 = vld [vmem:[#allocation2 + $0x68] sm:$0x1]  ;;  %v4334_v61 = vrot.slane %v4332_v32, 5  ;;  %v6328_v57 = vrot.slane %v4338_v42, 5 }
 0x126   : > { %v3579_v2 = vunpack.c.l.b16 %v3234_v16 }
 0x127   : > { %v1547_v48 = vpop.f32.mrf.mxu1  ;;  %v4327_v33 = vsel %vm5888_vm7, %v4322_v9, %v4326_v11 }
 0x128   : > { %v2637_v26 = vpop.f32.mrf.mxu3  ;;  %v1603_v53 = vadd.f32 %v1547_v48, %v814_v49  ;;  %v4312_v49 = vrot.slane %v4311_v39, 4  ;;  %v3242_v39 = vor.u32 %v3241_v36, %v3238_v37  ;;  %v4210_v36 = vld [vmem:[#allocation2 + $0x70] sm:$0xf] }
 0x129   : > { %v6312_v59 = vadd.f32 %v2637_v26, %v1965_v23  ;;  %v1912_v1 = vpop.f32.mrf.mxu2  ;;  %v819_v4 = vpop.f32.mrf.mxu0  ;;  %v3245_v23 = vshll.u32 %v3114_v14, 16  ;;  %v3115_v26 = vld [vmem:[#allocation2 + $0x5c] sm:$0x1]  ;;  %v4348_v14 = vshll.u32 %v4208_v46, 16  ;;  %v4362_v46 = vshll.u32 %v4210_v36, 16 }
 0x12a   : > { %5490 = vmatmul.msk.bf16.vlgmr.msrb.gmra.mxu1 %vm716_vm4, %v3608_v47  ;;  %v1966_v51 = vadd.f32 %v1910_v18, %v1603_v53  ;;  %v4317_v18 = vsel %vm5888_vm7, %v4312_v49, %v4316_v40  ;;  %v3609_v53 = vpack.c.b16 %v3579_v2, %v3578_v63  ;;  %v4672_v40 = vunpack.c.l.b16 %v4327_v33  ;;  %v3116_v49 = vld [vmem:[#allocation2 + $0x60] sm:$0xf]  ;;  %v3117_v63 = vld [vmem:[#allocation2 + $0x64] sm:$0xf] }
 0x12b   : > { %v3247_v48 = vrot.slane %v3245_v23, 5  ;;  %v4671_v54 = vunpack.c.l.b16 %v4317_v18  ;;  %v3243_v19 = vrot.slane %v3242_v39, 4  ;;  %v5693_v2 = vld [vmem:[#allocation2 + $0x60] sm:$0xff]  ;;  %v4209_v18 = vld [vmem:[#allocation2 + $0x6c] sm:$0xf]  ;;  %v3269_v33 = vshll.u32 %v3117_v63, 16 }
 0x12c   : > { %5463 = vmatmul.msk.bf16.gmra.mxu0 %vm716_vm4, %v5672_v62  ;;  %v3273_v37 = vshrl.u32 %v3117_v63, 16  ;;  %v4350_v42 = vrot.slane %v4348_v14, 5  ;;  %v4356_v39 = vshll.u32 %v4209_v18, 16 }
 0x12d   : > { %5610 = vmatmul.msk.bf16.vlgmr.msrb.gmra.mxu3 %vm716_vm4, %v4701_v44  ;;  %v4331_v44 = vrot.slane %v4329_v27, 4  ;;  %v3252_v56 = vor.u32 %v3251_v50, %v3247_v48  ;;  %v4702_v11 = vpack.c.b16 %v4672_v40, %v4671_v54  ;;  %v3248_v27 = vsel %vm5888_vm7, %v3243_v19, %v3247_v48 }
 0x12e   : > { %5583 = vmatmul.msk.bf16.gmra.mxu2 %vm716_vm4, %v5692_v5  ;;  %v3580_v48 = vunpack.c.l.b16 %v3248_v27 }
 0x12f   : > { %v1549_v6 = vpop.f32.mrf.mxu1  ;;  %v4335_v20 = vor.u32 %v4334_v61, %v4331_v44  ;;  %v3253_v28 = vrot.slane %v3252_v56, 4  ;;  %v4366_v44 = vshrl.u32 %v4210_v36, 16 }
 0x130   : > { %v2640_v21 = vpop.f32.mrf.mxu3  ;;  %v1604_v29 = vadd.f32 %v1549_v6, %v816_v31 }
 0x131   : > { %v6326_v30 = vadd.f32 %v2640_v21, %v1966_v51  ;;  %v1915_v47 = vpop.f32.mrf.mxu2  ;;  %v821_v31 = vpop.f32.mrf.mxu0  ;;  %v4344_v51 = vrot.slane %v4342_v43, 4 }
 0x132   : > { %v1967_v41 = vadd.f32 %v1912_v1, %v1604_v29  ;;  %v3255_v1 = vshll.u32 %v3115_v26, 16  ;;  %v3260_v29 = vshrl.u32 %v3116_v49, 16 }
 0x133   : > { %v4345_v6 = vor.u32 %v4344_v51, %v6328_v57  ;;  %v3271_v51 = vrot.slane %v3269_v33, 5 }
 0x134   : > { %v3257_v21 = vrot.slane %v3255_v1, 5  ;;  %v3262_v50 = vrot.slane %v3260_v29, 4 }
 0x135   : > { %v4346_v32 = vrot.slane %v4345_v6, 4  ;;  %v4368_v6 = vrot.slane %v4366_v44, 4  ;;  %v3120_v44 = vld [vmem:[#allocation2 + $0x7c] sm:$0xf] }
 0x137   : > { %v1552_v62 = vpop.f32.mrf.mxu1 }
 0x138   : > { %v2642_v5 = vpop.f32.mrf.mxu3  ;;  %v1605_v8 = vadd.f32 %v1552_v62, %v819_v4  ;;  %v3263_v4 = vshll.u32 %v3116_v49, 16  ;;  %v3275_v62 = vrot.slane %v3273_v37, 4 }
 0x139   : > { %v6330_v9 = vadd.f32 %v2642_v5, %v1967_v41  ;;  %v1917_v23 = vpop.f32.mrf.mxu2  ;;  %v824_v24 = vpop.f32.mrf.mxu0  ;;  %v4336_v41 = vrot.slane %v4335_v20, 4  ;;  %v4364_v20 = vrot.slane %v4362_v46, 5 }
 0x13a   : > { %5491 = vmatmul.msk.bf16.gmra.mxu1 %vm716_vm4, %v3609_v53  ;;  %v1968_v16 = vadd.f32 %v1915_v47, %v1605_v8  ;;  %v3258_v47 = vsel %vm5888_vm7, %v3253_v28, %v3257_v21  ;;  %v3265_v26 = vrot.slane %v3263_v4, 5  ;;  %v4353_v53 = vshrl.u32 %v4209_v18, 16 }
 0x13b   : > { %v3581_v1 = vunpack.c.l.b16 %v3258_v47  ;;  %v4341_v5 = vsel %vm5888_vm7, %v4336_v41, %v6328_v57  ;;  %v4351_v8 = vsel %vm5888_vm7, %v4346_v32, %v4350_v42  ;;  %v4369_v36 = vor.u32 %v4368_v6, %v4364_v20  ;;  %v5674_v47 = vld [vmem:[#allocation2 + $0x60] sm:$0xff] }
 0x13c   : > { %5464 = vmatmul.msk.bf16.gmra.mxu0 %vm716_vm4, %v5673_v17  ;;  %v3266_v14 = vor.u32 %v3265_v26, %v3262_v50  ;;  %v4211_v17 = vld [vmem:[#allocation2 + $0x74] sm:$0x1]  ;;  %v4355_v19 = vrot.slane %v4353_v53, 4  ;;  %v4673_v63 = vunpack.c.l.b16 %v4341_v5  ;;  %v4674_v28 = vunpack.c.l.b16 %v4351_v8  ;;  %v3119_v50 = vld [vmem:[#allocation2 + $0x78] sm:$0xf] }
 0x13d   : > { %5611 = vmatmul.msk.bf16.gmra.mxu3 %vm716_vm4, %v4702_v11  ;;  %v3610_v29 = vpack.c.b16 %v3581_v1, %v3580_v48  ;;  %v4212_v1 = vld [vmem:[#allocation2 + $0x84] sm:$0xf] }
 0x13e   : > { %5584 = vmatmul.msk.bf16.gmra.mxu2 %vm716_vm4, %v5693_v2  ;;  %v4372_v2 = vshll.u32 %v4211_v17, 16  ;;  %v3267_v33 = vrot.slane %v3266_v14, 4  ;;  %v4703_v41 = vpack.c.b16 %v4674_v28, %v4673_v63  ;;  %v4213_v14 = vld [vmem:[#allocation2 + $0x88] sm:$0xf] }
 0x13f   : > { %v1554_v43 = vpop.f32.mrf.mxu1 }
 0x140   : > { %v2645_v54 = vpop.f32.mrf.mxu3  ;;  %v1606_v40 = vadd.f32 %v1554_v43, %v821_v31  ;;  %v3118_v31 = vld [vmem:[#allocation2 + $0x68] sm:$0x1]  ;;  %v4374_v46 = vrot.slane %v4372_v2, 5  ;;  %v4386_v2 = vshll.u32 %v4213_v14, 16 }
 0x141   : > { %v6341_v61 = vadd.f32 %v2645_v54, %v1968_v16  ;;  %v1920_v49 = vpop.f32.mrf.mxu2  ;;  %v826_v11 = vpop.f32.mrf.mxu0  ;;  %v4358_v16 = vrot.slane %v4356_v39, 5  ;;  %v3279_v21 = vshll.u32 %v3118_v31, 16  ;;  %v5694_v54 = vld [vmem:[#allocation2 + $0x6c] sm:$0xff]  ;;  %v4370_v39 = vrot.slane %v4369_v36, 4  ;;  %v3121_v36 = vld [vmem:[#allocation2 + $0x80] sm:$0x1] }
 0x142   : > { %v1969_v56 = vadd.f32 %v1917_v23, %v1606_v40  ;;  %v3276_v23 = vor.u32 %v3275_v62, %v3271_v51  ;;  %v3272_v40 = vsel %vm5888_vm7, %v3267_v33, %v3271_v51  ;;  %v3284_v62 = vshrl.u32 %v3119_v50, 16 }
 0x143   : > { %v4359_v37 = vor.u32 %v4358_v16, %v4355_v19  ;;  %v3281_v42 = vrot.slane %v3279_v21, 5  ;;  %v3582_v8 = vunpack.c.l.b16 %v3272_v40  ;;  %v3293_v31 = vshll.u32 %v3120_v44, 16 }
 0x144   : > { %v3277_v32 = vrot.slane %v3276_v23, 4  ;;  %v4375_v6 = vsel %vm5888_vm7, %v4370_v39, %v4374_v46  ;;  %v3286_v28 = vrot.slane %v3284_v62, 4  ;;  %v4377_v21 = vshrl.u32 %v4212_v1, 16 }
 0x145   : > { %v3295_v33 = vrot.slane %v3293_v31, 5  ;;  %v3303_v39 = vshll.u32 %v3121_v36, 16 }
 0x146   : > { %v3282_v48 = vsel %vm5888_vm7, %v3277_v32, %v3281_v42 }
 0x147   : > { %v1557_v4 = vpop.f32.mrf.mxu1  ;;  %v3583_v19 = vunpack.c.l.b16 %v3282_v48  ;;  %v3122_v48 = vld [vmem:[#allocation2 + $0x84] sm:$0xf] }
 0x148   : > { %v2647_v57 = vpop.f32.mrf.mxu3  ;;  %v1607_v18 = vadd.f32 %v1557_v4, %v824_v24  ;;  %v4360_v24 = vrot.slane %v4359_v37, 4  ;;  %v4380_v4 = vshll.u32 %v4212_v1, 16 }
 0x149   : > { %v6348_v27 = vadd.f32 %v2647_v57, %v1969_v56  ;;  %v1922_v26 = vpop.f32.mrf.mxu2  ;;  %v829_v53 = vpop.f32.mrf.mxu0  ;;  %v3287_v56 = vshll.u32 %v3119_v50, 16  ;;  %v4390_v57 = vshrl.u32 %v4213_v14, 16  ;;  %v4379_v50 = vrot.slane %v4377_v21, 4  ;;  %v4215_v21 = vld [vmem:[#allocation2 + $0x90] sm:$0xf] }
 0x14a   : > { %5492 = vmatmul.msk.bf16.gmra.mxu1 %vm716_vm4, %v3610_v29  ;;  %v1970_v43 = vadd.f32 %v1920_v49, %v1607_v18  ;;  %v3297_v49 = vshrl.u32 %v3120_v44, 16  ;;  %v4365_v16 = vsel %vm5888_vm7, %v4360_v24, %v4364_v20  ;;  %v4676_v20 = vunpack.c.l.b16 %v4375_v6 }
 0x14b   : > { %v3289_v23 = vrot.slane %v3287_v56, 5  ;;  %v4675_v32 = vunpack.c.l.b16 %v4365_v16  ;;  %v4392_v40 = vrot.slane %v4390_v57, 4  ;;  %v3305_v6 = vrot.slane %v3303_v39, 5 }
 0x14c   : > { %5465 = vmatmul.msk.bf16.gmra.mxu0 %vm716_vm4, %v5674_v47  ;;  %v3299_v37 = vrot.slane %v3297_v49, 4  ;;  %v4214_v47 = vld [vmem:[#allocation2 + $0x8c] sm:$0x1] }
 0x14d   : > { %5612 = vmatmul.msk.bf16.gmra.mxu3 %vm716_vm4, %v4703_v41  ;;  %v3611_v41 = vpack.c.b16 %v3583_v19, %v3582_v8  ;;  %v3290_v42 = vor.u32 %v3289_v23, %v3286_v28  ;;  %v4704_v56 = vpack.c.b16 %v4676_v20, %v4675_v32  ;;  %v4396_v1 = vshll.u32 %v4214_v47, 16  ;;  %v5675_v8 = vld [vmem:[#allocation2 + $0x78] sm:$0xff]  ;;  %v5695_v23 = vld [vmem:[#allocation2 + $0x84] sm:$0xff] }
 0x14e   : > { %5585 = vmatmul.msk.bf16.gmra.mxu2 %vm716_vm4, %v5694_v54  ;;  %v6364_v54 = vrot.slane %v4386_v2, 5  ;;  %v3308_v28 = vshrl.u32 %v3122_v48, 16  ;;  %v4216_v2 = vld [vmem:[#allocation2 + $0x94] sm:$0xf]  ;;  %v4401_v47 = vshrl.u32 %v4215_v21, 16 }
 0x14f   : > { %v1559_v5 = vpop.f32.mrf.mxu1  ;;  %v3291_v31 = vrot.slane %v3290_v42, 4  ;;  %v4398_v36 = vrot.slane %v4396_v1, 5 }
 0x150   : > { %v2650_v51 = vpop.f32.mrf.mxu3  ;;  %v1608_v17 = vadd.f32 %v1559_v5, %v826_v11  ;;  %v4393_v14 = vor.u32 %v4392_v40, %v6364_v54  ;;  %v3310_v20 = vrot.slane %v3308_v28, 4  ;;  %v4404_v40 = vshll.u32 %v4215_v21, 16 }
 0x151   : > { %v6362_v63 = vadd.f32 %v2650_v51, %v1970_v43  ;;  %v1925_v18 = vpop.f32.mrf.mxu2  ;;  %v831_v11 = vpop.f32.mrf.mxu0  ;;  %v4382_v43 = vrot.slane %v4380_v4, 5  ;;  %v3123_v51 = vld [vmem:[#allocation2 + $0x88] sm:$0xf]  ;;  %v3296_v57 = vsel %vm5888_vm7, %v3291_v31, %v3295_v33 }
 0x152   : > { %v1971_v29 = vadd.f32 %v1922_v26, %v1608_v17  ;;  %v3300_v26 = vor.u32 %v3299_v37, %v3295_v33  ;;  %v3321_v4 = vshrl.u32 %v3123_v51, 16  ;;  %v4394_v37 = vrot.slane %v4393_v14, 4 }
 0x153   : > { %v4383_v49 = vor.u32 %v4382_v43, %v4379_v50  ;;  %v3584_v33 = vunpack.c.l.b16 %v3296_v57 }
 0x154   : > { %v3301_v16 = vrot.slane %v3300_v26, 4  ;;  %v4414_v26 = vshrl.u32 %v4216_v2, 16 }
 0x156   : > { %v3306_v32 = vsel %vm5888_vm7, %v3301_v16, %v3305_v6  ;;  %v4403_v16 = vrot.slane %v4401_v47, 4  ;;  %v4416_v28 = vrot.slane %v4414_v26, 4  ;;  %v5696_v26 = vld [vmem:[#allocation2 + $0x90] sm:$0xff] }
 0x157   : > { %v1562_v24 = vpop.f32.mrf.mxu1 }
 0x158   : > { %v2652_v46 = vpop.f32.mrf.mxu3  ;;  %v1609_v44 = vadd.f32 %v1562_v24, %v829_v53  ;;  %v3311_v53 = vshll.u32 %v3122_v48, 16  ;;  %v4410_v24 = vshll.u32 %v4216_v2, 16 }
 0x159   : > { %v6366_v62 = vadd.f32 %v2652_v46, %v1971_v29  ;;  %v1927_v17 = vpop.f32.mrf.mxu2  ;;  %v834_v19 = vpop.f32.mrf.mxu0  ;;  %v3317_v29 = vshll.u32 %v3123_v51, 16  ;;  %v4217_v51 = vld [vmem:[#allocation2 + $0x98] sm:$0x1] }
 0x15a   : > { %5493 = vmatmul.msk.bf16.gmra.mxu1 %vm716_vm4, %v3611_v41  ;;  %v1972_v5 = vadd.f32 %v1925_v18, %v1609_v44  ;;  %v4384_v18 = vrot.slane %v4383_v49, 4  ;;  %v3313_v42 = vrot.slane %v3311_v53, 5  ;;  %v3323_v44 = vrot.slane %v3321_v4, 4 }
 0x15b   : > { %v3319_v46 = vrot.slane %v3317_v29, 5  ;;  %v4412_v6 = vrot.slane %v4410_v24, 5  ;;  %v4420_v2 = vshll.u32 %v4217_v51, 16 }
 0x15c   : > { %5466 = vmatmul.msk.bf16.gmra.mxu0 %vm716_vm4, %v5675_v8  ;;  %v4389_v1 = vsel %vm5888_vm7, %v4384_v18, %v6364_v54  ;;  %v4399_v8 = vsel %vm5888_vm7, %v4394_v37, %v4398_v36  ;;  %v3314_v14 = vor.u32 %v3313_v42, %v3310_v20 }
 0x15d   : > { %5613 = vmatmul.msk.bf16.gmra.mxu3 %vm716_vm4, %v4704_v56  ;;  %v3585_v56 = vunpack.c.l.b16 %v3306_v32  ;;  %v4677_v53 = vunpack.c.l.b16 %v4389_v1  ;;  %v4417_v36 = vor.u32 %v4416_v28, %v4412_v6  ;;  %v3126_v1 = vld [vmem:[#allocation2 + $0x94] sm:$0xf]  ;;  %v4219_v28 = vld [vmem:[#allocation2 + $0xa0] sm:$0xf] }
 0x15e   : > { %5586 = vmatmul.msk.bf16.gmra.mxu2 %vm716_vm4, %v5695_v23  ;;  %v4678_v23 = vunpack.c.l.b16 %v4399_v8  ;;  %v3315_v18 = vrot.slane %v3314_v14, 4 }
 0x15f   : > { %v1564_v41 = vpop.f32.mrf.mxu1  ;;  %v3612_v29 = vpack.c.b16 %v3585_v56, %v3584_v33  ;;  %v4422_v56 = vrot.slane %v4420_v2, 5 }
 0x160   : > { %v2655_v50 = vpop.f32.mrf.mxu3  ;;  %v1610_v43 = vadd.f32 %v1564_v41, %v831_v11  ;;  %v3124_v11 = vld [vmem:[#allocation2 + $0x8c] sm:$0x1]  ;;  %v4705_v32 = vpack.c.b16 %v4678_v23, %v4677_v53  ;;  %v3320_v33 = vsel %vm5888_vm7, %v3315_v18, %v3319_v46 }
 0x161   : > { %v6377_v39 = vadd.f32 %v2655_v50, %v1972_v5  ;;  %v1930_v31 = vpop.f32.mrf.mxu2  ;;  %v836_v49 = vpop.f32.mrf.mxu0  ;;  %v4406_v5 = vrot.slane %v4404_v40, 5  ;;  %v3327_v21 = vshll.u32 %v3124_v11, 16  ;;  %v5676_v50 = vld [vmem:[#allocation2 + $0x84] sm:$0xff]  ;;  %v3586_v51 = vunpack.c.l.b16 %v3320_v33 }
 0x162   : > { %v1973_v48 = vadd.f32 %v1927_v17, %v1610_v43  ;;  %v3324_v17 = vor.u32 %v3323_v44, %v3319_v46  ;;  %v3125_v43 = vld [vmem:[#allocation2 + $0x90] sm:$0xf]  ;;  %v4418_v44 = vrot.slane %v4417_v36, 4  ;;  %v4438_v36 = vshrl.u32 %v4219_v28, 16 }
 0x163   : > { %v4407_v37 = vor.u32 %v4406_v5, %v4403_v16  ;;  %v3329_v42 = vrot.slane %v3327_v21, 5  ;;  %v3332_v8 = vshrl.u32 %v3125_v43, 16  ;;  %v3335_v11 = vshll.u32 %v3125_v43, 16 }
 0x164   : > { %v3325_v20 = vrot.slane %v3324_v17, 4  ;;  %v3341_v16 = vshll.u32 %v3126_v1, 16  ;;  %v3345_v5 = vshrl.u32 %v3126_v1, 16  ;;  %v4423_v21 = vsel %vm5888_vm7, %v4418_v44, %v4422_v56 }
 0x165   : > { %v3337_v2 = vrot.slane %v3335_v11, 5  ;;  %v4440_v1 = vrot.slane %v4438_v36, 4  ;;  %v5697_v36 = vld [vmem:[#allocation2 + $0x9c] sm:$0xff] }
 0x167   : > { %v1567_v4 = vpop.f32.mrf.mxu1 }
 0x168   : > { %v2657_v54 = vpop.f32.mrf.mxu3  ;;  %v1611_v57 = vadd.f32 %v1567_v4, %v834_v19  ;;  %v4408_v19 = vrot.slane %v4407_v37, 4  ;;  %v3334_v4 = vrot.slane %v3332_v8, 4  ;;  %v4434_v37 = vshll.u32 %v4219_v28, 16 }
 0x169   : > { %v6384_v41 = vadd.f32 %v2657_v54, %v1973_v48  ;;  %v1932_v40 = vpop.f32.mrf.mxu2  ;;  %v839_v24 = vpop.f32.mrf.mxu0  ;;  %v3330_v48 = vsel %vm5888_vm7, %v3325_v20, %v3329_v42  ;;  %v3343_v20 = vrot.slane %v3341_v16, 5  ;;  %v3347_v42 = vrot.slane %v3345_v5, 4 }
 0x16a   : > { %5494 = vmatmul.msk.bf16.gmra.mxu1 %vm716_vm4, %v3612_v29  ;;  %v1974_v47 = vadd.f32 %v1930_v31, %v1611_v57  ;;  %v4218_v31 = vld [vmem:[#allocation2 + $0x9c] sm:$0xf]  ;;  %v3587_v23 = vunpack.c.l.b16 %v3330_v48  ;;  %v4413_v17 = vsel %vm5888_vm7, %v4408_v19, %v4412_v6  ;;  %v4680_v6 = vunpack.c.l.b16 %v4423_v21  ;;  %v4220_v19 = vld [vmem:[#allocation2 + $0xa4] sm:$0x1]  ;;  %v3129_v21 = vld [vmem:[#allocation2 + $0xa0] sm:$0xf] }
 0x16b   : > { %v4425_v54 = vshrl.u32 %v4218_v31, 16  ;;  %v4428_v18 = vshll.u32 %v4218_v31, 16  ;;  %v3338_v33 = vor.u32 %v3337_v2, %v3334_v4  ;;  %v6400_v56 = vrot.slane %v4434_v37, 5 }
 0x16c   : > { %5467 = vmatmul.msk.bf16.gmra.mxu0 %vm716_vm4, %v5676_v50  ;;  %v3127_v50 = vld [vmem:[#allocation2 + $0x98] sm:$0x1]  ;;  %v3613_v43 = vpack.c.b16 %v3587_v23, %v3586_v51  ;;  %v4444_v5 = vshll.u32 %v4220_v19, 16 }
 0x16d   : > { %5614 = vmatmul.msk.bf16.gmra.mxu3 %vm716_vm4, %v4705_v32  ;;  %v4427_v44 = vrot.slane %v4425_v54, 4  ;;  %v3351_v8 = vshll.u32 %v3127_v50, 16  ;;  %v3369_v50 = vshrl.u32 %v3129_v21, 16 }
 0x16e   : > { %5587 = vmatmul.msk.bf16.gmra.mxu2 %vm716_vm4, %v5696_v26  ;;  %v4679_v26 = vunpack.c.l.b16 %v4413_v17  ;;  %v4441_v17 = vor.u32 %v4440_v1, %v6400_v56 }
 0x16f   : > { %v1569_v14 = vpop.f32.mrf.mxu1 }
 0x170   : > { %v2660_v46 = vpop.f32.mrf.mxu3  ;;  %v1612_v53 = vadd.f32 %v1569_v14, %v836_v49  ;;  %v3128_v14 = vld [vmem:[#allocation2 + $0x9c] sm:$0xf]  ;;  %v4706_v16 = vpack.c.b16 %v4680_v6, %v4679_v26  ;;  %v4442_v6 = vrot.slane %v4441_v17, 4 }
 0x171   : > { %v6398_v29 = vadd.f32 %v2660_v46, %v1974_v47  ;;  %v1935_v32 = vpop.f32.mrf.mxu2  ;;  %v841_v49 = vpop.f32.mrf.mxu0  ;;  %v4430_v47 = vrot.slane %v4428_v18, 5  ;;  %v5677_v46 = vld [vmem:[#allocation2 + $0x90] sm:$0xff]  ;;  %v3353_v18 = vrot.slane %v3351_v8, 5  ;;  %v3356_v37 = vshrl.u32 %v3128_v14, 16 }
 0x172   : > { %v1975_v57 = vadd.f32 %v1932_v40, %v1612_v53  ;;  %v3348_v40 = vor.u32 %v3347_v42, %v3343_v20  ;;  %v3339_v53 = vrot.slane %v3338_v33, 4  ;;  %v3365_v42 = vshll.u32 %v3129_v21, 16 }
 0x173   : > { %v4431_v23 = vor.u32 %v4430_v47, %v4427_v44  ;;  %v4446_v33 = vrot.slane %v4444_v5, 5  ;;  %v3358_v47 = vrot.slane %v3356_v37, 4 }
 0x174   : > { %v3349_v54 = vrot.slane %v3348_v40, 4 }
 0x175   : > { %v4432_v26 = vrot.slane %v4431_v23, 4  ;;  %v4447_v21 = vsel %vm5888_vm7, %v4442_v6, %v4446_v33 }
 0x176   : > { %v3354_v44 = vsel %vm5888_vm7, %v3349_v54, %v3353_v18 }
 0x177   : > { %v1572_v48 = vpop.f32.mrf.mxu1  ;;  %v3589_v23 = vunpack.c.l.b16 %v3354_v44  ;;  %v4437_v17 = vsel %vm5888_vm7, %v4432_v26, %v6400_v56 }
 0x178   : > { %v2662_v11 = vpop.f32.mrf.mxu3  ;;  %v1613_v31 = vadd.f32 %v1572_v48, %v839_v24  ;;  %v3359_v24 = vshll.u32 %v3128_v14, 16 }
 0x179   : > { %v6402_v28 = vadd.f32 %v2662_v11, %v1975_v57  ;;  %v1937_v4 = vpop.f32.mrf.mxu2  ;;  %v844_v2 = vpop.f32.mrf.mxu0  ;;  %v4221_v57 = vld [vmem:[#allocation2 + $0xa8] sm:$0xf] }
 0x17a   : > { %5495 = vmatmul.msk.bf16.gmra.mxu1 %vm716_vm4, %v3613_v43  ;;  %v1976_v51 = vadd.f32 %v1935_v32, %v1613_v31  ;;  %v4222_v43 = vld [vmem:[#allocation2 + $0xac] sm:$0xf]  ;;  %v3344_v32 = vsel %vm5888_vm7, %v3339_v53, %v3343_v20  ;;  %v3361_v1 = vrot.slane %v3359_v24, 5  ;;  %v4449_v48 = vshrl.u32 %v4221_v57, 16  ;;  %v4223_v24 = vld [vmem:[#allocation2 + $0xb0] sm:$0x1] }
 0x17b   : > { %v4452_v11 = vshll.u32 %v4221_v57, 16  ;;  %v4458_v31 = vshll.u32 %v4222_v43, 16  ;;  %v4462_v14 = vshrl.u32 %v4222_v43, 16  ;;  %v3588_v20 = vunpack.c.l.b16 %v3344_v32 }
 0x17c   : > { %5468 = vmatmul.msk.bf16.gmra.mxu0 %vm716_vm4, %v5677_v46  ;;  %v3367_v46 = vrot.slane %v3365_v42, 5  ;;  %v3371_v53 = vrot.slane %v3369_v50, 4  ;;  %v3362_v37 = vor.u32 %v3361_v1, %v3358_v47  ;;  %v4681_v42 = vunpack.c.l.b16 %v4437_v17 }
 0x17d   : > { %5615 = vmatmul.msk.bf16.gmra.mxu3 %vm716_vm4, %v4706_v16  ;;  %v4460_v57 = vrot.slane %v4458_v31, 5  ;;  %v4464_v43 = vrot.slane %v4462_v14, 4  ;;  %v4682_v50 = vunpack.c.l.b16 %v4447_v21  ;;  %v5678_v31 = vld [vmem:[#allocation2 + $0x9c] sm:$0xff]  ;;  %v3131_v14 = vld [vmem:[#allocation2 + $0xb4] sm:$0xf] }
 0x17e   : > { %5588 = vmatmul.msk.bf16.gmra.mxu2 %vm716_vm4, %v5697_v36  ;;  %v4451_v36 = vrot.slane %v4449_v48, 4 }
 0x17f   : > { %v1574_v19 = vpop.f32.mrf.mxu1  ;;  %v4465_v33 = vor.u32 %v4464_v43, %v4460_v57  ;;  %v4707_v47 = vpack.c.b16 %v4682_v50, %v4681_v42  ;;  %v4225_v42 = vld [vmem:[#allocation2 + $0xc4] sm:$0xf] }
 0x180   : > { %v2665_v40 = vpop.f32.mrf.mxu3  ;;  %v1614_v8 = vadd.f32 %v1574_v19, %v841_v49  ;;  %v3130_v49 = vld [vmem:[#allocation2 + $0xa4] sm:$0x1]  ;;  %v3614_v19 = vpack.c.b16 %v3589_v23, %v3588_v20  ;;  %v3132_v20 = vld [vmem:[#allocation2 + $0xb8] sm:$0xf]  ;;  %v5698_v23 = vld [vmem:[#allocation2 + $0xa8] sm:$0xff] }
 0x181   : > { %v6413_v16 = vadd.f32 %v2665_v40, %v1976_v51  ;;  %v1940_v54 = vpop.f32.mrf.mxu2  ;;  %v846_v18 = vpop.f32.mrf.mxu0  ;;  %v4454_v51 = vrot.slane %v4452_v11, 5  ;;  %v3375_v32 = vshll.u32 %v3130_v49, 16  ;;  %v4468_v40 = vshll.u32 %v4223_v24, 16 }
 0x182   : > { %v1977_v5 = vadd.f32 %v1937_v4, %v1614_v8  ;;  %v3372_v4 = vor.u32 %v3371_v53, %v3367_v46  ;;  %v3363_v8 = vrot.slane %v3362_v37, 4  ;;  %v4466_v49 = vrot.slane %v4465_v33, 4 }
 0x183   : > { %6800 = vst [vmem:[#allocation4_spill] sm:$0xff] %v6413_v16  ;;  %v4455_v6 = vor.u32 %v4454_v51, %v4451_v36  ;;  %v3377_v48 = vrot.slane %v3375_v32, 5  ;;  %v4470_v37 = vrot.slane %v4468_v40, 5  ;;  %v3380_v36 = vshrl.u32 %v3131_v14, 16 }
 0x184   : > { %v3373_v1 = vrot.slane %v3372_v4, 4  ;;  %v3389_v51 = vshll.u32 %v3132_v20, 16  ;;  %v3393_v43 = vshrl.u32 %v3132_v20, 16  ;;  %v4482_v33 = vshll.u32 %v4225_v42, 16 }
 0x185   : > { %v4456_v21 = vrot.slane %v4455_v6, 4  ;;  %v3382_v6 = vrot.slane %v3380_v36, 4 }
 0x186   : > { %v3378_v24 = vsel %vm5888_vm7, %v3373_v1, %v3377_v48 }
 0x187   : > { %v1577_v44 = vpop.f32.mrf.mxu1  ;;  %v3591_v40 = vunpack.c.l.b16 %v3378_v24 }
 0x188   : > { %v2667_v56 = vpop.f32.mrf.mxu3  ;;  %v1615_v26 = vadd.f32 %v1577_v44, %v844_v2  ;;  %v3368_v2 = vsel %vm5888_vm7, %v3363_v8, %v3367_v46 }
 0x189   : > { %v6420_v16 = vadd.f32 %v2667_v56, %v1977_v5  ;;  %v1942_v53 = vpop.f32.mrf.mxu2  ;;  %v849_v17 = vpop.f32.mrf.mxu0  ;;  %v4224_v5 = vld [vmem:[#allocation2 + $0xc0] sm:$0xf]  ;;  %v3590_v4 = vunpack.c.l.b16 %v3368_v2  ;;  %v4461_v56 = vsel %vm5888_vm7, %v4456_v21, %v4460_v57  ;;  %v6438_v21 = vrot.slane %v4482_v33, 5 }
 0x18a   : > { %5496 = vmatmul.msk.bf16.gmra.mxu1 %vm716_vm4, %v3614_v19  ;;  %v1978_v11 = vadd.f32 %v1940_v54, %v1615_v26  ;;  %v3383_v54 = vshll.u32 %v3131_v14, 16  ;;  %v4473_v32 = vshrl.u32 %v4224_v5, 16  ;;  %v4476_v46 = vshll.u32 %v4224_v5, 16 }
 0x18b   : > { %v4471_v26 = vsel %vm5888_vm7, %v4466_v49, %v4470_v37  ;;  %v3395_v14 = vrot.slane %v3393_v43, 4  ;;  %v4683_v24 = vunpack.c.l.b16 %v4461_v56  ;;  %v3134_v56 = vld [vmem:[#allocation2 + $0xc0] sm:$0xf] }
 0x18c   : > { %5469 = vmatmul.msk.bf16.gmra.mxu0 %vm716_vm4, %v5678_v31  ;;  %v3385_v48 = vrot.slane %v3383_v54, 5  ;;  %v6436_v31 = vrot.slane %v3389_v51, 5  ;;  %v4475_v2 = vrot.slane %v4473_v32, 4  ;;  %v4478_v5 = vrot.slane %v4476_v46, 5 }
 0x18d   : > { %5616 = vmatmul.msk.bf16.gmra.mxu3 %vm716_vm4, %v4707_v47  ;;  %v4486_v47 = vshrl.u32 %v4225_v42, 16  ;;  %v4684_v57 = vunpack.c.l.b16 %v4471_v26 }
 0x18e   : > { %5589 = vmatmul.msk.bf16.gmra.mxu2 %vm716_vm4, %v5698_v23  ;;  %v3133_v23 = vld [vmem:[#allocation2 + $0xbc] sm:$0x1]  ;;  %v3386_v37 = vor.u32 %v3385_v48, %v3382_v6  ;;  %v3396_v36 = vor.u32 %v3395_v14, %v6436_v31  ;;  %v4479_v51 = vor.u32 %v4478_v5, %v4475_v2  ;;  %v4227_v5 = vld [vmem:[#allocation2 + $0xcc] sm:$0xf] }
 0x18f   : > { %v1579_v50 = vpop.f32.mrf.mxu1  ;;  %v4488_v49 = vrot.slane %v4486_v47, 4  ;;  %v3399_v42 = vshll.u32 %v3133_v23, 16  ;;  %v3135_v47 = vld [vmem:[#allocation2 + $0xc4] sm:$0xf] }
 0x190   : > { %v2670_v19 = vpop.f32.mrf.mxu3  ;;  %v1616_v44 = vadd.f32 %v1579_v50, %v846_v18  ;;  %v3397_v6 = vrot.slane %v3396_v36, 4  ;;  %v5699_v23 = vld [vmem:[#allocation2 + $0xc0] sm:$0xff]  ;;  %v4480_v2 = vrot.slane %v4479_v51, 4 }
 0x191   : > { %v6434_v8 = vadd.f32 %v2670_v19, %v1978_v11  ;;  %v1945_v18 = vpop.f32.mrf.mxu2  ;;  %v851_v20 = vpop.f32.mrf.mxu0  ;;  %v3615_v11 = vpack.c.b16 %v3591_v40, %v3590_v4  ;;  %v4489_v32 = vor.u32 %v4488_v49, %v6438_v21  ;;  %v5679_v4 = vld [vmem:[#allocation2 + $0xb4] sm:$0xff]  ;;  %v3387_v40 = vrot.slane %v3386_v37, 4 }
 0x192   : > { %v1979_v1 = vadd.f32 %v1942_v53, %v1616_v44  ;;  %v4226_v53 = vld [vmem:[#allocation2 + $0xc8] sm:$0x1]  ;;  %v4708_v44 = vpack.c.b16 %v4684_v57, %v4683_v24  ;;  %v3401_v33 = vrot.slane %v3399_v42, 5  ;;  %v4228_v24 = vld [vmem:[#allocation2 + $0xd0] sm:$0xf]  ;;  %v4497_v42 = vshrl.u32 %v4227_v5, 16 }
 0x193   : > { %6801 = vst [vmem:[#allocation5_spill] sm:$0xff] %v6434_v8  ;;  %v4492_v46 = vshll.u32 %v4226_v53, 16  ;;  %v4490_v57 = vrot.slane %v4489_v32, 4  ;;  %v3413_v53 = vshll.u32 %v3135_v47, 16  ;;  %v4506_v51 = vshll.u32 %v4228_v24, 16 }
 0x194   : > { %v3402_v37 = vsel %vm5888_vm7, %v3397_v6, %v3401_v33  ;;  %v4485_v32 = vsel %vm5888_vm7, %v4480_v2, %v6438_v21 }
 0x195   : > { %v4494_v49 = vrot.slane %v4492_v46, 5  ;;  %v6462_v8 = vrot.slane %v4506_v51, 5  ;;  %v4685_v2 = vunpack.c.l.b16 %v4485_v32 }
 0x197   : > { %v1582_v54 = vpop.f32.mrf.mxu1 }
 0x198   : > { %v2672_v50 = vpop.f32.mrf.mxu3  ;;  %v1617_v43 = vadd.f32 %v1582_v54, %v849_v17  ;;  %v3404_v17 = vshrl.u32 %v3134_v56, 16  ;;  %v4500_v54 = vshll.u32 %v4227_v5, 16  ;;  %v3593_v5 = vunpack.c.l.b16 %v3402_v37 }
 0x199   : > { %v6441_v19 = vadd.f32 %v2672_v50, %v1979_v1  ;;  %v1947_v48 = vpop.f32.mrf.mxu2  ;;  %v2963_v14 = vpop.f32.mrf.mxu0  ;;  %v3407_v1 = vshll.u32 %v3134_v56, 16  ;;  %v4510_v50 = vshrl.u32 %v4228_v24, 16 }
 0x19a   : > { %5497 = vmatmul.msk.bf16.gmra.mxu1 %vm716_vm4, %v3615_v11  ;;  %v1980_v26 = vadd.f32 %v1945_v18, %v1617_v43  ;;  %v3417_v11 = vshrl.u32 %v3135_v47, 16  ;;  %v3392_v18 = vsel %vm5888_vm7, %v3387_v40, %v6436_v31  ;;  %v3406_v46 = vrot.slane %v3404_v17, 4 }
 0x19b   : > { %6802 = vst [vmem:[#allocation6_spill] sm:$0xff] %v6441_v19  ;;  %v3409_v56 = vrot.slane %v3407_v1, 5  ;;  %v4495_v31 = vsel %vm5888_vm7, %v4490_v57, %v4494_v49  ;;  %v6460_v40 = vrot.slane %v3413_v53, 5  ;;  %v3592_v47 = vunpack.c.l.b16 %v3392_v18  ;;  %v4229_v1 = vld [vmem:[#allocation2 + $0xd4] sm:$0x1] }
 0x19c   : > { %5470 = vmatmul.msk.bf16.gmra.mxu0 %vm716_vm4, %v5679_v4  ;;  %v3419_v6 = vrot.slane %v3417_v11, 4  ;;  %v4502_v19 = vrot.slane %v4500_v54, 5  ;;  %v4512_v21 = vrot.slane %v4510_v50, 4  ;;  %v4516_v37 = vshll.u32 %v4229_v1, 16  ;;  %v4230_v1 = vld [vmem:[#allocation2 + $0xd8] sm:$0xf] }
 0x19d   : > { %5617 = vmatmul.msk.bf16.gmra.mxu3 %vm716_vm4, %v4708_v44  ;;  %v3410_v17 = vor.u32 %v3409_v56, %v3406_v46  ;;  %v3616_v53 = vpack.c.b16 %v3593_v5, %v3592_v47  ;;  %v3043_v50 = vadd.f32 %v2963_v14, %v6128_v13  ;;  %v5700_v13 = vld [vmem:[#allocation2 + $0xcc] sm:$0xff] }
 0x19e   : > { %5590 = vmatmul.msk.bf16.gmra.mxu2 %vm716_vm4, %v5699_v23  ;;  %v3420_v57 = vor.u32 %v3419_v6, %v6460_v40  ;;  %v4513_v18 = vor.u32 %v4512_v21, %v6462_v8 }
 0x19f   : > { %v1584_v36 = vpop.f32.mrf.mxu1  ;;  %v3411_v51 = vrot.slane %v3410_v17, 4  ;;  %v4518_v17 = vrot.slane %v4516_v37, 5  ;;  %v6485_v37 = vld [vmem:[%s6794_s3] ss:$0 sm:$0xff] }
 0x1a0   : > { %v2675_v43 = vpop.f32.mrf.mxu3  ;;  %v1618_v44 = vadd.f32 %v1584_v36, %v851_v20  ;;  %v3136_v20 = vld [vmem:[#allocation2 + $0xc8] sm:$0x1]  ;;  %v4499_v36 = vrot.slane %v4497_v42, 4  ;;  %v3421_v46 = vrot.slane %v3420_v57, 4  ;;  %v4231_v57 = vld [vmem:[#allocation2 + $0xdc] sm:$0xf] }
 0x1a1   : > { %v6456_v4 = vadd.f32 %v2675_v43, %v1980_v26  ;;  %v4056_v24 = vpop.f32.mrf.mxu2  ;;  %v2965_v23 = vpop.f32.mrf.mxu0  ;;  %v4686_v26 = vunpack.c.l.b16 %v4495_v31  ;;  %v3423_v49 = vshll.u32 %v3136_v20, 16  ;;  %v3137_v43 = vld [vmem:[#allocation2 + $0xcc] sm:$0xf]  ;;  %v5680_v31 = vld [vmem:[#allocation2 + $0xc0] sm:$0xff]  ;;  %v3416_v14 = vsel %vm5888_vm7, %v3411_v51, %v6460_v40 }
 0x1a2   : > { %v1981_v33 = vadd.f32 %v1947_v48, %v1618_v44  ;;  %v4503_v48 = vor.u32 %v4502_v19, %v4499_v36  ;;  %v3138_v44 = vld [vmem:[#allocation2 + $0xd0] sm:$0xf]  ;;  %v3428_v6 = vshrl.u32 %v3137_v43, 16  ;;  %v3431_v47 = vshll.u32 %v3137_v43, 16 }
 0x1a3   : > { %v4709_v54 = vpack.c.b16 %v4686_v26, %v4685_v2  ;;  %v3425_v56 = vrot.slane %v3423_v49, 5  ;;  %v3437_v19 = vshll.u32 %v3138_v44, 16  ;;  %v3441_v5 = vshrl.u32 %v3138_v44, 16 }
 0x1a4   : > { %v4504_v2 = vrot.slane %v4503_v48, 4  ;;  %v4514_v26 = vrot.slane %v4513_v18, 4  ;;  %v3430_v49 = vrot.slane %v3428_v6, 4  ;;  %v4521_v51 = vshrl.u32 %v4230_v1, 16 }
 0x1a5   : > { %v3443_v48 = vrot.slane %v3441_v5, 4  ;;  %v3594_v6 = vunpack.c.l.b16 %v3416_v14 }
 0x1a6   : > { %v4509_v43 = vsel %vm5888_vm7, %v4504_v2, %v6462_v8  ;;  %v4519_v44 = vsel %vm5888_vm7, %v4514_v26, %v4518_v17  ;;  %v4523_v14 = vrot.slane %v4521_v51, 4  ;;  %v4233_v51 = vld [vmem:[#allocation2 + $0xe4] sm:$0xf] }
 0x1a7   : > { %v3693_v11 = vpop.f32.mrf.mxu1  ;;  %v4688_v17 = vunpack.c.l.b16 %v4519_v44 }
 0x1a8   : > { %v2677_v42 = vpop.f32.mrf.mxu3  ;;  %v3773_v20 = vadd.f32 %v3693_v11, %v3043_v50  ;;  %v6479_v11 = vrot.slane %v3437_v19, 5  ;;  %v4530_v50 = vshll.u32 %v4231_v57, 16 }
 0x1a9   : > { %v6467_v32 = vadd.f32 %v2677_v42, %v1981_v33  ;;  %v4058_v36 = vpop.f32.mrf.mxu2  ;;  %v6470_v21 = vpop.f32.mrf.mxu0  ;;  %v3426_v33 = vsel %vm5888_vm7, %v3421_v46, %v3425_v56  ;;  %v3139_v42 = vld [vmem:[#allocation2 + $0xd4] sm:$0x1]  ;;  %v4534_v46 = vshrl.u32 %v4231_v57, 16  ;;  %v3044_v56 = vadd.f32 %v2965_v23, %v6140_v45 }
 0x1aa   : > { %5498 = vmatmul.msk.bf16.gmra.mxu1 %vm716_vm4, %v3616_v53  ;;  %v3433_v53 = vrot.slane %v3431_v47, 5  ;;  %v4136_v18 = vadd.f32 %v4056_v24, %v3773_v20  ;;  %v4524_v24 = vshll.u32 %v4230_v1, 16  ;;  %v3595_v47 = vunpack.c.l.b16 %v3426_v33 }
 0x1ab   : > { %v3444_v19 = vor.u32 %v3443_v48, %v6479_v11  ;;  %v3447_v5 = vshll.u32 %v3139_v42, 16  ;;  %v4687_v23 = vunpack.c.l.b16 %v4509_v43  ;;  %v6507_v1 = vrot.slane %v4530_v50, 5  ;;  %v3140_v43 = vld [vmem:[#allocation2 + $0xd8] sm:$0xf] }
 0x1ac   : > { %5471 = vmatmul.msk.bf16.gmra.mxu0 %vm716_vm4, %v5680_v31  ;;  %v3434_v8 = vor.u32 %v3433_v53, %v3430_v49  ;;  %v4526_v33 = vrot.slane %v4524_v24, 5  ;;  %v4536_v57 = vrot.slane %v4534_v46, 4  ;;  %v3617_v49 = vpack.c.b16 %v3595_v47, %v3594_v6  ;;  %v483_v24 = vld [vmem:[%s6512_s19] sm:$0xf]  ;;  %v484_v47 = vld [vmem:[%s6512_s19 + $0x4] sm:$0xf] }
 0x1ad   : > { %5618 = vmatmul.msk.bf16.gmra.mxu3 %vm716_vm4, %v4709_v54  ;;  %v6517_v48 = vrot.slane %v3444_v19, 4  ;;  %v4710_v46 = vpack.c.b16 %v4688_v17, %v4687_v23  ;;  %499 = vst.msk [vmem:[#allocation2 + $0xf0] sm:$0xf] %vm379_vm2, %v483_v24  ;;  %v3045_v19 = vadd.f32 %v6470_v21, %v6164_v3  ;;  %v4545_v21 = vshrl.u32 %v4233_v51, 16  ;;  %v5701_v24 = vld [vmem:[#allocation2 + $0xd8] sm:$0xff] }
 0x1ae   : > { %5591 = vmatmul.msk.bf16.gmra.mxu2 %vm716_vm4, %v5700_v13  ;;  %v4232_v13 = vld [vmem:[#allocation2 + $0xe0] sm:$0x1]  ;;  %v6515_v53 = vrot.slane %v3434_v8, 4  ;;  %v4537_v6 = vor.u32 %v4536_v57, %v6507_v1  ;;  %v486_v8 = vld [vmem:[%s6512_s19 + $0xc] sm:$0xf] }
 0x1af   : > { %v3695_v40 = vpop.f32.mrf.mxu1  ;;  %500 = vst.msk [vmem:[#allocation2 + $0xf4] sm:$0xf] %vm379_vm2, %v484_v47  ;;  %v506_v47 = vld [vmem:[#allocation2 + $0x104] sm:$0x1] }
 0x1b0   : > { %v4786_v54 = vpop.f32.mrf.mxu3  ;;  %v3774_v2 = vadd.f32 %v3695_v40, %v3044_v56  ;;  %v4540_v40 = vshll.u32 %v4232_v13, 16  ;;  %v5681_v56 = vld [vmem:[#allocation2 + $0xcc] sm:$0xff]  ;;  %504 = vst.msk [vmem:[#allocation2 + $0xfc] sm:$0xf] %vm379_vm2, %v486_v8  ;;  %v485_v13 = vld [vmem:[%s6512_s19 + $0x8] sm:$0x1] }
 0x1b1   : > { %v4866_v31 = vadd.f32 %v4786_v54, %v4136_v18  ;;  %v6503_v26 = vpop.f32.mrf.mxu2  ;;  %v6505_v45 = vpop.f32.mrf.mxu0  ;;  %v6519_v18 = vrot.slane %v3447_v5, 5  ;;  %v3141_v54 = vld [vmem:[#allocation2 + $0xdc] sm:$0xf]  ;;  %v3452_v5 = vshrl.u32 %v3140_v43, 16 }
 0x1b2   : > { %v4137_v44 = vadd.f32 %v4058_v36, %v3774_v2  ;;  %v487_v2 = vld [vmem:[%s6512_s19 + $0x10] sm:$0xf]  ;;  %v3461_v23 = vshll.u32 %v3141_v54, 16  ;;  %v3465_v17 = vshrl.u32 %v3141_v54, 16 }
 0x1b3   : > { %v4966_v20 = vadd.f32 %v6485_v37, %v4866_v31  ;;  %v4527_v31 = vor.u32 %v4526_v33, %v4523_v14  ;;  %505 = vst.msk [vmem:[#allocation2 + $0x100] sm:$0xf] %vm379_vm2, %v487_v2  ;;  %v3450_v2 = vsel %vm5888_vm7, %v6517_v48, %v6519_v18  ;;  %v3046_v48 = vadd.f32 %v6505_v45, %v6177_v52  ;;  %v4235_v45 = vld [vmem:[#allocation2 + $0xec] sm:$0x1] }
 0x1b5   : > { %4998 = vst [vmem:[%s6499_s14] sm:$0xff] %v4966_v20  ;;  %v3455_v20 = vshll.u32 %v3140_v43, 16  ;;  %v4548_v43 = vshll.u32 %v4233_v51, 16  ;;  %v4528_v8 = vrot.slane %v4527_v31, 4 }
 0x1b7   : > { %v3698_v42 = vpop.f32.mrf.mxu1  ;;  %v3457_v31 = vrot.slane %v3455_v20, 5  ;;  %v4533_v20 = vsel %vm5888_vm7, %v4528_v8, %v6507_v1 }
 0x1b8   : > { %v4788_v50 = vpop.f32.mrf.mxu3  ;;  %v3775_v33 = vadd.f32 %v3698_v42, %v3045_v19  ;;  %v4538_v42 = vrot.slane %v4537_v6, 4  ;;  %v3454_v19 = vrot.slane %v3452_v5, 4  ;;  %v6553_v6 = vrot.slane %v3461_v23, 5 }
 0x1b9   : > { %v4867_v36 = vadd.f32 %v4788_v50, %v4137_v44  ;;  %v4063_v57 = vpop.f32.mrf.mxu2  ;;  %v6534_v3 = vpop.f32.mrf.mxu0  ;;  %v501_v44 = vld [vmem:[#allocation2 + $0xf8] sm:$0x1]  ;;  %v488_v50 = vld [vmem:[%s6512_s19 + $0x14] sm:$0x1]  ;;  %v4689_v1 = vunpack.c.l.b16 %v4533_v20 }
 0x1ba   : > { %5499 = vmatmul.msk.bf16.gmra.mxu1 %vm716_vm4, %v3617_v49  ;;  %v4542_v49 = vrot.slane %v4540_v40, 5  ;;  %v502_v54 = vsel %vm5853_vm3, %v485_v13, %v501_v44  ;;  %v507_v51 = vsel %vm5853_vm3, %v488_v50, %v506_v47  ;;  %v3440_v40 = vsel %vm5888_vm7, %v6515_v53, %v6479_v11 }
 0x1bb   : > { %v4967_v14 = vadd.f32 %v6485_v37, %v4867_v36  ;;  %v4234_v36 = vld [vmem:[#allocation2 + $0xe8] sm:$0xf]  ;;  %503 = vst [vmem:[#allocation2 + $0xf8] sm:$0x1] %v502_v54  ;;  %v4138_v5 = vadd.f32 %v6503_v26, %v3775_v33  ;;  %v4550_v44 = vrot.slane %v4548_v43, 5  ;;  %v3596_v23 = vunpack.c.l.b16 %v3440_v40 }
 0x1bc   : > { %5472 = vmatmul.msk.bf16.gmra.mxu0 %vm716_vm4, %v5681_v56  ;;  %v4547_v56 = vrot.slane %v4545_v21, 4  ;;  %508 = vst [vmem:[#allocation2 + $0x104] sm:$0x1] %v507_v51  ;;  %v4554_v11 = vshll.u32 %v4234_v36, 16  ;;  %v4558_v53 = vshrl.u32 %v4234_v36, 16  ;;  %v4543_v26 = vsel %vm5888_vm7, %v4538_v42, %v4542_v49 }
 0x1bd   : > { %4999 = vst [vmem:[%s6499_s14 + $0x8] sm:$0xff] %v4967_v14  ;;  %5619 = vmatmul.msk.bf16.gmra.mxu3 %vm716_vm4, %v4710_v46  ;;  %v3142_v46 = vld [vmem:[#allocation2 + $0xe0] sm:$0x1]  ;;  %v3467_v14 = vrot.slane %v3465_v17, 4  ;;  %v3597_v17 = vunpack.c.l.b16 %v3450_v2  ;;  %v3458_v33 = vor.u32 %v3457_v31, %v3454_v19  ;;  %v4690_v8 = vunpack.c.l.b16 %v4543_v26  ;;  %v3143_v2 = vld [vmem:[#allocation2 + $0xf0] sm:$0xf] }
 0x1be   : > { %5592 = vmatmul.msk.bf16.gmra.mxu2 %vm716_vm4, %v5701_v24  ;;  %v3471_v21 = vshll.u32 %v3142_v46, 16  ;;  %v4551_v36 = vor.u32 %v4550_v44, %v4547_v56  ;;  %v6568_v51 = vrot.slane %v4554_v11, 5  ;;  %v4560_v49 = vrot.slane %v4558_v53, 4  ;;  %v3144_v11 = vld [vmem:[#allocation2 + $0xf4] sm:$0xf]  ;;  %v5682_v26 = vld [vmem:[#allocation2 + $0xd8] sm:$0xff] }
 0x1bf   : > { %v3700_v13 = vpop.f32.mrf.mxu1  ;;  %v3468_v52 = vor.u32 %v3467_v14, %v6553_v6  ;;  %v3618_v42 = vpack.c.b16 %v3597_v17, %v3596_v23  ;;  %v3459_v19 = vrot.slane %v3458_v33, 4  ;;  %v4564_v40 = vshll.u32 %v4235_v45, 16  ;;  %v489_v14 = vld [vmem:[%s6512_s19 + $0x18] sm:$0xf]  ;;  %v4236_v17 = vld [vmem:[#allocation2 + $0xfc] sm:$0xf] }
 0x1c0   : > { %v4791_v50 = vpop.f32.mrf.mxu3  ;;  %v3776_v24 = vadd.f32 %v3700_v13, %v3046_v48  ;;  %v3473_v13 = vrot.slane %v3471_v21, 5  ;;  %v4711_v56 = vpack.c.b16 %v4690_v8, %v4689_v1  ;;  %v4561_v44 = vor.u32 %v4560_v49, %v6568_v51  ;;  %509 = vst.msk [vmem:[#allocation2 + $0x108] sm:$0xf] %vm379_vm2, %v489_v14  ;;  %v491_v33 = vld [vmem:[%s6512_s19 + $0x20] sm:$0x1] }
 0x1c1   : > { %v4868_v18 = vadd.f32 %v4791_v50, %v4138_v5  ;;  %v4066_v54 = vpop.f32.mrf.mxu2  ;;  %v6565_v47 = vpop.f32.mrf.mxu0  ;;  %v3469_v5 = vrot.slane %v3468_v52, 4  ;;  %v4552_v50 = vrot.slane %v4551_v36, 4  ;;  %v3047_v53 = vadd.f32 %v6534_v3, %v6196_v25  ;;  %v511_v21 = vld [vmem:[#allocation2 + $0x110] sm:$0x1]  ;;  %v5702_v3 = vld [vmem:[#allocation2 + $0xe4] sm:$0xff] }
 0x1c2   : > { %v4139_v46 = vadd.f32 %v4063_v57, %v3776_v24  ;;  %v3476_v57 = vshrl.u32 %v3143_v2, 16  ;;  %v3479_v23 = vshll.u32 %v3143_v2, 16  ;;  %v3485_v36 = vshll.u32 %v3144_v11, 16 }
 0x1c3   : > { %v4968_v43 = vadd.f32 %v6485_v37, %v4868_v18  ;;  %v490_v18 = vld [vmem:[%s6512_s19 + $0x1c] sm:$0xf]  ;;  %v3489_v25 = vshrl.u32 %v3144_v11, 16  ;;  %v4562_v1 = vrot.slane %v4561_v44, 4  ;;  %v4566_v8 = vrot.slane %v4564_v40, 5 }
 0x1c4   : > { %510 = vst.msk [vmem:[#allocation2 + $0x10c] sm:$0xf] %vm379_vm2, %v490_v18  ;;  %v512_v49 = vsel %vm5853_vm3, %v491_v33, %v511_v21  ;;  %v4569_v2 = vshrl.u32 %v4236_v17, 16  ;;  %v3474_v14 = vsel %vm5888_vm7, %v3469_v5, %v3473_v13  ;;  %v4557_v40 = vsel %vm5888_vm7, %v4552_v50, %v6568_v51  ;;  %v3145_v50 = vld [vmem:[#allocation2 + $0xf8] sm:$0x1] }
 0x1c5   : > { %5000 = vst [vmem:[%s6499_s14 + $0x10] sm:$0xff] %v4968_v43  ;;  %v3481_v11 = vrot.slane %v3479_v23, 5  ;;  %v6596_v18 = vrot.slane %v3485_v36, 5  ;;  %v3048_v13 = vadd.f32 %v6565_v47, %v6206_v58  ;;  %v3599_v23 = vunpack.c.l.b16 %v3474_v14 }
 0x1c6   : > { %513 = vst [vmem:[#allocation2 + $0x110] sm:$0x1] %v512_v49  ;;  %v3495_v58 = vshll.u32 %v3145_v50, 16 }
 0x1c7   : > { %v3703_v31 = vpop.f32.mrf.mxu1 }
 0x1c8   : > { %v4793_v48 = vpop.f32.mrf.mxu3  ;;  %v3777_v24 = vadd.f32 %v3703_v31, %v3047_v53  ;;  %v3464_v31 = vsel %vm5888_vm7, %v3459_v19, %v6553_v6  ;;  %v3491_v53 = vrot.slane %v3489_v25, 4  ;;  %v4567_v6 = vsel %vm5888_vm7, %v4562_v1, %v4566_v8  ;;  %v4238_v8 = vld [vmem:[#allocation2 + $0x104] sm:$0x1] }
 0x1c9   : > { %v4869_v20 = vadd.f32 %v4793_v48, %v4139_v46  ;;  %v4068_v52 = vpop.f32.mrf.mxu2  ;;  %v6581_v45 = vpop.f32.mrf.mxu0  ;;  %v4572_v46 = vshll.u32 %v4236_v17, 16  ;;  %v3478_v48 = vrot.slane %v3476_v57, 4  ;;  %v3598_v57 = vunpack.c.l.b16 %v3464_v31 }
 0x1ca   : > { %5500 = vmatmul.msk.bf16.gmra.mxu1 %vm716_vm4, %v3618_v42  ;;  %v4237_v42 = vld [vmem:[#allocation2 + $0x100] sm:$0xf]  ;;  %v4140_v44 = vadd.f32 %v4066_v54, %v3777_v24  ;;  %v4571_v54 = vrot.slane %v4569_v2, 4  ;;  %v4691_v17 = vunpack.c.l.b16 %v4557_v40  ;;  %v3492_v25 = vor.u32 %v3491_v53, %v6596_v18  ;;  %v3146_v2 = vld [vmem:[#allocation2 + $0xfc] sm:$0xf] }
 0x1cb   : > { %v4969_v43 = vadd.f32 %v6485_v37, %v4869_v20  ;;  %v4578_v19 = vshll.u32 %v4237_v42, 16  ;;  %v4582_v5 = vshrl.u32 %v4237_v42, 16  ;;  %v3482_v36 = vor.u32 %v3481_v11, %v3478_v48  ;;  %v5683_v11 = vld [vmem:[#allocation2 + $0xf0] sm:$0xff] }
 0x1cc   : > { %5473 = vmatmul.msk.bf16.gmra.mxu0 %vm716_vm4, %v5682_v26  ;;  %v4574_v26 = vrot.slane %v4572_v46, 5  ;;  %v3619_v42 = vpack.c.b16 %v3599_v23, %v3598_v57  ;;  %v3493_v40 = vrot.slane %v3492_v25, 4  ;;  %v3497_v53 = vrot.slane %v3495_v58, 5  ;;  %v516_v57 = vld [vmem:[#allocation2 + $0x11c] sm:$0x1] }
 0x1cd   : > { %5001 = vst [vmem:[%s6499_s14 + $0x18] sm:$0xff] %v4969_v43  ;;  %5620 = vmatmul.msk.bf16.gmra.mxu3 %vm716_vm4, %v4711_v56  ;;  %v6607_v47 = vrot.slane %v4578_v19, 5  ;;  %v4584_v1 = vrot.slane %v4582_v5, 4  ;;  %v3483_v14 = vrot.slane %v3482_v36, 4  ;;  %v493_v19 = vld [vmem:[%s6512_s19 + $0x28] sm:$0xf]  ;;  %v3049_v5 = vadd.f32 %v6581_v45, %v6222_v38 }
 0x1ce   : > { %5593 = vmatmul.msk.bf16.gmra.mxu2 %vm716_vm4, %v5702_v3  ;;  %v4692_v3 = vunpack.c.l.b16 %v4567_v6  ;;  %v4575_v49 = vor.u32 %v4574_v26, %v4571_v54  ;;  %v4588_v6 = vshll.u32 %v4238_v8, 16  ;;  %v3500_v50 = vshrl.u32 %v3146_v2, 16  ;;  %515 = vst.msk [vmem:[#allocation2 + $0x118] sm:$0xf] %vm379_vm2, %v493_v19  ;;  %v4239_v54 = vld [vmem:[#allocation2 + $0x108] sm:$0xf] }
 0x1cf   : > { %v3705_v56 = vpop.f32.mrf.mxu1  ;;  %v494_v26 = vld [vmem:[%s6512_s19 + $0x2c] sm:$0x1]  ;;  %v5703_v36 = vld [vmem:[#allocation2 + $0xfc] sm:$0xff]  ;;  %v3503_v38 = vshll.u32 %v3146_v2, 16  ;;  %v3488_v2 = vsel %vm5888_vm7, %v3483_v14, %v6596_v18 }
 0x1d0   : > { %v4796_v20 = vpop.f32.mrf.mxu3  ;;  %v3778_v21 = vadd.f32 %v3705_v56, %v3048_v13  ;;  %v4712_v48 = vpack.c.b16 %v4692_v3, %v4691_v17  ;;  %v4240_v45 = vld [vmem:[#allocation2 + $0x10c] sm:$0xf]  ;;  %v517_v25 = vsel %vm5853_vm3, %v494_v26, %v516_v57  ;;  %v4590_v58 = vrot.slane %v4588_v6, 5  ;;  %v4241_v26 = vld [vmem:[#allocation2 + $0x110] sm:$0x1] }
 0x1d1   : > { %v4870_v51 = vadd.f32 %v4796_v20, %v4140_v44  ;;  %v4071_v43 = vpop.f32.mrf.mxu2  ;;  %v6604_v24 = vpop.f32.mrf.mxu0  ;;  %v492_v44 = vld [vmem:[%s6512_s19 + $0x24] sm:$0xf]  ;;  %v4585_v20 = vor.u32 %v4584_v1, %v6607_v47  ;;  %518 = vst [vmem:[#allocation2 + $0x11c] sm:$0x1] %v517_v25  ;;  %v3502_v6 = vrot.slane %v3500_v50, 4  ;;  %v3505_v19 = vrot.slane %v3503_v38, 5 }
 0x1d2   : > { %v4141_v46 = vadd.f32 %v4068_v52, %v3778_v21  ;;  %514 = vst.msk [vmem:[#allocation2 + $0x114] sm:$0xf] %vm379_vm2, %v492_v44  ;;  %v4576_v52 = vrot.slane %v4575_v49, 4  ;;  %v4593_v49 = vshrl.u32 %v4239_v54, 16  ;;  %v3600_v50 = vunpack.c.l.b16 %v3488_v2 }
 0x1d3   : > { %v4970_v33 = vadd.f32 %v6485_v37, %v4870_v51  ;;  %v3147_v51 = vld [vmem:[#allocation2 + $0x100] sm:$0xf]  ;;  %v4586_v3 = vrot.slane %v4585_v20, 4  ;;  %v3498_v20 = vsel %vm5888_vm7, %v3493_v40, %v3497_v53  ;;  %v3148_v40 = vld [vmem:[#allocation2 + $0x104] sm:$0x1]  ;;  %v3506_v38 = vor.u32 %v3505_v19, %v3502_v6 }
 0x1d4   : > { %v3509_v1 = vshll.u32 %v3147_v51, 16  ;;  %v3513_v8 = vshrl.u32 %v3147_v51, 16  ;;  %v4595_v53 = vrot.slane %v4593_v49, 4  ;;  %v3519_v25 = vshll.u32 %v3148_v40, 16 }
 0x1d5   : > { %5002 = vst [vmem:[%s6499_s14 + $0x20] sm:$0xff] %v4970_v33  ;;  %v3507_v2 = vrot.slane %v3506_v38, 4 }
 0x1d6   : > { %v6638_v18 = vrot.slane %v3509_v1, 5  ;;  %v3515_v14 = vrot.slane %v3513_v8, 4  ;;  %v3521_v19 = vrot.slane %v3519_v25, 5 }
 0x1d7   : > { %v3708_v31 = vpop.f32.mrf.mxu1 }
 0x1d8   : > { %v4798_v56 = vpop.f32.mrf.mxu3  ;;  %v3779_v17 = vadd.f32 %v3708_v31, %v3049_v5  ;;  %v4606_v31 = vshrl.u32 %v4240_v45, 16 }
 0x1d9   : > { %v4871_v13 = vadd.f32 %v4798_v56, %v4141_v46  ;;  %v4073_v33 = vpop.f32.mrf.mxu2  ;;  %v6620_v21 = vpop.f32.mrf.mxu0  ;;  %v4602_v46 = vshll.u32 %v4240_v45, 16  ;;  %v3516_v45 = vor.u32 %v3515_v14, %v6638_v18 }
 0x1da   : > { %5501 = vmatmul.msk.bf16.gmra.mxu1 %vm716_vm4, %v3619_v42  ;;  %v4596_v42 = vshll.u32 %v4239_v54, 16  ;;  %v4142_v44 = vadd.f32 %v4071_v43, %v3779_v17  ;;  %v3050_v43 = vadd.f32 %v6604_v24, %v6235_v7  ;;  %v3601_v54 = vunpack.c.l.b16 %v3498_v20  ;;  %v5684_v20 = vld [vmem:[#allocation2 + $0xfc] sm:$0xff] }
 0x1db   : > { %v4971_v23 = vadd.f32 %v6485_v37, %v4871_v13  ;;  %v6642_v57 = vrot.slane %v4602_v46, 5  ;;  %v3149_v46 = vld [vmem:[#allocation2 + $0x108] sm:$0xf]  ;;  %v3517_v6 = vrot.slane %v3516_v45, 4  ;;  %v3512_v45 = vsel %vm5888_vm7, %v3507_v2, %v6638_v18 }
 0x1dc   : > { %5474 = vmatmul.msk.bf16.gmra.mxu0 %vm716_vm4, %v5683_v11  ;;  %v4591_v11 = vsel %vm5888_vm7, %v4586_v3, %v4590_v58  ;;  %v4598_v51 = vrot.slane %v4596_v42, 5  ;;  %v4612_v58 = vshll.u32 %v4241_v26, 16  ;;  %v3620_v1 = vpack.c.b16 %v3601_v54, %v3600_v50 }
 0x1dd   : > { %5003 = vst [vmem:[%s6499_s14 + $0x28] sm:$0xff] %v4971_v23  ;;  %5621 = vmatmul.msk.bf16.gmra.mxu3 %vm716_vm4, %v4712_v48  ;;  %v4581_v48 = vsel %vm5888_vm7, %v4576_v52, %v6607_v47  ;;  %v4608_v47 = vrot.slane %v4606_v31, 4  ;;  %v4694_v24 = vunpack.c.l.b16 %v4591_v11  ;;  %v495_v31 = vld [vmem:[%s6512_s19 + $0x30] sm:$0xf]  ;;  %v3524_v40 = vshrl.u32 %v3149_v46, 16 }
 0x1de   : > { %5594 = vmatmul.msk.bf16.gmra.mxu2 %vm716_vm4, %v5703_v36  ;;  %v4693_v7 = vunpack.c.l.b16 %v4581_v48  ;;  %v4599_v3 = vor.u32 %v4598_v51, %v4595_v53  ;;  %519 = vst.msk [vmem:[#allocation2 + $0x120] sm:$0xf] %vm379_vm2, %v495_v31  ;;  %v3051_v48 = vadd.f32 %v6620_v21, %v6254_v34  ;;  %v497_v53 = vld [vmem:[%s6512_s19 + $0x38] sm:$0x1]  ;;  %v521_v51 = vld [vmem:[#allocation2 + $0x128] sm:$0x1]  ;;  %v3522_v25 = vsel %vm5888_vm7, %v3517_v6, %v3521_v19 }
 0x1df   : > { %v3710_v56 = vpop.f32.mrf.mxu1  ;;  %v4609_v8 = vor.u32 %v4608_v47, %v6642_v57  ;;  %v522_v34 = vsel %vm5853_vm3, %v497_v53, %v521_v51  ;;  %v5704_v21 = vld [vmem:[#allocation2 + $0x108] sm:$0xff]  ;;  %v3603_v6 = vunpack.c.l.b16 %v3522_v25 }
 0x1e0   : > { %v4801_v5 = vpop.f32.mrf.mxu3  ;;  %v3780_v23 = vadd.f32 %v3710_v56, %v3050_v43  ;;  %v4713_v56 = vpack.c.b16 %v4694_v24, %v4693_v7  ;;  %v4600_v14 = vrot.slane %v4599_v3, 4  ;;  %v4614_v43 = vrot.slane %v4612_v58, 5  ;;  %523 = vst [vmem:[#allocation2 + $0x128] sm:$0x1] %v522_v34  ;;  %v4243_v24 = vld [vmem:[#allocation2 + $0x118] sm:$0xf] }
 0x1e1   : > { %v4872_v13 = vadd.f32 %v4801_v5, %v4142_v44  ;;  %v4076_v17 = vpop.f32.mrf.mxu2  ;;  %v6645_v36 = vpop.f32.mrf.mxu0  ;;  %v496_v5 = vld [vmem:[%s6512_s19 + $0x34] sm:$0xf]  ;;  %v4626_v18 = vshll.u32 %v4243_v24, 16  ;;  %v4630_v2 = vshrl.u32 %v4243_v24, 16 }
 0x1e2   : > { %v4143_v49 = vadd.f32 %v4073_v33, %v3780_v23  ;;  %v3150_v33 = vld [vmem:[#allocation2 + $0x10c] sm:$0xf]  ;;  %520 = vst.msk [vmem:[#allocation2 + $0x124] sm:$0xf] %vm379_vm2, %v496_v5  ;;  %v4242_v23 = vld [vmem:[#allocation2 + $0x114] sm:$0xf]  ;;  %v4605_v12 = vsel %vm5888_vm7, %v4600_v14, %v6642_v57 }
 0x1e3   : > { %v4972_v52 = vadd.f32 %v6485_v37, %v4872_v13  ;;  %v4610_v13 = vrot.slane %v4609_v8, 4  ;;  %v3533_v38 = vshll.u32 %v3150_v33, 16  ;;  %v3537_v7 = vshrl.u32 %v3150_v33, 16  ;;  %v3151_v5 = vld [vmem:[#allocation2 + $0x110] sm:$0x1] }
 0x1e4   : > { %v3526_v8 = vrot.slane %v3524_v40, 4  ;;  %v4620_v31 = vshll.u32 %v4242_v23, 16  ;;  %v4695_v19 = vunpack.c.l.b16 %v4605_v12  ;;  %v6678_v51 = vrot.slane %v4626_v18, 5  ;;  %v5705_v18 = vld [vmem:[#allocation2 + $0x114] sm:$0xff] }
 0x1e5   : > { %5004 = vst [vmem:[%s6499_s14 + $0x30] sm:$0xff] %v4972_v52  ;;  %v3527_v52 = vshll.u32 %v3149_v46, 16  ;;  %v4617_v46 = vshrl.u32 %v4242_v23, 16  ;;  %v3539_v57 = vrot.slane %v3537_v7, 4 }
 0x1e6   : > { %v4622_v53 = vrot.slane %v4620_v31, 5 }
 0x1e7   : > { %v3713_v42 = vpop.f32.mrf.mxu1  ;;  %v4619_v40 = vrot.slane %v4617_v46, 4 }
 0x1e8   : > { %v4803_v44 = vpop.f32.mrf.mxu3  ;;  %v3781_v54 = vadd.f32 %v3713_v42, %v3051_v48 }
 0x1e9   : > { %v4873_v11 = vadd.f32 %v4803_v44, %v4143_v49  ;;  %v4078_v26 = vpop.f32.mrf.mxu2  ;;  %v2988_v47 = vpop.f32.mrf.mxu0  ;;  %v3529_v49 = vrot.slane %v3527_v52, 5  ;;  %v3052_v44 = vadd.f32 %v6645_v36, %v6258_v15  ;;  %v4632_v15 = vrot.slane %v4630_v2, 4 }
 0x1ea   : > { %5502 = vmatmul.msk.bf16.gmra.mxu1 %vm716_vm4, %v3620_v1  ;;  %v4144_v3 = vadd.f32 %v4076_v17, %v3781_v54  ;;  %v4615_v1 = vsel %vm5888_vm7, %v4610_v13, %v4614_v43  ;;  %v3602_v17 = vunpack.c.l.b16 %v3512_v45  ;;  %v4244_v54 = vld [vmem:[#allocation2 + $0x11c] sm:$0x1]  ;;  %v4623_v24 = vor.u32 %v4622_v53, %v4619_v40 }
 0x1eb   : > { %v4973_v50 = vadd.f32 %v6485_v37, %v4873_v11  ;;  %v4696_v33 = vunpack.c.l.b16 %v4615_v1  ;;  %v3530_v13 = vor.u32 %v3529_v49, %v3526_v8  ;;  %v4633_v45 = vor.u32 %v4632_v15, %v6678_v51  ;;  %v5685_v8 = vld [vmem:[#allocation2 + $0x108] sm:$0xff]  ;;  %v3152_v49 = vld [vmem:[#allocation2 + $0x114] sm:$0xf] }
 0x1ec   : > { %5475 = vmatmul.msk.bf16.gmra.mxu0 %vm716_vm4, %v5684_v20  ;;  %v3535_v20 = vrot.slane %v3533_v38, 5  ;;  %v3621_v52 = vpack.c.b16 %v3603_v6, %v3602_v17  ;;  %v4636_v25 = vshll.u32 %v4244_v54, 16  ;;  %v3053_v12 = vadd.f32 %v2988_v47, %v6269_v60 }
 0x1ed   : > { %5005 = vst [vmem:[%s6499_s14 + $0x38] sm:$0xff] %v4973_v50  ;;  %5622 = vmatmul.msk.bf16.gmra.mxu3 %vm716_vm4, %v4713_v56  ;;  %v3543_v50 = vshll.u32 %v3151_v5, 16  ;;  %v4714_v23 = vpack.c.b16 %v4696_v33, %v4695_v19  ;;  %v3531_v7 = vrot.slane %v3530_v13, 4  ;;  %v4624_v2 = vrot.slane %v4623_v24, 4  ;;  %v4245_v19 = vld [vmem:[#allocation2 + $0x120] sm:$0xf] }
 0x1ee   : > { %5595 = vmatmul.msk.bf16.gmra.mxu2 %vm716_vm4, %v5704_v21  ;;  %v3540_v36 = vor.u32 %v3539_v57, %v3535_v20  ;;  %v3153_v57 = vld [vmem:[#allocation2 + $0x118] sm:$0xf]  ;;  %v3548_v17 = vshrl.u32 %v3152_v49, 16  ;;  %v3551_v6 = vshll.u32 %v3152_v49, 16  ;;  %v4246_v13 = vld [vmem:[#allocation2 + $0x124] sm:$0xf] }
 0x1ef   : > { %v3715_v58 = vpop.f32.mrf.mxu1  ;;  %v3545_v1 = vrot.slane %v3543_v50, 5  ;;  %v3536_v60 = vsel %vm5888_vm7, %v3531_v7, %v3535_v20  ;;  %v3561_v33 = vshrl.u32 %v3153_v57, 16  ;;  %v4629_v20 = vsel %vm5888_vm7, %v4624_v2, %v6678_v51 }
 0x1f0   : > { %v4806_v42 = vpop.f32.mrf.mxu3  ;;  %v3782_v11 = vadd.f32 %v3715_v58, %v3052_v44  ;;  %v3541_v58 = vrot.slane %v3540_v36, 4  ;;  %v4634_v44 = vrot.slane %v4633_v45, 4  ;;  %v3604_v53 = vunpack.c.l.b16 %v3536_v60 }
 0x1f1   : > { %v4874_v56 = vadd.f32 %v4806_v42, %v4144_v3  ;;  %v4081_v14 = vpop.f32.mrf.mxu2  ;;  %v2990_v43 = vpop.f32.mrf.mxu0  ;;  %v3550_v54 = vrot.slane %v3548_v17, 4  ;;  %v3563_v51 = vrot.slane %v3561_v33, 4 }
 0x1f2   : > { %v4145_v34 = vadd.f32 %v4078_v26, %v3782_v11  ;;  %v3546_v47 = vsel %vm5888_vm7, %v3541_v58, %v3545_v1  ;;  %v3557_v11 = vshll.u32 %v3153_v57, 16  ;;  %v3054_v50 = vadd.f32 %v2990_v43, %v6276_v22  ;;  %v4247_v57 = vld [vmem:[#allocation2 + $0x128] sm:$0x1] }
 0x1f3   : > { %v4974_v48 = vadd.f32 %v6485_v37, %v4874_v56  ;;  %v4638_v56 = vrot.slane %v4636_v25, 5  ;;  %v3605_v15 = vunpack.c.l.b16 %v3546_v47  ;;  %v4697_v1 = vunpack.c.l.b16 %v4629_v20 }
 0x1f4   : > { %v4660_v33 = vshll.u32 %v4247_v57, 16 }
 0x1f5   : > { %5006 = vst [vmem:[%s6499_s14 + $0x40] sm:$0xff] %v4974_v48  ;;  %v4639_v36 = vsel %vm5888_vm7, %v4634_v44, %v4638_v56  ;;  %v3622_v58 = vpack.c.b16 %v3605_v15, %v3604_v53 }
 0x1f7   : > { %v3718_v21 = vpop.f32.mrf.mxu1 }
 0x1f8   : > { %v4808_v38 = vpop.f32.mrf.mxu3  ;;  %v3783_v42 = vadd.f32 %v3718_v21, %v3053_v12  ;;  %v4644_v21 = vshll.u32 %v4245_v19, 16  ;;  %v3559_v12 = vrot.slane %v3557_v11, 5 }
 0x1f9   : > { %v4875_v3 = vadd.f32 %v4808_v38, %v4145_v34  ;;  %v4083_v46 = vpop.f32.mrf.mxu2  ;;  %v2993_v31 = vpop.f32.mrf.mxu0  ;;  %v3553_v34 = vrot.slane %v3551_v6, 5  ;;  %v4654_v38 = vshrl.u32 %v4246_v13, 16 }
 0x1fa   : > { %5503 = vmatmul.msk.bf16.gmra.mxu1 %vm716_vm4, %v3621_v52  ;;  %v4146_v5 = vadd.f32 %v4081_v14, %v3783_v42  ;;  %v4641_v52 = vshrl.u32 %v4245_v19, 16  ;;  %v4646_v49 = vrot.slane %v4644_v21, 5  ;;  %v3564_v44 = vor.u32 %v3563_v51, %v3559_v12  ;;  %v5686_v19 = vld [vmem:[#allocation2 + $0x114] sm:$0xff] }
 0x1fb   : > { %v4975_v26 = vadd.f32 %v6485_v37, %v4875_v3  ;;  %v3154_v3 = vld [vmem:[#allocation2 + $0x11c] sm:$0x1]  ;;  %v3554_v43 = vor.u32 %v3553_v34, %v3550_v54  ;;  %v4656_v42 = vrot.slane %v4654_v38, 4  ;;  %v3055_v47 = vadd.f32 %v2993_v31, %v6290_v0 }
 0x1fc   : > { %5476 = vmatmul.msk.bf16.gmra.mxu0 %vm716_vm4, %v5685_v8  ;;  %v4698_v8 = vunpack.c.l.b16 %v4639_v36  ;;  %v4643_v22 = vrot.slane %v4641_v52, 4  ;;  %v3567_v56 = vshll.u32 %v3154_v3, 16  ;;  %v3565_v15 = vrot.slane %v3564_v44, 4  ;;  %v5706_v36 = vld [vmem:[#allocation2 + $0x120] sm:$0xff] }
 0x1fd   : > { %5007 = vst [vmem:[%s6499_s14 + $0x48] sm:$0xff] %v4975_v26  ;;  %5623 = vmatmul.msk.bf16.gmra.mxu3 %vm716_vm4, %v4714_v23  ;;  %v4650_v23 = vshll.u32 %v4246_v13, 16 }
 0x1fe   : > { %5596 = vmatmul.msk.bf16.gmra.mxu2 %vm716_vm4, %v5705_v18  ;;  %v4715_v6 = vpack.c.b16 %v4698_v8, %v4697_v1  ;;  %v3569_v20 = vrot.slane %v3567_v56, 5 }
 0x1ff   : > { %v3720_v48 = vpop.f32.mrf.mxu1  ;;  %v4652_v26 = vrot.slane %v4650_v23, 5 }
 0x200   : > { %v4811_v40 = vpop.f32.mrf.mxu3  ;;  %v3784_v24 = vadd.f32 %v3720_v48, %v3054_v50  ;;  %v4647_v48 = vor.u32 %v4646_v49, %v4643_v22  ;;  %v4662_v50 = vrot.slane %v4660_v33, 5  ;;  %v3570_v34 = vsel %vm5888_vm7, %v3565_v15, %v3569_v20 }
 0x201   : > { %v4876_v14 = vadd.f32 %v4811_v40, %v4146_v5  ;;  %v4086_v45 = vpop.f32.mrf.mxu2  ;;  %v2995_v25 = vpop.f32.mrf.mxu0  ;;  %v3555_v5 = vrot.slane %v3554_v43, 4  ;;  %v4657_v11 = vor.u32 %v4656_v42, %v4652_v26 }
 0x202   : > { %v4147_v18 = vadd.f32 %v4083_v46, %v3784_v24  ;;  %v4648_v0 = vrot.slane %v4647_v48, 4  ;;  %v3056_v23 = vadd.f32 %v2995_v25, %v6294_v35  ;;  %v3607_v24 = vunpack.c.l.b16 %v3570_v34 }
 0x203   : > { %v4976_v7 = vadd.f32 %v6485_v37, %v4876_v14  ;;  %v4658_v31 = vrot.slane %v4657_v11, 4  ;;  %v3560_v52 = vsel %vm5888_vm7, %v3555_v5, %v3559_v12 }
 0x204   : > { %v4653_v51 = vsel %vm5888_vm7, %v4648_v0, %v4652_v26 }
 0x205   : > { %5008 = vst [vmem:[%s6499_s14 + $0x50] sm:$0xff] %v4976_v7  ;;  %v3606_v7 = vunpack.c.l.b16 %v3560_v52  ;;  %v4699_v8 = vunpack.c.l.b16 %v4653_v51  ;;  %v6737_v51 = vld [vmem:[%s6794_s3] ss:$0 sm:$0xff] }
 0x207   : > { %v3723_v2 = vpop.f32.mrf.mxu1  ;;  %v3623_v43 = vpack.c.b16 %v3607_v24, %v3606_v7 }
 0x208   : > { %v4813_v60 = vpop.f32.mrf.mxu3  ;;  %v3785_v46 = vadd.f32 %v3723_v2, %v3055_v47 }
 0x209   : > { %v4877_v17 = vadd.f32 %v4813_v60, %v4147_v18  ;;  %v4088_v40 = vpop.f32.mrf.mxu2  ;;  %v2998_v53 = vpop.f32.mrf.mxu0 }
 0x20a   : > { %5504 = vmatmul.msk.bf16.gmra.mxu1 %vm716_vm4, %v3622_v58  ;;  %v4148_v14 = vadd.f32 %v4086_v45, %v3785_v46  ;;  %v4663_v45 = vsel %vm5888_vm7, %v4658_v31, %v4662_v50  ;;  %v3057_v42 = vadd.f32 %v2998_v53, %v6305_v10 }
 0x20b   : > { %v4977_v13 = vadd.f32 %v6485_v37, %v4877_v17  ;;  %v4700_v22 = vunpack.c.l.b16 %v4663_v45 }
 0x20c   : > { %5477 = vmatmul.msk.bf16.gmra.mxu0 %vm716_vm4, %v5686_v19 }
 0x20d   : > { %5009 = vst [vmem:[%s6499_s14 + $0x58] sm:$0xff] %v4977_v13  ;;  %5624 = vmatmul.msk.bf16.gmra.mxu3 %vm716_vm4, %v4715_v6  ;;  %v4716_v26 = vpack.c.b16 %v4700_v22, %v4699_v8 }
 0x20e   : > { %5597 = vmatmul.msk.bf16.gmra.mxu2 %vm716_vm4, %v5706_v36 }
 0x20f   : > { %v3725_v54 = vpop.f32.mrf.mxu1 }
 0x210   : > { %v4816_v21 = vpop.f32.mrf.mxu3  ;;  %v3786_v12 = vadd.f32 %v3725_v54, %v3056_v23 }
 0x211   : > { %v4878_v38 = vadd.f32 %v4816_v21, %v4148_v14  ;;  %v4091_v58 = vpop.f32.mrf.mxu2  ;;  %v3000_v1 = vpop.f32.mrf.mxu0 }
 0x212   : > { %v4149_v35 = vadd.f32 %v4088_v40, %v3786_v12  ;;  %v3058_v17 = vadd.f32 %v3000_v1, %v6312_v59 }
 0x213   : > { %v4978_v3 = vadd.f32 %v6485_v37, %v4878_v38 }
 0x215   : > { %5010 = vst [vmem:[%s6499_s14 + $0x60] sm:$0xff] %v4978_v3 }
 0x217   : > { %v3728_v25 = vpop.f32.mrf.mxu1 }
 0x218   : > { %v4818_v49 = vpop.f32.mrf.mxu3  ;;  %v3787_v2 = vadd.f32 %v3728_v25, %v3057_v42 }
 0x219   : > { %v4879_v18 = vadd.f32 %v4818_v49, %v4149_v35  ;;  %v4093_v44 = vpop.f32.mrf.mxu2  ;;  %v3003_v56 = vpop.f32.mrf.mxu0 }
 0x21a   : > { %5505 = vmatmul.msk.bf16.gmra.mxu1 %vm716_vm4, %v3623_v43  ;;  %v4150_v57 = vadd.f32 %v4091_v58, %v3787_v2  ;;  %v3059_v46 = vadd.f32 %v3003_v56, %v6326_v30 }
 0x21b   : > { %v4979_v55 = vadd.f32 %v6485_v37, %v4879_v18 }
 0x21d   : > { %5011 = vst [vmem:[%s6499_s14 + $0x68] sm:$0xff] %v4979_v55  ;;  %5625 = vmatmul.msk.bf16.gmra.mxu3 %vm716_vm4, %v4716_v26 }
 0x21f   : > { %v3730_v60 = vpop.f32.mrf.mxu1 }
 0x220   : > { %v4821_v47 = vpop.f32.mrf.mxu3  ;;  %v3788_v19 = vadd.f32 %v3730_v60, %v3058_v17 }
 0x221   : > { %v4880_v10 = vadd.f32 %v4821_v47, %v4150_v57  ;;  %v4096_v5 = vpop.f32.mrf.mxu2  ;;  %v3005_v48 = vpop.f32.mrf.mxu0 }
 0x222   : > { %v4151_v11 = vadd.f32 %v4093_v44, %v3788_v19  ;;  %v3060_v50 = vadd.f32 %v3005_v48, %v6330_v9 }
 0x223   : > { %v4980_v6 = vadd.f32 %v6485_v37, %v4880_v10 }
 0x225   : > { %5012 = vst [vmem:[%s6499_s14 + $0x70] sm:$0xff] %v4980_v6 }
 0x227   : > { %v3733_v33 = vpop.f32.mrf.mxu1 }
 0x228   : > { %v4823_v13 = vpop.f32.mrf.mxu3  ;;  %v3789_v15 = vadd.f32 %v3733_v33, %v3059_v46 }
 0x229   : > { %v4881_v40 = vadd.f32 %v4823_v13, %v4151_v11  ;;  %v4098_v20 = vpop.f32.mrf.mxu2  ;;  %v3008_v59 = vpop.f32.mrf.mxu0 }
 0x22a   : > { %v4152_v36 = vadd.f32 %v4096_v5, %v3789_v15  ;;  %v3061_v7 = vadd.f32 %v3008_v59, %v6341_v61 }
 0x22b   : > { %v4981_v53 = vadd.f32 %v6485_v37, %v4881_v40 }
 0x22d   : > { %5013 = vst [vmem:[%s6499_s14 + $0x78] sm:$0xff] %v4981_v53 }
 0x22f   : > { %v3735_v0 = vpop.f32.mrf.mxu1 }
 0x230   : > { %v4826_v31 = vpop.f32.mrf.mxu3  ;;  %v3790_v52 = vadd.f32 %v3735_v0, %v3060_v50 }
 0x231   : > { %v4882_v14 = vadd.f32 %v4826_v31, %v4152_v36  ;;  %v4101_v34 = vpop.f32.mrf.mxu2  ;;  %v3010_v30 = vpop.f32.mrf.mxu0 }
 0x232   : > { %v4153_v21 = vadd.f32 %v4098_v20, %v3790_v52  ;;  %v3062_v8 = vadd.f32 %v3010_v30, %v6348_v27 }
 0x233   : > { %v4982_v54 = vadd.f32 %v6485_v37, %v4882_v14 }
 0x235   : > { %5014 = vst [vmem:[%s6499_s14 + $0x80] sm:$0xff] %v4982_v54 }
 0x237   : > { %v3738_v23 = vpop.f32.mrf.mxu1 }
 0x238   : > { %v4828_v38 = vpop.f32.mrf.mxu3  ;;  %v3791_v45 = vadd.f32 %v3738_v23, %v3061_v7 }
 0x239   : > { %v4883_v24 = vadd.f32 %v4828_v38, %v4153_v21  ;;  %v4103_v37 = vpop.f32.mrf.mxu2  ;;  %v3013_v3 = vpop.f32.mrf.mxu0 }
 0x23a   : > { %v4154_v12 = vadd.f32 %v4101_v34, %v3791_v45  ;;  %v3063_v26 = vadd.f32 %v3013_v3, %v6362_v63 }
 0x23b   : > { %v4983_v9 = vadd.f32 %v6737_v51, %v4883_v24 }
 0x23d   : > { %5015 = vst [vmem:[%s6499_s14 + $0x88] sm:$0xff] %v4983_v9 }
 0x23f   : > { %v3740_v58 = vpop.f32.mrf.mxu1 }
 0x240   : > { %v4831_v1 = vpop.f32.mrf.mxu3  ;;  %v3792_v43 = vadd.f32 %v3740_v58, %v3062_v8 }
 0x241   : > { %v4884_v61 = vadd.f32 %v4831_v1, %v4154_v12  ;;  %v4106_v35 = vpop.f32.mrf.mxu2  ;;  %v3015_v25 = vpop.f32.mrf.mxu0 }
 0x242   : > { %v4155_v49 = vadd.f32 %v4103_v37, %v3792_v43  ;;  %v3064_v17 = vadd.f32 %v3015_v25, %v6366_v62 }
 0x243   : > { %v4984_v22 = vadd.f32 %v6737_v51, %v4884_v61 }
 0x245   : > { %5016 = vst [vmem:[%s6499_s14 + $0x90] sm:$0xff] %v4984_v22 }
 0x247   : > { %v3743_v42 = vpop.f32.mrf.mxu1 }
 0x248   : > { %v4833_v18 = vpop.f32.mrf.mxu3  ;;  %v3793_v44 = vadd.f32 %v3743_v42, %v3063_v26 }
 0x249   : > { %v4885_v55 = vadd.f32 %v4833_v18, %v4155_v49  ;;  %v4108_v56 = vpop.f32.mrf.mxu2  ;;  %v3018_v27 = vpop.f32.mrf.mxu0 }
 0x24a   : > { %v4156_v57 = vadd.f32 %v4106_v35, %v3793_v44  ;;  %v3065_v13 = vadd.f32 %v3018_v27, %v6377_v39  ;;  %v6803_v35 = vld [vmem:[#allocation4_spill] sm:$0xff] }
 0x24b   : > { %v4985_v2 = vadd.f32 %v6737_v51, %v4885_v55 }
 0x24d   : > { %5017 = vst [vmem:[%s6499_s14 + $0x98] sm:$0xff] %v4985_v2 }
 0x24f   : > { %v3745_v60 = vpop.f32.mrf.mxu1 }
 0x250   : > { %v4836_v47 = vpop.f32.mrf.mxu3  ;;  %v3794_v19 = vadd.f32 %v3745_v60, %v3064_v17 }
 0x251   : > { %v4886_v10 = vadd.f32 %v4836_v47, %v4156_v57  ;;  %v4111_v5 = vpop.f32.mrf.mxu2  ;;  %v3020_v63 = vpop.f32.mrf.mxu0 }
 0x252   : > { %v4157_v48 = vadd.f32 %v4108_v56, %v3794_v19  ;;  %v3066_v0 = vadd.f32 %v3020_v63, %v6384_v41  ;;  %v6804_v19 = vld [vmem:[#allocation5_spill] sm:$0xff] }
 0x253   : > { %v4986_v6 = vadd.f32 %v6737_v51, %v4886_v10 }
 0x255   : > { %5018 = vst [vmem:[%s6499_s14 + $0xa0] sm:$0xff] %v4986_v6 }
 0x257   : > { %v3748_v11 = vpop.f32.mrf.mxu1 }
 0x258   : > { %v4838_v33 = vpop.f32.mrf.mxu3  ;;  %v3795_v53 = vadd.f32 %v3748_v11, %v3065_v13 }
 0x259   : > { %v4887_v46 = vadd.f32 %v4838_v33, %v4157_v48  ;;  %v4113_v15 = vpop.f32.mrf.mxu2  ;;  %v3023_v62 = vpop.f32.mrf.mxu0 }
 0x25a   : > { %v4158_v20 = vadd.f32 %v4111_v5, %v3795_v53  ;;  %v3067_v21 = vadd.f32 %v3023_v62, %v6398_v29 }
 0x25b   : > { %v4987_v40 = vadd.f32 %v6737_v51, %v4887_v46 }
 0x25d   : > { %5019 = vst [vmem:[%s6499_s14 + $0xa8] sm:$0xff] %v4987_v40  ;;  %v6805_v40 = vld [vmem:[#allocation6_spill] sm:$0xff] }
 0x25f   : > { %v3750_v59 = vpop.f32.mrf.mxu1 }
 0x260   : > { %v4841_v36 = vpop.f32.mrf.mxu3  ;;  %v3796_v14 = vadd.f32 %v3750_v59, %v3066_v0 }
 0x261   : > { %v4888_v31 = vadd.f32 %v4841_v36, %v4158_v20  ;;  %v4116_v54 = vpop.f32.mrf.mxu2  ;;  %v3025_v39 = vpop.f32.mrf.mxu0 }
 0x262   : > { %v4159_v52 = vadd.f32 %v4113_v15, %v3796_v14  ;;  %v3068_v3 = vadd.f32 %v3025_v39, %v6402_v28 }
 0x263   : > { %v4988_v50 = vadd.f32 %v6737_v51, %v4888_v31 }
 0x265   : > { %5020 = vst [vmem:[%s6499_s14 + $0xb0] sm:$0xff] %v4988_v50 }
 0x267   : > { %v3753_v34 = vpop.f32.mrf.mxu1 }
 0x268   : > { %v4843_v30 = vpop.f32.mrf.mxu3  ;;  %v3797_v7 = vadd.f32 %v3753_v34, %v3067_v21 }
 0x269   : > { %v4889_v23 = vadd.f32 %v4843_v30, %v4159_v52  ;;  %v4118_v24 = vpop.f32.mrf.mxu2  ;;  %v3028_v41 = vpop.f32.mrf.mxu0 }
 0x26a   : > { %v4160_v9 = vadd.f32 %v4116_v54, %v3797_v7  ;;  %v3069_v25 = vadd.f32 %v3028_v41, %v6803_v35 }
 0x26b   : > { %v4989_v38 = vadd.f32 %v6737_v51, %v4889_v23 }
 0x26d   : > { %5021 = vst [vmem:[%s6499_s14 + $0xb8] sm:$0xff] %v4989_v38 }
 0x26f   : > { %v3755_v45 = vpop.f32.mrf.mxu1 }
 0x270   : > { %v4846_v37 = vpop.f32.mrf.mxu3  ;;  %v3798_v1 = vadd.f32 %v3755_v45, %v3068_v3 }
 0x271   : > { %v4890_v12 = vadd.f32 %v4846_v37, %v4160_v9  ;;  %v4121_v8 = vpop.f32.mrf.mxu2  ;;  %v3030_v29 = vpop.f32.mrf.mxu0 }
 0x272   : > { %v4161_v61 = vadd.f32 %v4118_v24, %v3798_v1  ;;  %v3070_v56 = vadd.f32 %v3030_v29, %v6420_v16 }
 0x273   : > { %v4990_v58 = vadd.f32 %v6737_v51, %v4890_v12 }
 0x275   : > { %5022 = vst [vmem:[%s6499_s14 + $0xc0] sm:$0xff] %v4990_v58 }
 0x277   : > { %v3758_v22 = vpop.f32.mrf.mxu1 }
 0x278   : > { %v4848_v43 = vpop.f32.mrf.mxu3  ;;  %v3799_v18 = vadd.f32 %v3758_v22, %v3069_v25 }
 0x279   : > { %v4891_v49 = vadd.f32 %v4848_v43, %v4161_v61  ;;  %v4123_v26 = vpop.f32.mrf.mxu2  ;;  %v3033_v2 = vpop.f32.mrf.mxu0 }
 0x27a   : > { %v4162_v28 = vadd.f32 %v4121_v8, %v3799_v18  ;;  %v3071_v5 = vadd.f32 %v3033_v2, %v6804_v19 }
 0x27b   : > { %v4991_v42 = vadd.f32 %v6737_v51, %v4891_v49 }
 0x27d   : > { %5023 = vst [vmem:[%s6499_s14 + $0xc8] sm:$0xff] %v4991_v42 }
 0x27f   : > { %v3760_v55 = vpop.f32.mrf.mxu1 }
 0x280   : > { %v4851_v44 = vpop.f32.mrf.mxu3  ;;  %v3800_v60 = vadd.f32 %v3760_v55, %v3070_v56 }
 0x281   : > { %v4892_v27 = vadd.f32 %v4851_v44, %v4162_v28  ;;  %v4126_v10 = vpop.f32.mrf.mxu2  ;;  %v3035_v48 = vpop.f32.mrf.mxu0 }
 0x282   : > { %v4163_v47 = vadd.f32 %v4123_v26, %v3800_v60  ;;  %v3072_v53 = vadd.f32 %v3035_v48, %v6805_v40 }
 0x283   : > { %v4992_v57 = vadd.f32 %v6737_v51, %v4892_v27 }
 0x285   : > { %5024 = vst [vmem:[%s6499_s14 + $0xd0] sm:$0xff] %v4992_v57 }
 0x287   : > { %v3763_v17 = vpop.f32.mrf.mxu1 }
 0x288   : > { %v4853_v6 = vpop.f32.mrf.mxu3  ;;  %v3801_v33 = vadd.f32 %v3763_v17, %v3071_v5 }
 0x289   : > { %v4893_v63 = vadd.f32 %v4853_v6, %v4163_v47  ;;  %v4128_v62 = vpop.f32.mrf.mxu2  ;;  %v3038_v36 = vpop.f32.mrf.mxu0 }
 0x28a   : > { %v4164_v13 = vadd.f32 %v4126_v10, %v3801_v33  ;;  %v3073_v14 = vadd.f32 %v3038_v36, %v6456_v4 }
 0x28b   : > { %v4993_v11 = vadd.f32 %v6737_v51, %v4893_v63 }
 0x28d   : > { %5025 = vst [vmem:[%s6499_s14 + $0xd8] sm:$0xff] %v4993_v11 }
 0x28f   : > { %v3765_v16 = vpop.f32.mrf.mxu1 }
 0x290   : > { %v4856_v46 = vpop.f32.mrf.mxu3  ;;  %v3802_v59 = vadd.f32 %v3765_v16, %v3072_v53 }
 0x291   : > { %v4894_v15 = vadd.f32 %v4856_v46, %v4164_v13  ;;  %v4131_v34 = vpop.f32.mrf.mxu2  ;;  %v3040_v30 = vpop.f32.mrf.mxu0 }
 0x292   : > { %v4165_v0 = vadd.f32 %v4128_v62, %v3802_v59  ;;  %v3074_v7 = vadd.f32 %v3040_v30, %v6467_v32 }
 0x293   : > { %v4994_v20 = vadd.f32 %v6737_v51, %v4894_v15 }
 0x295   : > { %5026 = vst [vmem:[%s6499_s14 + $0xe0] sm:$0xff] %v4994_v20 }
 0x297   : > { %v3768_v31 = vpop.f32.mrf.mxu1 }
 0x298   : > { %v4858_v50 = vpop.f32.mrf.mxu3  ;;  %v3803_v52 = vadd.f32 %v3768_v31, %v3073_v14 }
 0x299   : > { %v4895_v54 = vadd.f32 %v4858_v50, %v4165_v0  ;;  %v4133_v45 = vpop.f32.mrf.mxu2 }
 0x29a   : > { %v4166_v21 = vadd.f32 %v4131_v34, %v3803_v52 }
 0x29b   : > { %v4995_v39 = vadd.f32 %v6737_v51, %v4895_v54 }
 0x29d   : > { %5027 = vst [vmem:[%s6499_s14 + $0xe8] sm:$0xff] %v4995_v39 }
 0x29f   : > { %v3770_v38 = vpop.f32.mrf.mxu1 }
 0x2a0   : > { %v4861_v23 = vpop.f32.mrf.mxu3  ;;  %v3804_v9 = vadd.f32 %v3770_v38, %v3074_v7 }
 0x2a1   : > { %v4896_v24 = vadd.f32 %v4861_v23, %v4166_v21 }
 0x2a2   : > { %v4167_v4 = vadd.f32 %v4133_v45, %v3804_v9 }
 0x2a3   : > { %v4996_v41 = vadd.f32 %v6737_v51, %v4896_v24 }
 0x2a5   : > { %5028 = vst [vmem:[%s6499_s14 + $0xf0] sm:$0xff] %v4996_v41 }
 0x2a8   : > { %v4863_v37 = vpop.f32.mrf.mxu3 }
 0x2a9   : > { %v4897_v3 = vadd.f32 %v4863_v37, %v4167_v4 }
 0x2ab   : > { %v4997_v12 = vadd.f32 %v6737_v51, %v4897_v3 }
 0x2ad   : > { %5029 = vst [vmem:[%s6499_s14 + $0xf8] sm:$0xff] %v4997_v12 }
 0x2ae PF: > { %s14_s17 = sadd.s32 1, %s5762_s17   ;;  %s6806_s15 = smov %s5758_s16 }
 0x2af   : > { %p11_p5 = scmp.ge.s32.totalorder %s14_s17, 4   ;;  %s6807_s16 = smov %s6809_s18 }
 0x2b1   :  { %13 = sbr.rel (!%p11_p5) target bundleno = 2 (0x2), region = 80 }

</bundles_post_ra>
